<compile_context>
chip_gen: v7x
topology: tpu7x:2x2x1
jax: 0.10.0
libtpu: 0.0.40
codegen_flags: <defaults>
</compile_context>

<pallas_src>
import functools
import math

import jax
import jax.numpy as jnp
from jax.experimental import pallas as pl
from jax.experimental.pallas import tpu as pltpu

_VMEM_LIMIT = 32 * 1024 * 1024   # fits v5e/v6e/v7x scoped VMEM (raise on v6e)
_LN_EPS = 1e-5


def _pick_tile(n, candidates=(256, 128)):
    for t in candidates:
        if n % t == 0:
            return t
    return n  # small / ragged extents: use the full dimension (valid block)


# ---------------------------------------------------------------------------
# Row x Col tiled matmul (no bias) -- used for the fused QKV / KV / Q
# projections.  Single full-width MXU pass per tile, bf16 operands, f32 acc.
# ---------------------------------------------------------------------------
def _matmul_kernel(x_ref, w_ref, o_ref, *, mm_dtype):
    o_ref[...] = jnp.dot(x_ref[...].astype(mm_dtype), w_ref[...],
                         preferred_element_type=jnp.float32).astype(o_ref.dtype)


def matmul_rows(x2d, w, *, out_dtype, mm_dtype):
    R, K = x2d.shape
    M = w.shape[1]
    tr = _pick_tile(R)
    tc = _pick_tile(M, (512, 256, 128))
    return pl.pallas_call(
        functools.partial(_matmul_kernel, mm_dtype=mm_dtype),
        out_shape=jax.ShapeDtypeStruct((R, M), out_dtype),
        grid_spec=pltpu.PrefetchScalarGridSpec(
            num_scalar_prefetch=0,
            grid=(R // tr, M // tc),
            in_specs=[
                pl.BlockSpec((tr, K), lambda i, j: (i, 0)),
                pl.BlockSpec((K, tc), lambda i, j: (0, j)),
            ],
            out_specs=pl.BlockSpec((tr, tc), lambda i, j: (i, j)),
        ),
        compiler_params=pltpu.CompilerParams(
            dimension_semantics=("parallel", "parallel"),
            vmem_limit_bytes=_VMEM_LIMIT),
    )(x2d, w)


# ---------------------------------------------------------------------------
# Row x Col tiled Linear with bias -- final vocab projection.
# ---------------------------------------------------------------------------
def _linear_kernel(x_ref, w_ref, b_ref, o_ref, *, mm_dtype):
    y = jnp.dot(x_ref[...].astype(mm_dtype), w_ref[...],
                preferred_element_type=jnp.float32)
    o_ref[...] = (y + b_ref[...]).astype(o_ref.dtype)


def linear(x, w, b, *, mm_dtype):
    N, L, E = x.shape
    V = w.shape[0]
    R = N * L
    x2d = x.reshape(R, E)
    tr = _pick_tile(R)
    tv = _pick_tile(V, (512, 256, 128))
    out = pl.pallas_call(
        functools.partial(_linear_kernel, mm_dtype=mm_dtype),
        out_shape=jax.ShapeDtypeStruct((R, V), x.dtype),
        grid_spec=pltpu.PrefetchScalarGridSpec(
            num_scalar_prefetch=0,
            grid=(R // tr, V // tv),
            in_specs=[
                pl.BlockSpec((tr, E), lambda i, j: (i, 0)),
                pl.BlockSpec((E, tv), lambda i, j: (0, j)),
                pl.BlockSpec((1, tv), lambda i, j: (0, j)),
            ],
            out_specs=pl.BlockSpec((tr, tv), lambda i, j: (i, j)),
        ),
        compiler_params=pltpu.CompilerParams(
            dimension_semantics=("parallel", "parallel"),
            vmem_limit_bytes=_VMEM_LIMIT),
    )(x2d, w.T.astype(mm_dtype), b.reshape(1, V).astype(jnp.float32))
    return out.reshape(N, L, V)


# ---------------------------------------------------------------------------
# Fused FFN: Linear -> ReLU -> Linear -> (+residual) -> LayerNorm
# ---------------------------------------------------------------------------
def _ffn_ln_kernel(x_ref, w1_ref, b1_ref, w2_ref, b2_ref, g_ref, bt_ref, o_ref,
                   *, eps, mm_dtype):
    x = x_ref[...].astype(jnp.float32)                               # (tr, E)
    h = jnp.dot(x.astype(mm_dtype), w1_ref[...],
                preferred_element_type=jnp.float32) + b1_ref[...]
    h = jnp.maximum(h, 0.0)
    y = jnp.dot(h.astype(mm_dtype), w2_ref[...],
                preferred_element_type=jnp.float32) + b2_ref[...]
    z = y + x                                                        # residual
    mu = jnp.mean(z, axis=-1, keepdims=True)
    c = z - mu
    var = jnp.mean(c * c, axis=-1, keepdims=True)
    o_ref[...] = (c * jax.lax.rsqrt(var + eps) * g_ref[...] + bt_ref[...]
                  ).astype(o_ref.dtype)


def ffn_add_layer_norm(x, w1, b1, w2, b2, gamma, beta, *, mm_dtype,
                       eps=_LN_EPS):
    N, L, E = x.shape
    F = w1.shape[0]
    R = N * L
    x2d = x.reshape(R, E)
    tr = _pick_tile(R)
    out = pl.pallas_call(
        functools.partial(_ffn_ln_kernel, eps=eps, mm_dtype=mm_dtype),
        out_shape=jax.ShapeDtypeStruct((R, E), x.dtype),
        grid_spec=pltpu.PrefetchScalarGridSpec(
            num_scalar_prefetch=0,
            grid=(R // tr,),
            in_specs=[
                pl.BlockSpec((tr, E), lambda i: (i, 0)),
                pl.BlockSpec((E, F), lambda i: (0, 0)),
                pl.BlockSpec((1, F), lambda i: (0, 0)),
                pl.BlockSpec((F, E), lambda i: (0, 0)),
                pl.BlockSpec((1, E), lambda i: (0, 0)),
                pl.BlockSpec((1, E), lambda i: (0, 0)),
                pl.BlockSpec((1, E), lambda i: (0, 0)),
            ],
            out_specs=pl.BlockSpec((tr, E), lambda i: (i, 0)),
        ),
        compiler_params=pltpu.CompilerParams(
            dimension_semantics=("parallel",),
            vmem_limit_bytes=_VMEM_LIMIT),
    )(x2d, w1.T.astype(mm_dtype), b1.reshape(1, F).astype(jnp.float32),
      w2.T.astype(mm_dtype), b2.reshape(1, E).astype(jnp.float32),
      gamma.reshape(1, E).astype(jnp.float32),
      beta.reshape(1, E).astype(jnp.float32))
    return out.reshape(N, L, E)


# ---------------------------------------------------------------------------
# Flash attention over pre-projected Q/K/V, fused output projection +
# residual add + LayerNorm in the finalize step.
# ---------------------------------------------------------------------------
def _flash_ln_kernel(qp_ref, kp_ref, vp_ref, msk_ref, res_ref,
                     wo_ref, g_ref, b_ref, o_ref,
                     m_sc, l_sc, acc_sc,
                     *, causal, masked_logit, eps, mm_dtype):
    ki = pl.program_id(2)

    @pl.when(ki == 0)
    def _init():
        m_sc[...] = jnp.full(m_sc.shape, -jnp.inf, jnp.float32)
        l_sc[...] = jnp.zeros(l_sc.shape, jnp.float32)
        acc_sc[...] = jnp.zeros(acc_sc.shape, jnp.float32)

    qh = qp_ref[0]                            # (H, tq, D), scaled by 1/sqrt(E)
    kh = kp_ref[0]                            # (H, tk, D)
    vh = vp_ref[0]                            # (H, tk, D)

    s = jnp.einsum('hqd,hkd->hqk', qh, kh,
                   preferred_element_type=jnp.float32)          # (H, tq, tk)

    # key-padding mask (all-ones for the decoder causal self-attention).
    pad = msk_ref[0]                                            # (1, tk)
    s = jnp.where(pad[None] != 0.0, s, jnp.float32(masked_logit))

    if causal:
        tq, tk = s.shape[1], s.shape[2]
        q_pos = pl.program_id(1) * tq + jax.lax.broadcasted_iota(
            jnp.int32, (tq, tk), 0)
        k_pos = ki * tk + jax.lax.broadcasted_iota(jnp.int32, (tq, tk), 1)
        s = jnp.where((q_pos >= k_pos)[None], s, jnp.float32(masked_logit))

    # Online softmax update (f32).
    m_prev = m_sc[...]
    m_new = jnp.maximum(m_prev, jnp.max(s, axis=-1, keepdims=True))
    alpha = jnp.exp(m_prev - m_new)
    p = jnp.exp(s - m_new)
    l_sc[...] = alpha * l_sc[...] + jnp.sum(p, axis=-1, keepdims=True)
    acc_sc[...] = alpha * acc_sc[...] + jnp.einsum(
        'hqk,hkd->hqd', p.astype(mm_dtype), vh,
        preferred_element_type=jnp.float32)
    m_sc[...] = m_new

    @pl.when(ki == pl.num_programs(2) - 1)
    def _finalize():
        inv_l = 1.0 / l_sc[...]                                 # exact, tiny
        acc = acc_sc[...] * inv_l                               # (H, tq, D)
        # Per-head output projection + head-sum (== concat(heads) @ Wo.T);
        # the lane-merge reshape needed for a single (tq,E)x(E,E) matmul is
        # not reliably lowerable at small head_dim, so keep the batched form.
        out_he = jnp.einsum('hqd,hde->hqe', acc.astype(mm_dtype), wo_ref[...],
                            preferred_element_type=jnp.float32)  # (H, tq, E)
        z = jnp.sum(out_he, axis=0) + res_ref[0].astype(jnp.float32)
        mu = jnp.mean(z, axis=-1, keepdims=True)
        c = z - mu
        var = jnp.mean(c * c, axis=-1, keepdims=True)
        o_ref[0] = (c * jax.lax.rsqrt(var + eps) * g_ref[...] + b_ref[...]
                    ).astype(o_ref.dtype)


def attention_add_layer_norm(q_in, kv_in, key_mask, wq, wk, wv, wo,
                             gamma, beta, *, heads, causal, mm_dtype,
                             eps=_LN_EPS):
    """LayerNorm(SelfAttention(q, kv, kv, mask) + q), matching the PyTorch
    SelfAttention followed by `norm(attention + query)`."""
    self_qkv = kv_in is None
    if self_qkv:
        kv_in = q_in
    N, Lq, E = q_in.shape
    Lk = kv_in.shape[1]
    D = E // heads
    assert D * heads == E, "embed_size must be divisible by heads"
    inv_scale = 1.0 / math.sqrt(float(E))

    # ---- hoisted lane-dense projections (one wide matmul, done once) ------
    if self_qkv:
        w_qkv = jnp.concatenate([(wq * inv_scale).T, wk.T, wv.T],
                                axis=1).astype(mm_dtype)          # (E, 3E)
        proj = matmul_rows(q_in.reshape(N * Lq, E), w_qkv,
                           out_dtype=mm_dtype, mm_dtype=mm_dtype)
        qp2d, kp2d, vp2d = proj[:, :E], proj[:, E:2 * E], proj[:, 2 * E:]
        Lkv = Lq
    else:
        qp2d = matmul_rows(q_in.reshape(N * Lq, E),
                           (wq * inv_scale).T.astype(mm_dtype),
                           out_dtype=mm_dtype, mm_dtype=mm_dtype)
        w_kv = jnp.concatenate([wk.T, wv.T], axis=1).astype(mm_dtype)  # (E,2E)
        kvp = matmul_rows(kv_in.reshape(N * Lk, E), w_kv,
                          out_dtype=mm_dtype, mm_dtype=mm_dtype)
        kp2d, vp2d = kvp[:, :E], kvp[:, E:]
        Lkv = Lk

    # wrapper-side layout plumbing: head-major (N, H, L, D) for the kernel.
    def to_heads(y2d, L):
        return y2d.reshape(N, L, heads, D).transpose(0, 2, 1, 3)

    qp = to_heads(qp2d, Lq)
    kp = to_heads(kp2d, Lkv)
    vp = to_heads(vp2d, Lkv)

    if key_mask is None:
        msk = jnp.ones((N, 1, Lkv), jnp.float32)
    else:
        msk = key_mask.reshape(N, 1, Lkv).astype(jnp.float32)

    # cap heads*tq*tk*4 at ~1 MiB of live score/exp value.
    tq = _pick_tile(Lq, (256, 128))
    tk = _pick_tile(Lkv, (128, 256))
    grid = (N, Lq // tq, Lkv // tk)

    kernel = functools.partial(_flash_ln_kernel, causal=causal,
                               masked_logit=-1e20 * inv_scale,
                               eps=eps, mm_dtype=mm_dtype)

    return pl.pallas_call(
        kernel,
        out_shape=jax.ShapeDtypeStruct((N, Lq, E), q_in.dtype),
        grid_spec=pltpu.PrefetchScalarGridSpec(
            num_scalar_prefetch=0,
            grid=grid,
            in_specs=[
                pl.BlockSpec((1, heads, tq, D), lambda n, qi, ki: (n, 0, qi, 0)),
                pl.BlockSpec((1, heads, tk, D), lambda n, qi, ki: (n, 0, ki, 0)),
                pl.BlockSpec((1, heads, tk, D), lambda n, qi, ki: (n, 0, ki, 0)),
                pl.BlockSpec((1, 1, tk), lambda n, qi, ki: (n, 0, ki)),
                pl.BlockSpec((1, tq, E), lambda n, qi, ki: (n, qi, 0)),   # resid
                pl.BlockSpec((heads, D, E), lambda n, qi, ki: (0, 0, 0)),  # Wo
                pl.BlockSpec((1, E), lambda n, qi, ki: (0, 0)),
                pl.BlockSpec((1, E), lambda n, qi, ki: (0, 0)),
            ],
            out_specs=pl.BlockSpec((1, tq, E), lambda n, qi, ki: (n, qi, 0)),
            scratch_shapes=[
                pltpu.VMEM((heads, tq, 1), jnp.float32),       # running max
                pltpu.VMEM((heads, tq, 1), jnp.float32),       # running sum
                pltpu.VMEM((heads, tq, D), jnp.float32),       # accumulator
            ],
        ),
        compiler_params=pltpu.CompilerParams(
            dimension_semantics=("parallel", "parallel", "arbitrary"),
            vmem_limit_bytes=_VMEM_LIMIT),
    )(qp, kp, vp, msk, q_in,
      wo.T.reshape(heads, D, E).astype(mm_dtype),
      gamma.reshape(1, E).astype(jnp.float32),
      beta.reshape(1, E).astype(jnp.float32))


# ---------------------------------------------------------------------------
# Transformer forward (Pallas-backed).  Dropout == identity (inference).
# ---------------------------------------------------------------------------
def transformer_block_fwd(p, q_in, kv_in, key_mask, *, heads, mm_dtype):
    x = attention_add_layer_norm(q_in, kv_in, key_mask,
                                 p['wq'], p['wk'], p['wv'], p['wo'],
                                 p['ln1_g'], p['ln1_b'],
                                 heads=heads, causal=False, mm_dtype=mm_dtype)
    return ffn_add_layer_norm(x, p['ff_w1'], p['ff_b1'], p['ff_w2'], p['ff_b2'],
                              p['ln2_g'], p['ln2_b'], mm_dtype=mm_dtype)


def transformer_fwd(params, src, trg, *, heads, src_pad_idx,
                    mm_dtype=jnp.bfloat16):
    N, Ls = src.shape
    _, Lt = trg.shape
    src_key_mask = (src != src_pad_idx).astype(jnp.float32)       # (N, Ls)

    # TODO(synk): embedding gathers (word/position lookup) stay in plain JAX;
    # all dense math (attention / LN / FFN / final linear) runs in Pallas.
    pe = params['encoder']
    x = jnp.take(pe['word_emb'], src, axis=0) + pe['pos_emb'][:Ls][None]
    for layer in pe['layers']:
        x = transformer_block_fwd(layer, x, None, src_key_mask,
                                  heads=heads, mm_dtype=mm_dtype)
    enc_out = x

    pd = params['decoder']
    y = jnp.take(pd['word_emb'], trg, axis=0) + pd['pos_emb'][:Lt][None]
    for layer in pd['layers']:
        q = attention_add_layer_norm(y, None, None,
                                     layer['self_wq'], layer['self_wk'],
                                     layer['self_wv'], layer['self_wo'],
                                     layer['ln_g'], layer['ln_b'],
                                     heads=heads, causal=True,
                                     mm_dtype=mm_dtype)
        y = transformer_block_fwd(layer['block'], q, enc_out, src_key_mask,
                                  heads=heads, mm_dtype=mm_dtype)
    return linear(y, pd['fc_w'], pd['fc_b'], mm_dtype=mm_dtype)


# ---------------------------------------------------------------------------
# Pure-JAX reference (exact replica of the PyTorch forward) for verification.
# ---------------------------------------------------------------------------
def _ref_attention(q, k, v, mask, wq, wk, wv, wo, heads):
    N, Lq, E = q.shape
    Lk = k.shape[1]
    D = E // heads
    Q = (q @ wq.T).reshape(N, Lq, heads, D)
    K = (k @ wk.T).reshape(N, Lk, heads, D)
    V = (v @ wv.T).reshape(N, Lk, heads, D)
    att = jnp.einsum('nqhd,nkhd->nhqk', Q, K)
    att = jnp.where(mask == 0, jnp.float32(-1e20), att)
    att = jax.nn.softmax(att / math.sqrt(E), axis=3)
    out = jnp.einsum('nhqk,nkhd->nqhd', att, V).reshape(N, Lq, E)
    return out @ wo.T


def _ref_layer_norm(x, g, b, eps=_LN_EPS):
    mu = jnp.mean(x, axis=-1, keepdims=True)
    var = jnp.mean((x - mu) ** 2, axis=-1, keepdims=True)
    return (x - mu) / jnp.sqrt(var + eps) * g + b


def _ref_block(p, q, k, v, mask, heads):
    att = _ref_attention(q, k, v, mask, p['wq'], p['wk'], p['wv'], p['wo'], heads)
    x = _ref_layer_norm(att + q, p['ln1_g'], p['ln1_b'])
    h = jnp.maximum(x @ p['ff_w1'].T + p['ff_b1'], 0.0)
    ff = h @ p['ff_w2'].T + p['ff_b2']
    return _ref_layer_norm(ff + x, p['ln2_g'], p['ln2_b'])


def _ref_transformer(params, src, trg, heads, src_pad_idx):
    N, Ls = src.shape
    _, Lt = trg.shape
    src_mask = (src != src_pad_idx)[:, None, None, :]
    trg_mask = jnp.broadcast_to(
        jnp.tril(jnp.ones((Lt, Lt), jnp.float32))[None, None], (N, 1, Lt, Lt))
    pe = params['encoder']
    x = jnp.take(pe['word_emb'], src, axis=0) + pe['pos_emb'][:Ls][None]
    for layer in pe['layers']:
        x = _ref_block(layer, x, x, x, src_mask, heads)
    enc_out = x
    pd = params['decoder']
    y = jnp.take(pd['word_emb'], trg, axis=0) + pd['pos_emb'][:Lt][None]
    for layer in pd['layers']:
        sa = _ref_attention(y, y, y, trg_mask, layer['self_wq'],
                            layer['self_wk'], layer['self_wv'],
                            layer['self_wo'], heads)
        q = _ref_layer_norm(sa + y, layer['ln_g'], layer['ln_b'])
        y = _ref_block(layer['block'], q, enc_out, enc_out, src_mask, heads)
    return y @ pd['fc_w'].T + pd['fc_b']


# ---------------------------------------------------------------------------
# Deterministic parameter init + demo run
# ---------------------------------------------------------------------------
def _init_params(key, *, embed_size, heads, forward_expansion,
                 src_vocab, trg_vocab, max_len, n_enc_layers, n_dec_layers):
    E = embed_size
    F = forward_expansion * embed_size
    keys = iter(jax.random.split(key, 512))
    nk = lambda: next(keys)

    def dense(out_dim, in_dim):
        bound = 1.0 / math.sqrt(in_dim)
        return jax.random.uniform(nk(), (out_dim, in_dim), jnp.float32,
                                  -bound, bound)

    def vec(dim, scale=0.1, shift=0.0):
        return shift + scale * jax.random.normal(nk(), (dim,), jnp.float32)

    def block():
        return dict(
            wq=dense(E, E), wk=dense(E, E), wv=dense(E, E), wo=dense(E, E),
            ln1_g=vec(E, 0.1, 1.0), ln1_b=vec(E, 0.1),
            ff_w1=dense(F, E), ff_b1=vec(F, 0.1),
            ff_w2=dense(E, F), ff_b2=vec(E, 0.1),
            ln2_g=vec(E, 0.1, 1.0), ln2_b=vec(E, 0.1),
        )

    def dec_layer():
        return dict(
            self_wq=dense(E, E), self_wk=dense(E, E),
            self_wv=dense(E, E), self_wo=dense(E, E),
            ln_g=vec(E, 0.1, 1.0), ln_b=vec(E, 0.1),
            block=block(),
        )

    encoder = dict(
        word_emb=0.5 * jax.random.normal(nk(), (src_vocab, E), jnp.float32),
        pos_emb=0.5 * jax.random.normal(nk(), (max_len, E), jnp.float32),
        layers=[block() for _ in range(n_enc_layers)],
    )
    decoder = dict(
        word_emb=0.5 * jax.random.normal(nk(), (trg_vocab, E), jnp.float32),
        pos_emb=0.5 * jax.random.normal(nk(), (max_len, E), jnp.float32),
        layers=[dec_layer() for _ in range(n_dec_layers)],
        fc_w=dense(trg_vocab, E), fc_b=vec(trg_vocab, 0.1),
    )
    return dict(encoder=encoder, decoder=decoder)


if __name__ == "__main__":
    EMBED, HEADS, FWD_EXP = 32, 4, 2
    SRC_VOCAB, TRG_VOCAB, MAX_LEN = 50, 50, 16
    N_ENC, N_DEC = 1, 1
    SRC_PAD = 0

    params = _init_params(jax.random.PRNGKey(0), embed_size=EMBED, heads=HEADS,
                          forward_expansion=FWD_EXP, src_vocab=SRC_VOCAB,
                          trg_vocab=TRG_VOCAB, max_len=MAX_LEN,
                          n_enc_layers=N_ENC, n_dec_layers=N_DEC)

    # Deterministic token inputs (pad idx = 0), shapes (2, 9) and (2, 4).
    src = jnp.array([[1, 5, 6, 4, 3, 9, 0, 0, 0],
                     [1, 8, 7, 3, 4, 5, 6, 7, 0]], dtype=jnp.int32)
    trg = jnp.array([[1, 7, 4, 3],
                     [1, 5, 9, 2]], dtype=jnp.int32)

    ref = _ref_transformer(params, src, trg, HEADS, SRC_PAD)

    # f32 matmul path: tight parity check against the pure-JAX reference.
    fwd_f32 = jax.jit(functools.partial(transformer_fwd, heads=HEADS,
                                        src_pad_idx=SRC_PAD,
                                        mm_dtype=jnp.float32))
    out_f32 = jax.block_until_ready(fwd_f32(params, src, trg))
    assert out_f32.shape == (2, 4, TRG_VOCAB), out_f32.shape
    err_f32 = float(jnp.max(jnp.abs(out_f32 - ref)))
    assert jnp.allclose(out_f32, ref, atol=2e-3, rtol=2e-3), (
        f"f32 path mismatch vs reference (max abs err {err_f32})")

    # bf16 matmul path: the performance configuration for v5e/v6e/v7x MXUs
    # (f32 accumulation, f32 softmax/LayerNorm) -- looser tolerance.
    fwd_bf16 = jax.jit(functools.partial(transformer_fwd, heads=HEADS,
                                         src_pad_idx=SRC_PAD,
                                         mm_dtype=jnp.bfloat16))
    out_bf16 = jax.block_until_ready(fwd_bf16(params, src, trg))
    assert out_bf16.shape == (2, 4, TRG_VOCAB), out_bf16.shape
    err_bf16 = float(jnp.max(jnp.abs(out_bf16 - ref)))
    assert err_bf16 < 0.15, f"bf16 path drifted too far (max abs err {err_bf16})"

    print("KERNEL_OK")
</pallas_src>

<mosaic_0001>
module attributes {stable_mosaic.version = 11 : i64} {
  func.func @_matmul_kernel(%arg0: i32, %arg1: i32, %arg2: memref<18x32xf32, #tpu.memory_space<vmem>>, %arg3: memref<32x96xf32, #tpu.memory_space<vmem>>, %arg4: memref<18x96xf32, #tpu.memory_space<vmem>>) attributes {dimension_semantics = [#tpu.dimension_semantics<parallel>, #tpu.dimension_semantics<parallel>], iteration_bounds = array<i64: 1, 1>, scalar_prefetch = 0 : i64, scratch_operands = 0 : i64, tpu.core_type = #tpu.core_type<tc>, window_params = [{transform_indices = @transform_0, window_bounds = array<i64: 18, 32>}, {transform_indices = @transform_1, window_bounds = array<i64: 32, 96>}, {transform_indices = @transform_2, window_bounds = array<i64: 18, 96>}]} {
    %c0 = arith.constant 0 : index
    %c0_0 = arith.constant 0 : index
    %0 = vector.load %arg2[%c0, %c0_0] : memref<18x32xf32, #tpu.memory_space<vmem>>, vector<18x32xf32>
    %c0_1 = arith.constant 0 : index
    %c0_2 = arith.constant 0 : index
    %1 = vector.load %arg3[%c0_1, %c0_2] : memref<32x96xf32, #tpu.memory_space<vmem>>, vector<32x96xf32>
    %cst = arith.constant dense<0.000000e+00> : vector<18x96xf32>
    %2 = tpu.matmul %0, %1, %cst {dimension_numbers = #tpu.dot_dimension_numbers<[1], [0], [0], [1], [0, 0, 1, 1], [], []>} : vector<18x32xf32>, vector<32x96xf32>, vector<18x96xf32> -> vector<18x96xf32>
    %c0_3 = arith.constant 0 : index
    %c0_4 = arith.constant 0 : index
    %3 = vector.load %arg4[%c0_3, %c0_4] : memref<18x96xf32, #tpu.memory_space<vmem>>, vector<18x96xf32>
    tpu.vector_store %arg4[%c0_3, %c0_4], %2 {strides = array<i32>} : memref<18x96xf32, #tpu.memory_space<vmem>>, vector<18x96xf32>,
    return
  }
  func.func @transform_0(%arg0: i32, %arg1: i32) -> (i32, i32) {
    %c0_i32 = arith.constant 0 : i32
    %c0_i32_0 = arith.constant 0 : i32
    return %arg0, %c0_i32 : i32, i32
  }
  func.func @transform_1(%arg0: i32, %arg1: i32) -> (i32, i32) {
    %c0_i32 = arith.constant 0 : i32
    %c0_i32_0 = arith.constant 0 : i32
    return %c0_i32, %arg1 : i32, i32
  }
  func.func @transform_2(%arg0: i32, %arg1: i32) -> (i32, i32) {
    %c0_i32 = arith.constant 0 : i32
    return %arg0, %arg1 : i32, i32
  }
}

module attributes {stable_mosaic.version = 11 : i64} {
  func.func @_flash_ln_kernel(%arg0: i32, %arg1: i32, %arg2: i32, %arg3: memref<1x4x9x8xf32, #tpu.memory_space<vmem>>, %arg4: memref<1x4x9x8xf32, #tpu.memory_space<vmem>>, %arg5: memref<1x4x9x8xf32, #tpu.memory_space<vmem>>, %arg6: memref<1x1x9xf32, #tpu.memory_space<vmem>>, %arg7: memref<1x9x32xf32, #tpu.memory_space<vmem>>, %arg8: memref<4x8x32xf32, #tpu.memory_space<vmem>>, %arg9: memref<1x32xf32, #tpu.memory_space<vmem>>, %arg10: memref<1x32xf32, #tpu.memory_space<vmem>>, %arg11: memref<1x9x32xf32, #tpu.memory_space<vmem>>, %arg12: memref<4x9x1xf32, #tpu.memory_space<vmem>>, %arg13: memref<4x9x1xf32, #tpu.memory_space<vmem>>, %arg14: memref<4x9x8xf32, #tpu.memory_space<vmem>>) attributes {dimension_semantics = [#tpu.dimension_semantics<parallel>, #tpu.dimension_semantics<parallel>, #tpu.dimension_semantics<arbitrary>], iteration_bounds = array<i64: 2, 1, 1>, scalar_prefetch = 0 : i64, scratch_operands = 3 : i64, tpu.core_type = #tpu.core_type<tc>, window_params = [{transform_indices = @transform_0, window_bounds = array<i64: 1, 4, 9, 8>}, {transform_indices = @transform_1, window_bounds = array<i64: 1, 4, 9, 8>}, {transform_indices = @transform_2, window_bounds = array<i64: 1, 4, 9, 8>}, {transform_indices = @transform_3, window_bounds = array<i64: 1, 1, 9>}, {transform_indices = @transform_4, window_bounds = array<i64: 1, 9, 32>}, {pipeline_mode = #tpu.pipeline_mode<synchronous>, transform_indices = @transform_5, window_bounds = array<i64: 4, 8, 32>}, {pipeline_mode = #tpu.pipeline_mode<synchronous>, transform_indices = @transform_6, window_bounds = array<i64: 1, 32>}, {pipeline_mode = #tpu.pipeline_mode<synchronous>, transform_indices = @transform_7, window_bounds = array<i64: 1, 32>}, {transform_indices = @transform_8, window_bounds = array<i64: 1, 9, 32>}]} {
    %c0_i32 = arith.constant 0 : i32
    %0 = arith.cmpi eq, %arg2, %c0_i32 : i32
    %1 = arith.extui %0 : i1 to i32
    %c0_i32_0 = arith.constant 0 : i32
    %2 = arith.cmpi ne, %1, %c0_i32_0 : i32
    scf.if %2 {
      %cst_40 = arith.constant 0xFF800000 : f32
      %44 = vector.broadcast %cst_40 : f32 to vector<4x9x1xf32>
      %c0_41 = arith.constant 0 : index
      %c0_42 = arith.constant 0 : index
      %c0_43 = arith.constant 0 : index
      %45 = vector.load %arg12[%c0_41, %c0_42, %c0_43] : memref<4x9x1xf32, #tpu.memory_space<vmem>>, vector<4x9x1xf32>
      tpu.vector_store %arg12[%c0_41, %c0_42, %c0_43], %44 {strides = array<i32>} : memref<4x9x1xf32, #tpu.memory_space<vmem>>, vector<4x9x1xf32>,
      %cst_44 = arith.constant 0.000000e+00 : f32
      %46 = vector.broadcast %cst_44 : f32 to vector<4x9x1xf32>
      %c0_45 = arith.constant 0 : index
      %c0_46 = arith.constant 0 : index
      %c0_47 = arith.constant 0 : index
      %47 = vector.load %arg13[%c0_45, %c0_46, %c0_47] : memref<4x9x1xf32, #tpu.memory_space<vmem>>, vector<4x9x1xf32>
      tpu.vector_store %arg13[%c0_45, %c0_46, %c0_47], %46 {strides = array<i32>} : memref<4x9x1xf32, #tpu.memory_space<vmem>>, vector<4x9x1xf32>,
      %cst_48 = arith.constant 0.000000e+00 : f32
      %48 = vector.broadcast %cst_48 : f32 to vector<4x9x8xf32>
      %c0_49 = arith.constant 0 : index
      %c0_50 = arith.constant 0 : index
      %c0_51 = arith.constant 0 : index
      %49 = vector.load %arg14[%c0_49, %c0_50, %c0_51] : memref<4x9x8xf32, #tpu.memory_space<vmem>>, vector<4x9x8xf32>
      tpu.vector_store %arg14[%c0_49, %c0_50, %c0_51], %48 {strides = array<i32>} : memref<4x9x8xf32, #tpu.memory_space<vmem>>, vector<4x9x8xf32>,
    } else {
    }
    %c0 = arith.constant 0 : index
    %c0_1 = arith.constant 0 : index
    %c0_2 = arith.constant 0 : index
    %c0_3 = arith.constant 0 : index
    %3 = vector.load %arg3[%c0, %c0_1, %c0_2, %c0_3] : memref<1x4x9x8xf32, #tpu.memory_space<vmem>>, vector<1x4x9x8xf32>
    %4 = vector.shape_cast %3 : vector<1x4x9x8xf32> to vector<4x9x8xf32>
    %c0_4 = arith.constant 0 : index
    %c0_5 = arith.constant 0 : index
    %c0_6 = arith.constant 0 : index
    %c0_7 = arith.constant 0 : index
    %5 = vector.load %arg4[%c0_4, %c0_5, %c0_6, %c0_7] : memref<1x4x9x8xf32, #tpu.memory_space<vmem>>, vector<1x4x9x8xf32>
    %6 = vector.shape_cast %5 : vector<1x4x9x8xf32> to vector<4x9x8xf32>
    %c0_8 = arith.constant 0 : index
    %c0_9 = arith.constant 0 : index
    %c0_10 = arith.constant 0 : index
    %c0_11 = arith.constant 0 : index
    %7 = vector.load %arg5[%c0_8, %c0_9, %c0_10, %c0_11] : memref<1x4x9x8xf32, #tpu.memory_space<vmem>>, vector<1x4x9x8xf32>
    %8 = vector.shape_cast %7 : vector<1x4x9x8xf32> to vector<4x9x8xf32>
    "tpu.trace_start"() <{level = 10 : i32, message = "hqd,hkd->hqk"}> : () -> ()
    %cst = arith.constant dense<0.000000e+00> : vector<4x9x9xf32>
    %9 = tpu.matmul %4, %6, %cst {dimension_numbers = #tpu.dot_dimension_numbers<[2], [2], [1], [1], [0, 0, 0, 1, 1, 1], [0], [0]>} : vector<4x9x8xf32>, vector<4x9x8xf32>, vector<4x9x9xf32> -> vector<4x9x9xf32>
    "tpu.trace_stop"() : () -> ()
    %c0_12 = arith.constant 0 : index
    %c0_13 = arith.constant 0 : index
    %c0_14 = arith.constant 0 : index
    %10 = vector.load %arg6[%c0_12, %c0_13, %c0_14] : memref<1x1x9xf32, #tpu.memory_space<vmem>>, vector<1x1x9xf32>
    %11 = vector.shape_cast %10 : vector<1x1x9xf32> to vector<1x9xf32>
    %12 = vector.shape_cast %11 : vector<1x9xf32> to vector<1x1x9xf32>
    %cst_15 = arith.constant 0.000000e+00 : f32
    %13 = vector.broadcast %cst_15 : f32 to vector<1x1x9xf32>
    %14 = arith.cmpf one, %12, %13 : vector<1x1x9xf32>
    %cst_16 = arith.constant -1.76776698E+19 : f32
    %15 = vector.shape_cast %14 : vector<1x1x9xi1> to vector<1x1x9xi1>
    %16 = vector.broadcast %15 : vector<1x1x9xi1> to vector<4x9x9xi1>
    %17 = vector.broadcast %cst_16 : f32 to vector<4x9x9xf32>
    %18 = arith.select %16, %9, %17 : vector<4x9x9xi1>, vector<4x9x9xf32>
    %c0_17 = arith.constant 0 : index
    %c0_18 = arith.constant 0 : index
    %c0_19 = arith.constant 0 : index
    %19 = vector.load %arg12[%c0_17, %c0_18, %c0_19] : memref<4x9x1xf32, #tpu.memory_space<vmem>>, vector<4x9x1xf32>
    %cst_20 = arith.constant dense<0xFF800000> : vector<4x9xf32>
    %20 = vector.multi_reduction <maximumf>, %18, %cst_20 [2] : vector<4x9x9xf32> to vector<4x9xf32>
    %21 = vector.shape_cast %20 : vector<4x9xf32> to vector<4x9x1xf32>
    %22 = arith.maximumf %19, %21 : vector<4x9x1xf32>
    %23 = arith.subf %19, %22 : vector<4x9x1xf32>
    %24 = math.exp %23 : vector<4x9x1xf32>
    %25 = vector.broadcast %22 : vector<4x9x1xf32> to vector<4x9x9xf32>
    %26 = arith.subf %18, %25 : vector<4x9x9xf32>
    %27 = math.exp %26 : vector<4x9x9xf32>
    %c0_21 = arith.constant 0 : index
    %c0_22 = arith.constant 0 : index
    %c0_23 = arith.constant 0 : index
    %28 = vector.load %arg13[%c0_21, %c0_22, %c0_23] : memref<4x9x1xf32, #tpu.memory_space<vmem>>, vector<4x9x1xf32>
    %29 = arith.mulf %24, %28 : vector<4x9x1xf32>
    %cst_24 = arith.constant dense<0.000000e+00> : vector<4x9xf32>
    %30 = vector.multi_reduction <add>, %27, %cst_24 [2] : vector<4x9x9xf32> to vector<4x9xf32>
    %31 = vector.shape_cast %30 : vector<4x9xf32> to vector<4x9x1xf32>
    %32 = arith.addf %29, %31 : vector<4x9x1xf32>
    %c0_25 = arith.constant 0 : index
    %c0_26 = arith.constant 0 : index
    %c0_27 = arith.constant 0 : index
    %33 = vector.load %arg13[%c0_25, %c0_26, %c0_27] : memref<4x9x1xf32, #tpu.memory_space<vmem>>, vector<4x9x1xf32>
    tpu.vector_store %arg13[%c0_25, %c0_26, %c0_27], %32 {strides = array<i32>} : memref<4x9x1xf32, #tpu.memory_space<vmem>>, vector<4x9x1xf32>,
    %c0_28 = arith.constant 0 : index
    %c0_29 = arith.constant 0 : index
    %c0_30 = arith.constant 0 : index
    %34 = vector.load %arg14[%c0_28, %c0_29, %c0_30] : memref<4x9x8xf32, #tpu.memory_space<vmem>>, vector<4x9x8xf32>
    %35 = vector.broadcast %24 : vector<4x9x1xf32> to vector<4x9x8xf32>
    %36 = arith.mulf %35, %34 : vector<4x9x8xf32>
    "tpu.trace_start"() <{level = 10 : i32, message = "hqk,hkd->hqd"}> : () -> ()
    %cst_31 = arith.constant dense<0.000000e+00> : vector<4x9x8xf32>
    %37 = tpu.matmul %27, %8, %cst_31 {dimension_numbers = #tpu.dot_dimension_numbers<[2], [1], [1], [2], [0, 0, 0, 1, 1, 2], [0], [0]>} : vector<4x9x9xf32>, vector<4x9x8xf32>, vector<4x9x8xf32> -> vector<4x9x8xf32>
    "tpu.trace_stop"() : () -> ()
    %38 = arith.addf %36, %37 : vector<4x9x8xf32>
    %c0_32 = arith.constant 0 : index
    %c0_33 = arith.constant 0 : index
    %c0_34 = arith.constant 0 : index
    %39 = vector.load %arg14[%c0_32, %c0_33, %c0_34] : memref<4x9x8xf32, #tpu.memory_space<vmem>>, vector<4x9x8xf32>
    tpu.vector_store %arg14[%c0_32, %c0_33, %c0_34], %38 {strides = array<i32>} : memref<4x9x8xf32, #tpu.memory_space<vmem>>, vector<4x9x8xf32>,
    %c0_35 = arith.constant 0 : index
    %c0_36 = arith.constant 0 : index
    %c0_37 = arith.constant 0 : index
    %40 = vector.load %arg12[%c0_35, %c0_36, %c0_37] : memref<4x9x1xf32, #tpu.memory_space<vmem>>, vector<4x9x1xf32>
    tpu.vector_store %arg12[%c0_35, %c0_36, %c0_37], %22 {strides = array<i32>} : memref<4x9x1xf32, #tpu.memory_space<vmem>>, vector<4x9x1xf32>,
    %c0_i32_38 = arith.constant 0 : i32
    %41 = arith.cmpi eq, %arg2, %c0_i32_38 : i32
    %42 = arith.extui %41 : i1 to i32
    %c0_i32_39 = arith.constant 0 : i32
    %43 = arith.cmpi ne, %42, %c0_i32_39 : i32
    scf.if %43 {
      %c0_40 = arith.constant 0 : index
      %c0_41 = arith.constant 0 : index
      %c0_42 = arith.constant 0 : index
      %44 = vector.load %arg13[%c0_40, %c0_41, %c0_42] : memref<4x9x1xf32, #tpu.memory_space<vmem>>, vector<4x9x1xf32>
      %cst_43 = arith.constant 1.000000e+00 : f32
      %45 = vector.broadcast %cst_43 : f32 to vector<4x9x1xf32>
      %46 = arith.divf %45, %44 : vector<4x9x1xf32>
      %c0_44 = arith.constant 0 : index
      %c0_45 = arith.constant 0 : index
      %c0_46 = arith.constant 0 : index
      %47 = vector.load %arg14[%c0_44, %c0_45, %c0_46] : memref<4x9x8xf32, #tpu.memory_space<vmem>>, vector<4x9x8xf32>
      %48 = vector.broadcast %46 : vector<4x9x1xf32> to vector<4x9x8xf32>
      %49 = arith.mulf %47, %48 : vector<4x9x8xf32>
      %c0_47 = arith.constant 0 : index
      %c0_48 = arith.constant 0 : index
      %c0_49 = arith.constant 0 : index
      %50 = vector.load %arg8[%c0_47, %c0_48, %c0_49] : memref<4x8x32xf32, #tpu.memory_space<vmem>>, vector<4x8x32xf32>
      "tpu.trace_start"() <{level = 10 : i32, message = "hqd,hde->hqe"}> : () -> ()
      %cst_50 = arith.constant dense<0.000000e+00> : vector<4x9x32xf32>
      %51 = tpu.matmul %49, %50, %cst_50 {dimension_numbers = #tpu.dot_dimension_numbers<[2], [1], [1], [2], [0, 0, 0, 1, 1, 2], [0], [0]>} : vector<4x9x8xf32>, vector<4x8x32xf32>, vector<4x9x32xf32> -> vector<4x9x32xf32>
      "tpu.trace_stop"() : () -> ()
      %cst_51 = arith.constant dense<0.000000e+00> : vector<9x32xf32>
      %52 = vector.multi_reduction <add>, %51, %cst_51 [0] : vector<4x9x32xf32> to vector<9x32xf32>
      %c0_52 = arith.constant 0 : index
      %c0_53 = arith.constant 0 : index
      %c0_54 = arith.constant 0 : index
      %53 = vector.load %arg7[%c0_52, %c0_53, %c0_54] : memref<1x9x32xf32, #tpu.memory_space<vmem>>, vector<1x9x32xf32>
      %54 = vector.shape_cast %53 : vector<1x9x32xf32> to vector<9x32xf32>
      %55 = arith.addf %52, %54 : vector<9x32xf32>
      %cst_55 = arith.constant dense<0.000000e+00> : vector<9xf32>
      %56 = vector.multi_reduction <add>, %55, %cst_55 [1] : vector<9x32xf32> to vector<9xf32>
      %57 = vector.shape_cast %56 : vector<9xf32> to vector<9x1xf32>
      %cst_56 = arith.constant 3.200000e+01 : f32
      %58 = vector.broadcast %cst_56 : f32 to vector<9x1xf32>
      %59 = arith.divf %57, %58 : vector<9x1xf32>
      %60 = vector.broadcast %59 : vector<9x1xf32> to vector<9x32xf32>
      %61 = arith.subf %55, %60 : vector<9x32xf32>
      %62 = arith.mulf %61, %61 : vector<9x32xf32>
      %cst_57 = arith.constant dense<0.000000e+00> : vector<9xf32>
      %63 = vector.multi_reduction <add>, %62, %cst_57 [1] : vector<9x32xf32> to vector<9xf32>
      %64 = vector.shape_cast %63 : vector<9xf32> to vector<9x1xf32>
      %cst_58 = arith.constant 3.200000e+01 : f32
      %65 = vector.broadcast %cst_58 : f32 to vector<9x1xf32>
      %66 = arith.divf %64, %65 : vector<9x1xf32>
      %cst_59 = arith.constant 9.99999974E-6 : f32
      %67 = vector.broadcast %cst_59 : f32 to vector<9x1xf32>
      %68 = arith.addf %66, %67 : vector<9x1xf32>
      %69 = math.rsqrt %68 : vector<9x1xf32>
      %70 = vector.broadcast %69 : vector<9x1xf32> to vector<9x32xf32>
      %71 = arith.mulf %61, %70 : vector<9x32xf32>
      %c0_60 = arith.constant 0 : index
      %c0_61 = arith.constant 0 : index
      %72 = vector.load %arg9[%c0_60, %c0_61] : memref<1x32xf32, #tpu.memory_space<vmem>>, vector<1x32xf32>
      %73 = vector.broadcast %72 : vector<1x32xf32> to vector<9x32xf32>
      %74 = arith.mulf %71, %73 : vector<9x32xf32>
      %c0_62 = arith.constant 0 : index
      %c0_63 = arith.constant 0 : index
      %75 = vector.load %arg10[%c0_62, %c0_63] : memref<1x32xf32, #tpu.memory_space<vmem>>, vector<1x32xf32>
      %76 = vector.broadcast %75 : vector<1x32xf32> to vector<9x32xf32>
      %77 = arith.addf %74, %76 : vector<9x32xf32>
      %c0_64 = arith.constant 0 : index
      %c0_65 = arith.constant 0 : index
      %c0_66 = arith.constant 0 : index
      %78 = vector.load %arg11[%c0_64, %c0_65, %c0_66] : memref<1x9x32xf32, #tpu.memory_space<vmem>>, vector<1x9x32xf32>
      %79 = vector.shape_cast %78 : vector<1x9x32xf32> to vector<9x32xf32>
      %80 = vector.shape_cast %77 : vector<9x32xf32> to vector<1x9x32xf32>
      tpu.vector_store %arg11[%c0_64, %c0_65, %c0_66], %80 {strides = array<i32>} : memref<1x9x32xf32, #tpu.memory_space<vmem>>, vector<1x9x32xf32>,
    } else {
    }
    return
  }
  func.func @transform_0(%arg0: i32, %arg1: i32, %arg2: i32) -> (i32, i32, i32, i32) {
    %c0_i32 = arith.constant 0 : i32
    %c0_i32_0 = arith.constant 0 : i32
    %c0_i32_1 = arith.constant 0 : i32
    return %arg0, %c0_i32, %arg1, %c0_i32_0 : i32, i32, i32, i32
  }
  func.func @transform_1(%arg0: i32, %arg1: i32, %arg2: i32) -> (i32, i32, i32, i32) {
    %c0_i32 = arith.constant 0 : i32
    %c0_i32_0 = arith.constant 0 : i32
    %c0_i32_1 = arith.constant 0 : i32
    return %arg0, %c0_i32, %arg2, %c0_i32_0 : i32, i32, i32, i32
  }
  func.func @transform_2(%arg0: i32, %arg1: i32, %arg2: i32) -> (i32, i32, i32, i32) {
    %c0_i32 = arith.constant 0 : i32
    %c0_i32_0 = arith.constant 0 : i32
    %c0_i32_1 = arith.constant 0 : i32
    return %arg0, %c0_i32, %arg2, %c0_i32_0 : i32, i32, i32, i32
  }
  func.func @transform_3(%arg0: i32, %arg1: i32, %arg2: i32) -> (i32, i32, i32) {
    %c0_i32 = arith.constant 0 : i32
    %c0_i32_0 = arith.constant 0 : i32
    return %arg0, %c0_i32, %arg2 : i32, i32, i32
  }
  func.func @transform_4(%arg0: i32, %arg1: i32, %arg2: i32) -> (i32, i32, i32) {
    %c0_i32 = arith.constant 0 : i32
    %c0_i32_0 = arith.constant 0 : i32
    return %arg0, %arg1, %c0_i32 : i32, i32, i32
  }
  func.func @transform_5(%arg0: i32, %arg1: i32, %arg2: i32) -> (i32, i32, i32) {
    %c0_i32 = arith.constant 0 : i32
    %c0_i32_0 = arith.constant 0 : i32
    %c0_i32_1 = arith.constant 0 : i32
    %c0_i32_2 = arith.constant 0 : i32
    return %c0_i32, %c0_i32_0, %c0_i32_1 : i32, i32, i32
  }
  func.func @transform_6(%arg0: i32, %arg1: i32, %arg2: i32) -> (i32, i32) {
    %c0_i32 = arith.constant 0 : i32
    %c0_i32_0 = arith.constant 0 : i32
    %c0_i32_1 = arith.constant 0 : i32
    return %c0_i32, %c0_i32_0 : i32, i32
  }
  func.func @transform_7(%arg0: i32, %arg1: i32, %arg2: i32) -> (i32, i32) {
    %c0_i32 = arith.constant 0 : i32
    %c0_i32_0 = arith.constant 0 : i32
    %c0_i32_1 = arith.constant 0 : i32
    return %c0_i32, %c0_i32_0 : i32, i32
  }
  func.func @transform_8(%arg0: i32, %arg1: i32, %arg2: i32) -> (i32, i32, i32) {
    %c0_i32 = arith.constant 0 : i32
    %c0_i32_0 = arith.constant 0 : i32
    return %arg0, %arg1, %c0_i32 : i32, i32, i32
  }
}

module attributes {stable_mosaic.version = 11 : i64} {
  func.func @_ffn_ln_kernel(%arg0: i32, %arg1: memref<18x32xf32, #tpu.memory_space<vmem>>, %arg2: memref<32x64xf32, #tpu.memory_space<vmem>>, %arg3: memref<1x64xf32, #tpu.memory_space<vmem>>, %arg4: memref<64x32xf32, #tpu.memory_space<vmem>>, %arg5: memref<1x32xf32, #tpu.memory_space<vmem>>, %arg6: memref<1x32xf32, #tpu.memory_space<vmem>>, %arg7: memref<1x32xf32, #tpu.memory_space<vmem>>, %arg8: memref<18x32xf32, #tpu.memory_space<vmem>>) attributes {dimension_semantics = [#tpu.dimension_semantics<parallel>], iteration_bounds = array<i64: 1>, scalar_prefetch = 0 : i64, scratch_operands = 0 : i64, tpu.core_type = #tpu.core_type<tc>, window_params = [{transform_indices = @transform_0, window_bounds = array<i64: 18, 32>}, {pipeline_mode = #tpu.pipeline_mode<synchronous>, transform_indices = @transform_1, window_bounds = array<i64: 32, 64>}, {pipeline_mode = #tpu.pipeline_mode<synchronous>, transform_indices = @transform_2, window_bounds = array<i64: 1, 64>}, {pipeline_mode = #tpu.pipeline_mode<synchronous>, transform_indices = @transform_3, window_bounds = array<i64: 64, 32>}, {pipeline_mode = #tpu.pipeline_mode<synchronous>, transform_indices = @transform_4, window_bounds = array<i64: 1, 32>}, {pipeline_mode = #tpu.pipeline_mode<synchronous>, transform_indices = @transform_5, window_bounds = array<i64: 1, 32>}, {pipeline_mode = #tpu.pipeline_mode<synchronous>, transform_indices = @transform_6, window_bounds = array<i64: 1, 32>}, {transform_indices = @transform_7, window_bounds = array<i64: 18, 32>}]} {
    %c0 = arith.constant 0 : index
    %c0_0 = arith.constant 0 : index
    %0 = vector.load %arg1[%c0, %c0_0] : memref<18x32xf32, #tpu.memory_space<vmem>>, vector<18x32xf32>
    %c0_1 = arith.constant 0 : index
    %c0_2 = arith.constant 0 : index
    %1 = vector.load %arg2[%c0_1, %c0_2] : memref<32x64xf32, #tpu.memory_space<vmem>>, vector<32x64xf32>
    %cst = arith.constant dense<0.000000e+00> : vector<18x64xf32>
    %2 = tpu.matmul %0, %1, %cst {dimension_numbers = #tpu.dot_dimension_numbers<[1], [0], [0], [1], [0, 0, 1, 1], [], []>} : vector<18x32xf32>, vector<32x64xf32>, vector<18x64xf32> -> vector<18x64xf32>
    %c0_3 = arith.constant 0 : index
    %c0_4 = arith.constant 0 : index
    %3 = vector.load %arg3[%c0_3, %c0_4] : memref<1x64xf32, #tpu.memory_space<vmem>>, vector<1x64xf32>
    %4 = vector.broadcast %3 : vector<1x64xf32> to vector<18x64xf32>
    %5 = arith.addf %2, %4 : vector<18x64xf32>
    %cst_5 = arith.constant 0.000000e+00 : f32
    %6 = vector.broadcast %cst_5 : f32 to vector<18x64xf32>
    %7 = arith.maximumf %5, %6 : vector<18x64xf32>
    %c0_6 = arith.constant 0 : index
    %c0_7 = arith.constant 0 : index
    %8 = vector.load %arg4[%c0_6, %c0_7] : memref<64x32xf32, #tpu.memory_space<vmem>>, vector<64x32xf32>
    %cst_8 = arith.constant dense<0.000000e+00> : vector<18x32xf32>
    %9 = tpu.matmul %7, %8, %cst_8 {dimension_numbers = #tpu.dot_dimension_numbers<[1], [0], [0], [1], [0, 0, 1, 1], [], []>} : vector<18x64xf32>, vector<64x32xf32>, vector<18x32xf32> -> vector<18x32xf32>
    %c0_9 = arith.constant 0 : index
    %c0_10 = arith.constant 0 : index
    %10 = vector.load %arg5[%c0_9, %c0_10] : memref<1x32xf32, #tpu.memory_space<vmem>>, vector<1x32xf32>
    %11 = vector.broadcast %10 : vector<1x32xf32> to vector<18x32xf32>
    %12 = arith.addf %9, %11 : vector<18x32xf32>
    %13 = arith.addf %12, %0 : vector<18x32xf32>
    %cst_11 = arith.constant dense<0.000000e+00> : vector<18xf32>
    %14 = vector.multi_reduction <add>, %13, %cst_11 [1] : vector<18x32xf32> to vector<18xf32>
    %15 = vector.shape_cast %14 : vector<18xf32> to vector<18x1xf32>
    %cst_12 = arith.constant 3.200000e+01 : f32
    %16 = vector.broadcast %cst_12 : f32 to vector<18x1xf32>
    %17 = arith.divf %15, %16 : vector<18x1xf32>
    %18 = vector.broadcast %17 : vector<18x1xf32> to vector<18x32xf32>
    %19 = arith.subf %13, %18 : vector<18x32xf32>
    %20 = arith.mulf %19, %19 : vector<18x32xf32>
    %cst_13 = arith.constant dense<0.000000e+00> : vector<18xf32>
    %21 = vector.multi_reduction <add>, %20, %cst_13 [1] : vector<18x32xf32> to vector<18xf32>
    %22 = vector.shape_cast %21 : vector<18xf32> to vector<18x1xf32>
    %cst_14 = arith.constant 3.200000e+01 : f32
    %23 = vector.broadcast %cst_14 : f32 to vector<18x1xf32>
    %24 = arith.divf %22, %23 : vector<18x1xf32>
    %cst_15 = arith.constant 9.99999974E-6 : f32
    %25 = vector.broadcast %cst_15 : f32 to vector<18x1xf32>
    %26 = arith.addf %24, %25 : vector<18x1xf32>
    %27 = math.rsqrt %26 : vector<18x1xf32>
    %28 = vector.broadcast %27 : vector<18x1xf32> to vector<18x32xf32>
    %29 = arith.mulf %19, %28 : vector<18x32xf32>
    %c0_16 = arith.constant 0 : index
    %c0_17 = arith.constant 0 : index
    %30 = vector.load %arg6[%c0_16, %c0_17] : memref<1x32xf32, #tpu.memory_space<vmem>>, vector<1x32xf32>
    %31 = vector.broadcast %30 : vector<1x32xf32> to vector<18x32xf32>
    %32 = arith.mulf %29, %31 : vector<18x32xf32>
    %c0_18 = arith.constant 0 : index
    %c0_19 = arith.constant 0 : index
    %33 = vector.load %arg7[%c0_18, %c0_19] : memref<1x32xf32, #tpu.memory_space<vmem>>, vector<1x32xf32>
    %34 = vector.broadcast %33 : vector<1x32xf32> to vector<18x32xf32>
    %35 = arith.addf %32, %34 : vector<18x32xf32>
    %c0_20 = arith.constant 0 : index
    %c0_21 = arith.constant 0 : index
    %36 = vector.load %arg8[%c0_20, %c0_21] : memref<18x32xf32, #tpu.memory_space<vmem>>, vector<18x32xf32>
    tpu.vector_store %arg8[%c0_20, %c0_21], %35 {strides = array<i32>} : memref<18x32xf32, #tpu.memory_space<vmem>>, vector<18x32xf32>,
    return
  }
  func.func @transform_0(%arg0: i32) -> (i32, i32) {
    %c0_i32 = arith.constant 0 : i32
    %c0_i32_0 = arith.constant 0 : i32
    return %arg0, %c0_i32 : i32, i32
  }
  func.func @transform_1(%arg0: i32) -> (i32, i32) {
    %c0_i32 = arith.constant 0 : i32
    %c0_i32_0 = arith.constant 0 : i32
    %c0_i32_1 = arith.constant 0 : i32
    return %c0_i32, %c0_i32_0 : i32, i32
  }
  func.func @transform_2(%arg0: i32) -> (i32, i32) {
    %c0_i32 = arith.constant 0 : i32
    %c0_i32_0 = arith.constant 0 : i32
    %c0_i32_1 = arith.constant 0 : i32
    return %c0_i32, %c0_i32_0 : i32, i32
  }
  func.func @transform_3(%arg0: i32) -> (i32, i32) {
    %c0_i32 = arith.constant 0 : i32
    %c0_i32_0 = arith.constant 0 : i32
    %c0_i32_1 = arith.constant 0 : i32
    return %c0_i32, %c0_i32_0 : i32, i32
  }
  func.func @transform_4(%arg0: i32) -> (i32, i32) {
    %c0_i32 = arith.constant 0 : i32
    %c0_i32_0 = arith.constant 0 : i32
    %c0_i32_1 = arith.constant 0 : i32
    return %c0_i32, %c0_i32_0 : i32, i32
  }
  func.func @transform_5(%arg0: i32) -> (i32, i32) {
    %c0_i32 = arith.constant 0 : i32
    %c0_i32_0 = arith.constant 0 : i32
    %c0_i32_1 = arith.constant 0 : i32
    return %c0_i32, %c0_i32_0 : i32, i32
  }
  func.func @transform_6(%arg0: i32) -> (i32, i32) {
    %c0_i32 = arith.constant 0 : i32
    %c0_i32_0 = arith.constant 0 : i32
    %c0_i32_1 = arith.constant 0 : i32
    return %c0_i32, %c0_i32_0 : i32, i32
  }
  func.func @transform_7(%arg0: i32) -> (i32, i32) {
    %c0_i32 = arith.constant 0 : i32
    %c0_i32_0 = arith.constant 0 : i32
    return %arg0, %c0_i32 : i32, i32
  }
}

module attributes {stable_mosaic.version = 11 : i64} {
  func.func @_matmul_kernel(%arg0: i32, %arg1: i32, %arg2: memref<18x32xf32, #tpu.memory_space<vmem>>, %arg3: memref<32x64xf32, #tpu.memory_space<vmem>>, %arg4: memref<18x64xf32, #tpu.memory_space<vmem>>) attributes {dimension_semantics = [#tpu.dimension_semantics<parallel>, #tpu.dimension_semantics<parallel>], iteration_bounds = array<i64: 1, 1>, scalar_prefetch = 0 : i64, scratch_operands = 0 : i64, tpu.core_type = #tpu.core_type<tc>, window_params = [{transform_indices = @transform_0, window_bounds = array<i64: 18, 32>}, {transform_indices = @transform_1, window_bounds = array<i64: 32, 64>}, {transform_indices = @transform_2, window_bounds = array<i64: 18, 64>}]} {
    %c0 = arith.constant 0 : index
    %c0_0 = arith.constant 0 : index
    %0 = vector.load %arg2[%c0, %c0_0] : memref<18x32xf32, #tpu.memory_space<vmem>>, vector<18x32xf32>
    %c0_1 = arith.constant 0 : index
    %c0_2 = arith.constant 0 : index
    %1 = vector.load %arg3[%c0_1, %c0_2] : memref<32x64xf32, #tpu.memory_space<vmem>>, vector<32x64xf32>
    %cst = arith.constant dense<0.000000e+00> : vector<18x64xf32>
    %2 = tpu.matmul %0, %1, %cst {dimension_numbers = #tpu.dot_dimension_numbers<[1], [0], [0], [1], [0, 0, 1, 1], [], []>} : vector<18x32xf32>, vector<32x64xf32>, vector<18x64xf32> -> vector<18x64xf32>
    %c0_3 = arith.constant 0 : index
    %c0_4 = arith.constant 0 : index
    %3 = vector.load %arg4[%c0_3, %c0_4] : memref<18x64xf32, #tpu.memory_space<vmem>>, vector<18x64xf32>
    tpu.vector_store %arg4[%c0_3, %c0_4], %2 {strides = array<i32>} : memref<18x64xf32, #tpu.memory_space<vmem>>, vector<18x64xf32>,
    return
  }
  func.func @transform_0(%arg0: i32, %arg1: i32) -> (i32, i32) {
    %c0_i32 = arith.constant 0 : i32
    %c0_i32_0 = arith.constant 0 : i32
    return %arg0, %c0_i32 : i32, i32
  }
  func.func @transform_1(%arg0: i32, %arg1: i32) -> (i32, i32) {
    %c0_i32 = arith.constant 0 : i32
    %c0_i32_0 = arith.constant 0 : i32
    return %c0_i32, %arg1 : i32, i32
  }
  func.func @transform_2(%arg0: i32, %arg1: i32) -> (i32, i32) {
    %c0_i32 = arith.constant 0 : i32
    return %arg0, %arg1 : i32, i32
  }
}

module attributes {stable_mosaic.version = 11 : i64} {
  func.func @_matmul_kernel(%arg0: i32, %arg1: i32, %arg2: memref<8x32xf32, #tpu.memory_space<vmem>>, %arg3: memref<32x96xf32, #tpu.memory_space<vmem>>, %arg4: memref<8x96xf32, #tpu.memory_space<vmem>>) attributes {dimension_semantics = [#tpu.dimension_semantics<parallel>, #tpu.dimension_semantics<parallel>], iteration_bounds = array<i64: 1, 1>, scalar_prefetch = 0 : i64, scratch_operands = 0 : i64, tpu.core_type = #tpu.core_type<tc>, window_params = [{transform_indices = @transform_0, window_bounds = array<i64: 8, 32>}, {transform_indices = @transform_1, window_bounds = array<i64: 32, 96>}, {transform_indices = @transform_2, window_bounds = array<i64: 8, 96>}]} {
    %c0 = arith.constant 0 : index
    %c0_0 = arith.constant 0 : index
    %0 = vector.load %arg2[%c0, %c0_0] : memref<8x32xf32, #tpu.memory_space<vmem>>, vector<8x32xf32>
    %c0_1 = arith.constant 0 : index
    %c0_2 = arith.constant 0 : index
    %1 = vector.load %arg3[%c0_1, %c0_2] : memref<32x96xf32, #tpu.memory_space<vmem>>, vector<32x96xf32>
    %cst = arith.constant dense<0.000000e+00> : vector<8x96xf32>
    %2 = tpu.matmul %0, %1, %cst {dimension_numbers = #tpu.dot_dimension_numbers<[1], [0], [0], [1], [0, 0, 1, 1], [], []>} : vector<8x32xf32>, vector<32x96xf32>, vector<8x96xf32> -> vector<8x96xf32>
    %c0_3 = arith.constant 0 : index
    %c0_4 = arith.constant 0 : index
    %3 = vector.load %arg4[%c0_3, %c0_4] : memref<8x96xf32, #tpu.memory_space<vmem>>, vector<8x96xf32>
    tpu.vector_store %arg4[%c0_3, %c0_4], %2 {strides = array<i32>} : memref<8x96xf32, #tpu.memory_space<vmem>>, vector<8x96xf32>,
    return
  }
  func.func @transform_0(%arg0: i32, %arg1: i32) -> (i32, i32) {
    %c0_i32 = arith.constant 0 : i32
    %c0_i32_0 = arith.constant 0 : i32
    return %arg0, %c0_i32 : i32, i32
  }
  func.func @transform_1(%arg0: i32, %arg1: i32) -> (i32, i32) {
    %c0_i32 = arith.constant 0 : i32
    %c0_i32_0 = arith.constant 0 : i32
    return %c0_i32, %arg1 : i32, i32
  }
  func.func @transform_2(%arg0: i32, %arg1: i32) -> (i32, i32) {
    %c0_i32 = arith.constant 0 : i32
    return %arg0, %arg1 : i32, i32
  }
}

module attributes {stable_mosaic.version = 11 : i64} {
  func.func @_matmul_kernel(%arg0: i32, %arg1: i32, %arg2: memref<8x32xf32, #tpu.memory_space<vmem>>, %arg3: memref<32x32xf32, #tpu.memory_space<vmem>>, %arg4: memref<8x32xf32, #tpu.memory_space<vmem>>) attributes {dimension_semantics = [#tpu.dimension_semantics<parallel>, #tpu.dimension_semantics<parallel>], iteration_bounds = array<i64: 1, 1>, scalar_prefetch = 0 : i64, scratch_operands = 0 : i64, tpu.core_type = #tpu.core_type<tc>, window_params = [{transform_indices = @transform_0, window_bounds = array<i64: 8, 32>}, {transform_indices = @transform_1, window_bounds = array<i64: 32, 32>}, {transform_indices = @transform_2, window_bounds = array<i64: 8, 32>}]} {
    %c0 = arith.constant 0 : index
    %c0_0 = arith.constant 0 : index
    %0 = vector.load %arg2[%c0, %c0_0] : memref<8x32xf32, #tpu.memory_space<vmem>>, vector<8x32xf32>
    %c0_1 = arith.constant 0 : index
    %c0_2 = arith.constant 0 : index
    %1 = vector.load %arg3[%c0_1, %c0_2] : memref<32x32xf32, #tpu.memory_space<vmem>>, vector<32x32xf32>
    %cst = arith.constant dense<0.000000e+00> : vector<8x32xf32>
    %2 = tpu.matmul %0, %1, %cst {dimension_numbers = #tpu.dot_dimension_numbers<[1], [0], [0], [1], [0, 0, 1, 1], [], []>} : vector<8x32xf32>, vector<32x32xf32>, vector<8x32xf32> -> vector<8x32xf32>
    %c0_3 = arith.constant 0 : index
    %c0_4 = arith.constant 0 : index
    %3 = vector.load %arg4[%c0_3, %c0_4] : memref<8x32xf32, #tpu.memory_space<vmem>>, vector<8x32xf32>
    tpu.vector_store %arg4[%c0_3, %c0_4], %2 {strides = array<i32>} : memref<8x32xf32, #tpu.memory_space<vmem>>, vector<8x32xf32>,
    return
  }
  func.func @transform_0(%arg0: i32, %arg1: i32) -> (i32, i32) {
    %c0_i32 = arith.constant 0 : i32
    %c0_i32_0 = arith.constant 0 : i32
    return %arg0, %c0_i32 : i32, i32
  }
  func.func @transform_1(%arg0: i32, %arg1: i32) -> (i32, i32) {
    %c0_i32 = arith.constant 0 : i32
    %c0_i32_0 = arith.constant 0 : i32
    return %c0_i32, %arg1 : i32, i32
  }
  func.func @transform_2(%arg0: i32, %arg1: i32) -> (i32, i32) {
    %c0_i32 = arith.constant 0 : i32
    return %arg0, %arg1 : i32, i32
  }
}

module attributes {stable_mosaic.version = 11 : i64} {
  func.func @_flash_ln_kernel(%arg0: i32, %arg1: i32, %arg2: i32, %arg3: memref<1x4x4x8xf32, #tpu.memory_space<vmem>>, %arg4: memref<1x4x4x8xf32, #tpu.memory_space<vmem>>, %arg5: memref<1x4x4x8xf32, #tpu.memory_space<vmem>>, %arg6: memref<1x1x4xf32, #tpu.memory_space<vmem>>, %arg7: memref<1x4x32xf32, #tpu.memory_space<vmem>>, %arg8: memref<4x8x32xf32, #tpu.memory_space<vmem>>, %arg9: memref<1x32xf32, #tpu.memory_space<vmem>>, %arg10: memref<1x32xf32, #tpu.memory_space<vmem>>, %arg11: memref<1x4x32xf32, #tpu.memory_space<vmem>>, %arg12: memref<4x4x1xf32, #tpu.memory_space<vmem>>, %arg13: memref<4x4x1xf32, #tpu.memory_space<vmem>>, %arg14: memref<4x4x8xf32, #tpu.memory_space<vmem>>) attributes {dimension_semantics = [#tpu.dimension_semantics<parallel>, #tpu.dimension_semantics<parallel>, #tpu.dimension_semantics<arbitrary>], iteration_bounds = array<i64: 2, 1, 1>, scalar_prefetch = 0 : i64, scratch_operands = 3 : i64, tpu.core_type = #tpu.core_type<tc>, window_params = [{transform_indices = @transform_0, window_bounds = array<i64: 1, 4, 4, 8>}, {transform_indices = @transform_1, window_bounds = array<i64: 1, 4, 4, 8>}, {transform_indices = @transform_2, window_bounds = array<i64: 1, 4, 4, 8>}, {transform_indices = @transform_3, window_bounds = array<i64: 1, 1, 4>}, {transform_indices = @transform_4, window_bounds = array<i64: 1, 4, 32>}, {pipeline_mode = #tpu.pipeline_mode<synchronous>, transform_indices = @transform_5, window_bounds = array<i64: 4, 8, 32>}, {pipeline_mode = #tpu.pipeline_mode<synchronous>, transform_indices = @transform_6, window_bounds = array<i64: 1, 32>}, {pipeline_mode = #tpu.pipeline_mode<synchronous>, transform_indices = @transform_7, window_bounds = array<i64: 1, 32>}, {transform_indices = @transform_8, window_bounds = array<i64: 1, 4, 32>}]} {
    %c0_i32 = arith.constant 0 : i32
    %0 = arith.cmpi eq, %arg2, %c0_i32 : i32
    %1 = arith.extui %0 : i1 to i32
    %c0_i32_0 = arith.constant 0 : i32
    %2 = arith.cmpi ne, %1, %c0_i32_0 : i32
    scf.if %2 {
      %cst_42 = arith.constant 0xFF800000 : f32
      %58 = vector.broadcast %cst_42 : f32 to vector<4x4x1xf32>
      %c0_43 = arith.constant 0 : index
      %c0_44 = arith.constant 0 : index
      %c0_45 = arith.constant 0 : index
      %59 = vector.load %arg12[%c0_43, %c0_44, %c0_45] : memref<4x4x1xf32, #tpu.memory_space<vmem>>, vector<4x4x1xf32>
      tpu.vector_store %arg12[%c0_43, %c0_44, %c0_45], %58 {strides = array<i32>} : memref<4x4x1xf32, #tpu.memory_space<vmem>>, vector<4x4x1xf32>,
      %cst_46 = arith.constant 0.000000e+00 : f32
      %60 = vector.broadcast %cst_46 : f32 to vector<4x4x1xf32>
      %c0_47 = arith.constant 0 : index
      %c0_48 = arith.constant 0 : index
      %c0_49 = arith.constant 0 : index
      %61 = vector.load %arg13[%c0_47, %c0_48, %c0_49] : memref<4x4x1xf32, #tpu.memory_space<vmem>>, vector<4x4x1xf32>
      tpu.vector_store %arg13[%c0_47, %c0_48, %c0_49], %60 {strides = array<i32>} : memref<4x4x1xf32, #tpu.memory_space<vmem>>, vector<4x4x1xf32>,
      %cst_50 = arith.constant 0.000000e+00 : f32
      %62 = vector.broadcast %cst_50 : f32 to vector<4x4x8xf32>
      %c0_51 = arith.constant 0 : index
      %c0_52 = arith.constant 0 : index
      %c0_53 = arith.constant 0 : index
      %63 = vector.load %arg14[%c0_51, %c0_52, %c0_53] : memref<4x4x8xf32, #tpu.memory_space<vmem>>, vector<4x4x8xf32>
      tpu.vector_store %arg14[%c0_51, %c0_52, %c0_53], %62 {strides = array<i32>} : memref<4x4x8xf32, #tpu.memory_space<vmem>>, vector<4x4x8xf32>,
    } else {
    }
    %c0 = arith.constant 0 : index
    %c0_1 = arith.constant 0 : index
    %c0_2 = arith.constant 0 : index
    %c0_3 = arith.constant 0 : index
    %3 = vector.load %arg3[%c0, %c0_1, %c0_2, %c0_3] : memref<1x4x4x8xf32, #tpu.memory_space<vmem>>, vector<1x4x4x8xf32>
    %4 = vector.shape_cast %3 : vector<1x4x4x8xf32> to vector<4x4x8xf32>
    %c0_4 = arith.constant 0 : index
    %c0_5 = arith.constant 0 : index
    %c0_6 = arith.constant 0 : index
    %c0_7 = arith.constant 0 : index
    %5 = vector.load %arg4[%c0_4, %c0_5, %c0_6, %c0_7] : memref<1x4x4x8xf32, #tpu.memory_space<vmem>>, vector<1x4x4x8xf32>
    %6 = vector.shape_cast %5 : vector<1x4x4x8xf32> to vector<4x4x8xf32>
    %c0_8 = arith.constant 0 : index
    %c0_9 = arith.constant 0 : index
    %c0_10 = arith.constant 0 : index
    %c0_11 = arith.constant 0 : index
    %7 = vector.load %arg5[%c0_8, %c0_9, %c0_10, %c0_11] : memref<1x4x4x8xf32, #tpu.memory_space<vmem>>, vector<1x4x4x8xf32>
    %8 = vector.shape_cast %7 : vector<1x4x4x8xf32> to vector<4x4x8xf32>
    "tpu.trace_start"() <{level = 10 : i32, message = "hqd,hkd->hqk"}> : () -> ()
    %cst = arith.constant dense<0.000000e+00> : vector<4x4x4xf32>
    %9 = tpu.matmul %4, %6, %cst {dimension_numbers = #tpu.dot_dimension_numbers<[2], [2], [1], [1], [0, 0, 0, 1, 1, 1], [0], [0]>} : vector<4x4x8xf32>, vector<4x4x8xf32>, vector<4x4x4xf32> -> vector<4x4x4xf32>
    "tpu.trace_stop"() : () -> ()
    %c0_12 = arith.constant 0 : index
    %c0_13 = arith.constant 0 : index
    %c0_14 = arith.constant 0 : index
    %10 = vector.load %arg6[%c0_12, %c0_13, %c0_14] : memref<1x1x4xf32, #tpu.memory_space<vmem>>, vector<1x1x4xf32>
    %11 = vector.shape_cast %10 : vector<1x1x4xf32> to vector<1x4xf32>
    %12 = vector.shape_cast %11 : vector<1x4xf32> to vector<1x1x4xf32>
    %cst_15 = arith.constant 0.000000e+00 : f32
    %13 = vector.broadcast %cst_15 : f32 to vector<1x1x4xf32>
    %14 = arith.cmpf one, %12, %13 : vector<1x1x4xf32>
    %cst_16 = arith.constant -1.76776698E+19 : f32
    %15 = vector.shape_cast %14 : vector<1x1x4xi1> to vector<1x1x4xi1>
    %16 = vector.broadcast %15 : vector<1x1x4xi1> to vector<4x4x4xi1>
    %17 = vector.broadcast %cst_16 : f32 to vector<4x4x4xf32>
    %18 = arith.select %16, %9, %17 : vector<4x4x4xi1>, vector<4x4x4xf32>
    %c4_i32 = arith.constant 4 : i32
    %19 = arith.muli %arg1, %c4_i32 : i32
    %20 = tpu.iota {dimensions = array<i32: 0>} : vector<4x4xi32>
    %21 = vector.broadcast %19 : i32 to vector<4x4xi32>
    %22 = arith.addi %21, %20 : vector<4x4xi32>
    %c4_i32_17 = arith.constant 4 : i32
    %23 = arith.muli %arg2, %c4_i32_17 : i32
    %24 = tpu.iota {dimensions = array<i32: 1>} : vector<4x4xi32>
    %25 = vector.broadcast %23 : i32 to vector<4x4xi32>
    %26 = arith.addi %25, %24 : vector<4x4xi32>
    %27 = arith.cmpi sge, %22, %26 : vector<4x4xi32>
    %28 = vector.shape_cast %27 : vector<4x4xi1> to vector<1x4x4xi1>
    %cst_18 = arith.constant -1.76776698E+19 : f32
    %29 = vector.shape_cast %28 : vector<1x4x4xi1> to vector<1x4x4xi1>
    %30 = vector.broadcast %29 : vector<1x4x4xi1> to vector<4x4x4xi1>
    %31 = vector.broadcast %cst_18 : f32 to vector<4x4x4xf32>
    %32 = arith.select %30, %18, %31 : vector<4x4x4xi1>, vector<4x4x4xf32>
    %c0_19 = arith.constant 0 : index
    %c0_20 = arith.constant 0 : index
    %c0_21 = arith.constant 0 : index
    %33 = vector.load %arg12[%c0_19, %c0_20, %c0_21] : memref<4x4x1xf32, #tpu.memory_space<vmem>>, vector<4x4x1xf32>
    %cst_22 = arith.constant dense<0xFF800000> : vector<4x4xf32>
    %34 = vector.multi_reduction <maximumf>, %32, %cst_22 [2] : vector<4x4x4xf32> to vector<4x4xf32>
    %35 = vector.shape_cast %34 : vector<4x4xf32> to vector<4x4x1xf32>
    %36 = arith.maximumf %33, %35 : vector<4x4x1xf32>
    %37 = arith.subf %33, %36 : vector<4x4x1xf32>
    %38 = math.exp %37 : vector<4x4x1xf32>
    %39 = vector.broadcast %36 : vector<4x4x1xf32> to vector<4x4x4xf32>
    %40 = arith.subf %32, %39 : vector<4x4x4xf32>
    %41 = math.exp %40 : vector<4x4x4xf32>
    %c0_23 = arith.constant 0 : index
    %c0_24 = arith.constant 0 : index
    %c0_25 = arith.constant 0 : index
    %42 = vector.load %arg13[%c0_23, %c0_24, %c0_25] : memref<4x4x1xf32, #tpu.memory_space<vmem>>, vector<4x4x1xf32>
    %43 = arith.mulf %38, %42 : vector<4x4x1xf32>
    %cst_26 = arith.constant dense<0.000000e+00> : vector<4x4xf32>
    %44 = vector.multi_reduction <add>, %41, %cst_26 [2] : vector<4x4x4xf32> to vector<4x4xf32>
    %45 = vector.shape_cast %44 : vector<4x4xf32> to vector<4x4x1xf32>
    %46 = arith.addf %43, %45 : vector<4x4x1xf32>
    %c0_27 = arith.constant 0 : index
    %c0_28 = arith.constant 0 : index
    %c0_29 = arith.constant 0 : index
    %47 = vector.load %arg13[%c0_27, %c0_28, %c0_29] : memref<4x4x1xf32, #tpu.memory_space<vmem>>, vector<4x4x1xf32>
    tpu.vector_store %arg13[%c0_27, %c0_28, %c0_29], %46 {strides = array<i32>} : memref<4x4x1xf32, #tpu.memory_space<vmem>>, vector<4x4x1xf32>,
    %c0_30 = arith.constant 0 : index
    %c0_31 = arith.constant 0 : index
    %c0_32 = arith.constant 0 : index
    %48 = vector.load %arg14[%c0_30, %c0_31, %c0_32] : memref<4x4x8xf32, #tpu.memory_space<vmem>>, vector<4x4x8xf32>
    %49 = vector.broadcast %38 : vector<4x4x1xf32> to vector<4x4x8xf32>
    %50 = arith.mulf %49, %48 : vector<4x4x8xf32>
    "tpu.trace_start"() <{level = 10 : i32, message = "hqk,hkd->hqd"}> : () -> ()
    %cst_33 = arith.constant dense<0.000000e+00> : vector<4x4x8xf32>
    %51 = tpu.matmul %41, %8, %cst_33 {dimension_numbers = #tpu.dot_dimension_numbers<[2], [1], [1], [2], [0, 0, 0, 1, 1, 2], [0], [0]>} : vector<4x4x4xf32>, vector<4x4x8xf32>, vector<4x4x8xf32> -> vector<4x4x8xf32>
    "tpu.trace_stop"() : () -> ()
    %52 = arith.addf %50, %51 : vector<4x4x8xf32>
    %c0_34 = arith.constant 0 : index
    %c0_35 = arith.constant 0 : index
    %c0_36 = arith.constant 0 : index
    %53 = vector.load %arg14[%c0_34, %c0_35, %c0_36] : memref<4x4x8xf32, #tpu.memory_space<vmem>>, vector<4x4x8xf32>
    tpu.vector_store %arg14[%c0_34, %c0_35, %c0_36], %52 {strides = array<i32>} : memref<4x4x8xf32, #tpu.memory_space<vmem>>, vector<4x4x8xf32>,
    %c0_37 = arith.constant 0 : index
    %c0_38 = arith.constant 0 : index
    %c0_39 = arith.constant 0 : index
    %54 = vector.load %arg12[%c0_37, %c0_38, %c0_39] : memref<4x4x1xf32, #tpu.memory_space<vmem>>, vector<4x4x1xf32>
    tpu.vector_store %arg12[%c0_37, %c0_38, %c0_39], %36 {strides = array<i32>} : memref<4x4x1xf32, #tpu.memory_space<vmem>>, vector<4x4x1xf32>,
    %c0_i32_40 = arith.constant 0 : i32
    %55 = arith.cmpi eq, %arg2, %c0_i32_40 : i32
    %56 = arith.extui %55 : i1 to i32
    %c0_i32_41 = arith.constant 0 : i32
    %57 = arith.cmpi ne, %56, %c0_i32_41 : i32
    scf.if %57 {
      %c0_42 = arith.constant 0 : index
      %c0_43 = arith.constant 0 : index
      %c0_44 = arith.constant 0 : index
      %58 = vector.load %arg13[%c0_42, %c0_43, %c0_44] : memref<4x4x1xf32, #tpu.memory_space<vmem>>, vector<4x4x1xf32>
      %cst_45 = arith.constant 1.000000e+00 : f32
      %59 = vector.broadcast %cst_45 : f32 to vector<4x4x1xf32>
      %60 = arith.divf %59, %58 : vector<4x4x1xf32>
      %c0_46 = arith.constant 0 : index
      %c0_47 = arith.constant 0 : index
      %c0_48 = arith.constant 0 : index
      %61 = vector.load %arg14[%c0_46, %c0_47, %c0_48] : memref<4x4x8xf32, #tpu.memory_space<vmem>>, vector<4x4x8xf32>
      %62 = vector.broadcast %60 : vector<4x4x1xf32> to vector<4x4x8xf32>
      %63 = arith.mulf %61, %62 : vector<4x4x8xf32>
      %c0_49 = arith.constant 0 : index
      %c0_50 = arith.constant 0 : index
      %c0_51 = arith.constant 0 : index
      %64 = vector.load %arg8[%c0_49, %c0_50, %c0_51] : memref<4x8x32xf32, #tpu.memory_space<vmem>>, vector<4x8x32xf32>
      "tpu.trace_start"() <{level = 10 : i32, message = "hqd,hde->hqe"}> : () -> ()
      %cst_52 = arith.constant dense<0.000000e+00> : vector<4x4x32xf32>
      %65 = tpu.matmul %63, %64, %cst_52 {dimension_numbers = #tpu.dot_dimension_numbers<[2], [1], [1], [2], [0, 0, 0, 1, 1, 2], [0], [0]>} : vector<4x4x8xf32>, vector<4x8x32xf32>, vector<4x4x32xf32> -> vector<4x4x32xf32>
      "tpu.trace_stop"() : () -> ()
      %cst_53 = arith.constant dense<0.000000e+00> : vector<4x32xf32>
      %66 = vector.multi_reduction <add>, %65, %cst_53 [0] : vector<4x4x32xf32> to vector<4x32xf32>
      %c0_54 = arith.constant 0 : index
      %c0_55 = arith.constant 0 : index
      %c0_56 = arith.constant 0 : index
      %67 = vector.load %arg7[%c0_54, %c0_55, %c0_56] : memref<1x4x32xf32, #tpu.memory_space<vmem>>, vector<1x4x32xf32>
      %68 = vector.shape_cast %67 : vector<1x4x32xf32> to vector<4x32xf32>
      %69 = arith.addf %66, %68 : vector<4x32xf32>
      %cst_57 = arith.constant dense<0.000000e+00> : vector<4xf32>
      %70 = vector.multi_reduction <add>, %69, %cst_57 [1] : vector<4x32xf32> to vector<4xf32>
      %71 = vector.shape_cast %70 : vector<4xf32> to vector<4x1xf32>
      %cst_58 = arith.constant 3.200000e+01 : f32
      %72 = vector.broadcast %cst_58 : f32 to vector<4x1xf32>
      %73 = arith.divf %71, %72 : vector<4x1xf32>
      %74 = vector.broadcast %73 : vector<4x1xf32> to vector<4x32xf32>
      %75 = arith.subf %69, %74 : vector<4x32xf32>
      %76 = arith.mulf %75, %75 : vector<4x32xf32>
      %cst_59 = arith.constant dense<0.000000e+00> : vector<4xf32>
      %77 = vector.multi_reduction <add>, %76, %cst_59 [1] : vector<4x32xf32> to vector<4xf32>
      %78 = vector.shape_cast %77 : vector<4xf32> to vector<4x1xf32>
      %cst_60 = arith.constant 3.200000e+01 : f32
      %79 = vector.broadcast %cst_60 : f32 to vector<4x1xf32>
      %80 = arith.divf %78, %79 : vector<4x1xf32>
      %cst_61 = arith.constant 9.99999974E-6 : f32
      %81 = vector.broadcast %cst_61 : f32 to vector<4x1xf32>
      %82 = arith.addf %80, %81 : vector<4x1xf32>
      %83 = math.rsqrt %82 : vector<4x1xf32>
      %84 = vector.broadcast %83 : vector<4x1xf32> to vector<4x32xf32>
      %85 = arith.mulf %75, %84 : vector<4x32xf32>
      %c0_62 = arith.constant 0 : index
      %c0_63 = arith.constant 0 : index
      %86 = vector.load %arg9[%c0_62, %c0_63] : memref<1x32xf32, #tpu.memory_space<vmem>>, vector<1x32xf32>
      %87 = vector.broadcast %86 : vector<1x32xf32> to vector<4x32xf32>
      %88 = arith.mulf %85, %87 : vector<4x32xf32>
      %c0_64 = arith.constant 0 : index
      %c0_65 = arith.constant 0 : index
      %89 = vector.load %arg10[%c0_64, %c0_65] : memref<1x32xf32, #tpu.memory_space<vmem>>, vector<1x32xf32>
      %90 = vector.broadcast %89 : vector<1x32xf32> to vector<4x32xf32>
      %91 = arith.addf %88, %90 : vector<4x32xf32>
      %c0_66 = arith.constant 0 : index
      %c0_67 = arith.constant 0 : index
      %c0_68 = arith.constant 0 : index
      %92 = vector.load %arg11[%c0_66, %c0_67, %c0_68] : memref<1x4x32xf32, #tpu.memory_space<vmem>>, vector<1x4x32xf32>
      %93 = vector.shape_cast %92 : vector<1x4x32xf32> to vector<4x32xf32>
      %94 = vector.shape_cast %91 : vector<4x32xf32> to vector<1x4x32xf32>
      tpu.vector_store %arg11[%c0_66, %c0_67, %c0_68], %94 {strides = array<i32>} : memref<1x4x32xf32, #tpu.memory_space<vmem>>, vector<1x4x32xf32>,
    } else {
    }
    return
  }
  func.func @transform_0(%arg0: i32, %arg1: i32, %arg2: i32) -> (i32, i32, i32, i32) {
    %c0_i32 = arith.constant 0 : i32
    %c0_i32_0 = arith.constant 0 : i32
    %c0_i32_1 = arith.constant 0 : i32
    return %arg0, %c0_i32, %arg1, %c0_i32_0 : i32, i32, i32, i32
  }
  func.func @transform_1(%arg0: i32, %arg1: i32, %arg2: i32) -> (i32, i32, i32, i32) {
    %c0_i32 = arith.constant 0 : i32
    %c0_i32_0 = arith.constant 0 : i32
    %c0_i32_1 = arith.constant 0 : i32
    return %arg0, %c0_i32, %arg2, %c0_i32_0 : i32, i32, i32, i32
  }
  func.func @transform_2(%arg0: i32, %arg1: i32, %arg2: i32) -> (i32, i32, i32, i32) {
    %c0_i32 = arith.constant 0 : i32
    %c0_i32_0 = arith.constant 0 : i32
    %c0_i32_1 = arith.constant 0 : i32
    return %arg0, %c0_i32, %arg2, %c0_i32_0 : i32, i32, i32, i32
  }
  func.func @transform_3(%arg0: i32, %arg1: i32, %arg2: i32) -> (i32, i32, i32) {
    %c0_i32 = arith.constant 0 : i32
    %c0_i32_0 = arith.constant 0 : i32
    return %arg0, %c0_i32, %arg2 : i32, i32, i32
  }
  func.func @transform_4(%arg0: i32, %arg1: i32, %arg2: i32) -> (i32, i32, i32) {
    %c0_i32 = arith.constant 0 : i32
    %c0_i32_0 = arith.constant 0 : i32
    return %arg0, %arg1, %c0_i32 : i32, i32, i32
  }
  func.func @transform_5(%arg0: i32, %arg1: i32, %arg2: i32) -> (i32, i32, i32) {
    %c0_i32 = arith.constant 0 : i32
    %c0_i32_0 = arith.constant 0 : i32
    %c0_i32_1 = arith.constant 0 : i32
    %c0_i32_2 = arith.constant 0 : i32
    return %c0_i32, %c0_i32_0, %c0_i32_1 : i32, i32, i32
  }
  func.func @transform_6(%arg0: i32, %arg1: i32, %arg2: i32) -> (i32, i32) {
    %c0_i32 = arith.constant 0 : i32
    %c0_i32_0 = arith.constant 0 : i32
    %c0_i32_1 = arith.constant 0 : i32
    return %c0_i32, %c0_i32_0 : i32, i32
  }
  func.func @transform_7(%arg0: i32, %arg1: i32, %arg2: i32) -> (i32, i32) {
    %c0_i32 = arith.constant 0 : i32
    %c0_i32_0 = arith.constant 0 : i32
    %c0_i32_1 = arith.constant 0 : i32
    return %c0_i32, %c0_i32_0 : i32, i32
  }
  func.func @transform_8(%arg0: i32, %arg1: i32, %arg2: i32) -> (i32, i32, i32) {
    %c0_i32 = arith.constant 0 : i32
    %c0_i32_0 = arith.constant 0 : i32
    return %arg0, %arg1, %c0_i32 : i32, i32, i32
  }
}

module attributes {stable_mosaic.version = 11 : i64} {
  func.func @_linear_kernel(%arg0: i32, %arg1: i32, %arg2: memref<8x32xf32, #tpu.memory_space<vmem>>, %arg3: memref<32x50xf32, #tpu.memory_space<vmem>>, %arg4: memref<1x50xf32, #tpu.memory_space<vmem>>, %arg5: memref<8x50xf32, #tpu.memory_space<vmem>>) attributes {dimension_semantics = [#tpu.dimension_semantics<parallel>, #tpu.dimension_semantics<parallel>], iteration_bounds = array<i64: 1, 1>, scalar_prefetch = 0 : i64, scratch_operands = 0 : i64, tpu.core_type = #tpu.core_type<tc>, window_params = [{transform_indices = @transform_0, window_bounds = array<i64: 8, 32>}, {transform_indices = @transform_1, window_bounds = array<i64: 32, 50>}, {transform_indices = @transform_2, window_bounds = array<i64: 1, 50>}, {transform_indices = @transform_3, window_bounds = array<i64: 8, 50>}]} {
    %c0 = arith.constant 0 : index
    %c0_0 = arith.constant 0 : index
    %0 = vector.load %arg2[%c0, %c0_0] : memref<8x32xf32, #tpu.memory_space<vmem>>, vector<8x32xf32>
    %c0_1 = arith.constant 0 : index
    %c0_2 = arith.constant 0 : index
    %1 = vector.load %arg3[%c0_1, %c0_2] : memref<32x50xf32, #tpu.memory_space<vmem>>, vector<32x50xf32>
    %cst = arith.constant dense<0.000000e+00> : vector<8x50xf32>
    %2 = tpu.matmul %0, %1, %cst {dimension_numbers = #tpu.dot_dimension_numbers<[1], [0], [0], [1], [0, 0, 1, 1], [], []>} : vector<8x32xf32>, vector<32x50xf32>, vector<8x50xf32> -> vector<8x50xf32>
    %c0_3 = arith.constant 0 : index
    %c0_4 = arith.constant 0 : index
    %3 = vector.load %arg4[%c0_3, %c0_4] : memref<1x50xf32, #tpu.memory_space<vmem>>, vector<1x50xf32>
    %4 = vector.broadcast %3 : vector<1x50xf32> to vector<8x50xf32>
    %5 = arith.addf %2, %4 : vector<8x50xf32>
    %c0_5 = arith.constant 0 : index
    %c0_6 = arith.constant 0 : index
    %6 = vector.load %arg5[%c0_5, %c0_6] : memref<8x50xf32, #tpu.memory_space<vmem>>, vector<8x50xf32>
    tpu.vector_store %arg5[%c0_5, %c0_6], %5 {strides = array<i32>} : memref<8x50xf32, #tpu.memory_space<vmem>>, vector<8x50xf32>,
    return
  }
  func.func @transform_0(%arg0: i32, %arg1: i32) -> (i32, i32) {
    %c0_i32 = arith.constant 0 : i32
    %c0_i32_0 = arith.constant 0 : i32
    return %arg0, %c0_i32 : i32, i32
  }
  func.func @transform_1(%arg0: i32, %arg1: i32) -> (i32, i32) {
    %c0_i32 = arith.constant 0 : i32
    %c0_i32_0 = arith.constant 0 : i32
    return %c0_i32, %arg1 : i32, i32
  }
  func.func @transform_2(%arg0: i32, %arg1: i32) -> (i32, i32) {
    %c0_i32 = arith.constant 0 : i32
    %c0_i32_0 = arith.constant 0 : i32
    return %c0_i32, %arg1 : i32, i32
  }
  func.func @transform_3(%arg0: i32, %arg1: i32) -> (i32, i32) {
    %c0_i32 = arith.constant 0 : i32
    return %arg0, %arg1 : i32, i32
  }
}

module attributes {stable_mosaic.version = 11 : i64} {
  func.func @_ffn_ln_kernel(%arg0: i32, %arg1: memref<8x32xf32, #tpu.memory_space<vmem>>, %arg2: memref<32x64xf32, #tpu.memory_space<vmem>>, %arg3: memref<1x64xf32, #tpu.memory_space<vmem>>, %arg4: memref<64x32xf32, #tpu.memory_space<vmem>>, %arg5: memref<1x32xf32, #tpu.memory_space<vmem>>, %arg6: memref<1x32xf32, #tpu.memory_space<vmem>>, %arg7: memref<1x32xf32, #tpu.memory_space<vmem>>, %arg8: memref<8x32xf32, #tpu.memory_space<vmem>>) attributes {dimension_semantics = [#tpu.dimension_semantics<parallel>], iteration_bounds = array<i64: 1>, scalar_prefetch = 0 : i64, scratch_operands = 0 : i64, tpu.core_type = #tpu.core_type<tc>, window_params = [{transform_indices = @transform_0, window_bounds = array<i64: 8, 32>}, {pipeline_mode = #tpu.pipeline_mode<synchronous>, transform_indices = @transform_1, window_bounds = array<i64: 32, 64>}, {pipeline_mode = #tpu.pipeline_mode<synchronous>, transform_indices = @transform_2, window_bounds = array<i64: 1, 64>}, {pipeline_mode = #tpu.pipeline_mode<synchronous>, transform_indices = @transform_3, window_bounds = array<i64: 64, 32>}, {pipeline_mode = #tpu.pipeline_mode<synchronous>, transform_indices = @transform_4, window_bounds = array<i64: 1, 32>}, {pipeline_mode = #tpu.pipeline_mode<synchronous>, transform_indices = @transform_5, window_bounds = array<i64: 1, 32>}, {pipeline_mode = #tpu.pipeline_mode<synchronous>, transform_indices = @transform_6, window_bounds = array<i64: 1, 32>}, {transform_indices = @transform_7, window_bounds = array<i64: 8, 32>}]} {
    %c0 = arith.constant 0 : index
    %c0_0 = arith.constant 0 : index
    %0 = vector.load %arg1[%c0, %c0_0] : memref<8x32xf32, #tpu.memory_space<vmem>>, vector<8x32xf32>
    %c0_1 = arith.constant 0 : index
    %c0_2 = arith.constant 0 : index
    %1 = vector.load %arg2[%c0_1, %c0_2] : memref<32x64xf32, #tpu.memory_space<vmem>>, vector<32x64xf32>
    %cst = arith.constant dense<0.000000e+00> : vector<8x64xf32>
    %2 = tpu.matmul %0, %1, %cst {dimension_numbers = #tpu.dot_dimension_numbers<[1], [0], [0], [1], [0, 0, 1, 1], [], []>} : vector<8x32xf32>, vector<32x64xf32>, vector<8x64xf32> -> vector<8x64xf32>
    %c0_3 = arith.constant 0 : index
    %c0_4 = arith.constant 0 : index
    %3 = vector.load %arg3[%c0_3, %c0_4] : memref<1x64xf32, #tpu.memory_space<vmem>>, vector<1x64xf32>
    %4 = vector.broadcast %3 : vector<1x64xf32> to vector<8x64xf32>
    %5 = arith.addf %2, %4 : vector<8x64xf32>
    %cst_5 = arith.constant 0.000000e+00 : f32
    %6 = vector.broadcast %cst_5 : f32 to vector<8x64xf32>
    %7 = arith.maximumf %5, %6 : vector<8x64xf32>
    %c0_6 = arith.constant 0 : index
    %c0_7 = arith.constant 0 : index
    %8 = vector.load %arg4[%c0_6, %c0_7] : memref<64x32xf32, #tpu.memory_space<vmem>>, vector<64x32xf32>
    %cst_8 = arith.constant dense<0.000000e+00> : vector<8x32xf32>
    %9 = tpu.matmul %7, %8, %cst_8 {dimension_numbers = #tpu.dot_dimension_numbers<[1], [0], [0], [1], [0, 0, 1, 1], [], []>} : vector<8x64xf32>, vector<64x32xf32>, vector<8x32xf32> -> vector<8x32xf32>
    %c0_9 = arith.constant 0 : index
    %c0_10 = arith.constant 0 : index
    %10 = vector.load %arg5[%c0_9, %c0_10] : memref<1x32xf32, #tpu.memory_space<vmem>>, vector<1x32xf32>
    %11 = vector.broadcast %10 : vector<1x32xf32> to vector<8x32xf32>
    %12 = arith.addf %9, %11 : vector<8x32xf32>
    %13 = arith.addf %12, %0 : vector<8x32xf32>
    %cst_11 = arith.constant dense<0.000000e+00> : vector<8xf32>
    %14 = vector.multi_reduction <add>, %13, %cst_11 [1] : vector<8x32xf32> to vector<8xf32>
    %15 = vector.shape_cast %14 : vector<8xf32> to vector<8x1xf32>
    %cst_12 = arith.constant 3.200000e+01 : f32
    %16 = vector.broadcast %cst_12 : f32 to vector<8x1xf32>
    %17 = arith.divf %15, %16 : vector<8x1xf32>
    %18 = vector.broadcast %17 : vector<8x1xf32> to vector<8x32xf32>
    %19 = arith.subf %13, %18 : vector<8x32xf32>
    %20 = arith.mulf %19, %19 : vector<8x32xf32>
    %cst_13 = arith.constant dense<0.000000e+00> : vector<8xf32>
    %21 = vector.multi_reduction <add>, %20, %cst_13 [1] : vector<8x32xf32> to vector<8xf32>
    %22 = vector.shape_cast %21 : vector<8xf32> to vector<8x1xf32>
    %cst_14 = arith.constant 3.200000e+01 : f32
    %23 = vector.broadcast %cst_14 : f32 to vector<8x1xf32>
    %24 = arith.divf %22, %23 : vector<8x1xf32>
    %cst_15 = arith.constant 9.99999974E-6 : f32
    %25 = vector.broadcast %cst_15 : f32 to vector<8x1xf32>
    %26 = arith.addf %24, %25 : vector<8x1xf32>
    %27 = math.rsqrt %26 : vector<8x1xf32>
    %28 = vector.broadcast %27 : vector<8x1xf32> to vector<8x32xf32>
    %29 = arith.mulf %19, %28 : vector<8x32xf32>
    %c0_16 = arith.constant 0 : index
    %c0_17 = arith.constant 0 : index
    %30 = vector.load %arg6[%c0_16, %c0_17] : memref<1x32xf32, #tpu.memory_space<vmem>>, vector<1x32xf32>
    %31 = vector.broadcast %30 : vector<1x32xf32> to vector<8x32xf32>
    %32 = arith.mulf %29, %31 : vector<8x32xf32>
    %c0_18 = arith.constant 0 : index
    %c0_19 = arith.constant 0 : index
    %33 = vector.load %arg7[%c0_18, %c0_19] : memref<1x32xf32, #tpu.memory_space<vmem>>, vector<1x32xf32>
    %34 = vector.broadcast %33 : vector<1x32xf32> to vector<8x32xf32>
    %35 = arith.addf %32, %34 : vector<8x32xf32>
    %c0_20 = arith.constant 0 : index
    %c0_21 = arith.constant 0 : index
    %36 = vector.load %arg8[%c0_20, %c0_21] : memref<8x32xf32, #tpu.memory_space<vmem>>, vector<8x32xf32>
    tpu.vector_store %arg8[%c0_20, %c0_21], %35 {strides = array<i32>} : memref<8x32xf32, #tpu.memory_space<vmem>>, vector<8x32xf32>,
    return
  }
  func.func @transform_0(%arg0: i32) -> (i32, i32) {
    %c0_i32 = arith.constant 0 : i32
    %c0_i32_0 = arith.constant 0 : i32
    return %arg0, %c0_i32 : i32, i32
  }
  func.func @transform_1(%arg0: i32) -> (i32, i32) {
    %c0_i32 = arith.constant 0 : i32
    %c0_i32_0 = arith.constant 0 : i32
    %c0_i32_1 = arith.constant 0 : i32
    return %c0_i32, %c0_i32_0 : i32, i32
  }
  func.func @transform_2(%arg0: i32) -> (i32, i32) {
    %c0_i32 = arith.constant 0 : i32
    %c0_i32_0 = arith.constant 0 : i32
    %c0_i32_1 = arith.constant 0 : i32
    return %c0_i32, %c0_i32_0 : i32, i32
  }
  func.func @transform_3(%arg0: i32) -> (i32, i32) {
    %c0_i32 = arith.constant 0 : i32
    %c0_i32_0 = arith.constant 0 : i32
    %c0_i32_1 = arith.constant 0 : i32
    return %c0_i32, %c0_i32_0 : i32, i32
  }
  func.func @transform_4(%arg0: i32) -> (i32, i32) {
    %c0_i32 = arith.constant 0 : i32
    %c0_i32_0 = arith.constant 0 : i32
    %c0_i32_1 = arith.constant 0 : i32
    return %c0_i32, %c0_i32_0 : i32, i32
  }
  func.func @transform_5(%arg0: i32) -> (i32, i32) {
    %c0_i32 = arith.constant 0 : i32
    %c0_i32_0 = arith.constant 0 : i32
    %c0_i32_1 = arith.constant 0 : i32
    return %c0_i32, %c0_i32_0 : i32, i32
  }
  func.func @transform_6(%arg0: i32) -> (i32, i32) {
    %c0_i32 = arith.constant 0 : i32
    %c0_i32_0 = arith.constant 0 : i32
    %c0_i32_1 = arith.constant 0 : i32
    return %c0_i32, %c0_i32_0 : i32, i32
  }
  func.func @transform_7(%arg0: i32) -> (i32, i32) {
    %c0_i32 = arith.constant 0 : i32
    %c0_i32_0 = arith.constant 0 : i32
    return %arg0, %c0_i32 : i32, i32
  }
}

module attributes {stable_mosaic.version = 11 : i64} {
  func.func @_flash_ln_kernel(%arg0: i32, %arg1: i32, %arg2: i32, %arg3: memref<1x4x4x8xf32, #tpu.memory_space<vmem>>, %arg4: memref<1x4x9x8xf32, #tpu.memory_space<vmem>>, %arg5: memref<1x4x9x8xf32, #tpu.memory_space<vmem>>, %arg6: memref<1x1x9xf32, #tpu.memory_space<vmem>>, %arg7: memref<1x4x32xf32, #tpu.memory_space<vmem>>, %arg8: memref<4x8x32xf32, #tpu.memory_space<vmem>>, %arg9: memref<1x32xf32, #tpu.memory_space<vmem>>, %arg10: memref<1x32xf32, #tpu.memory_space<vmem>>, %arg11: memref<1x4x32xf32, #tpu.memory_space<vmem>>, %arg12: memref<4x4x1xf32, #tpu.memory_space<vmem>>, %arg13: memref<4x4x1xf32, #tpu.memory_space<vmem>>, %arg14: memref<4x4x8xf32, #tpu.memory_space<vmem>>) attributes {dimension_semantics = [#tpu.dimension_semantics<parallel>, #tpu.dimension_semantics<parallel>, #tpu.dimension_semantics<arbitrary>], iteration_bounds = array<i64: 2, 1, 1>, scalar_prefetch = 0 : i64, scratch_operands = 3 : i64, tpu.core_type = #tpu.core_type<tc>, window_params = [{transform_indices = @transform_0, window_bounds = array<i64: 1, 4, 4, 8>}, {transform_indices = @transform_1, window_bounds = array<i64: 1, 4, 9, 8>}, {transform_indices = @transform_2, window_bounds = array<i64: 1, 4, 9, 8>}, {transform_indices = @transform_3, window_bounds = array<i64: 1, 1, 9>}, {transform_indices = @transform_4, window_bounds = array<i64: 1, 4, 32>}, {pipeline_mode = #tpu.pipeline_mode<synchronous>, transform_indices = @transform_5, window_bounds = array<i64: 4, 8, 32>}, {pipeline_mode = #tpu.pipeline_mode<synchronous>, transform_indices = @transform_6, window_bounds = array<i64: 1, 32>}, {pipeline_mode = #tpu.pipeline_mode<synchronous>, transform_indices = @transform_7, window_bounds = array<i64: 1, 32>}, {transform_indices = @transform_8, window_bounds = array<i64: 1, 4, 32>}]} {
    %c0_i32 = arith.constant 0 : i32
    %0 = arith.cmpi eq, %arg2, %c0_i32 : i32
    %1 = arith.extui %0 : i1 to i32
    %c0_i32_0 = arith.constant 0 : i32
    %2 = arith.cmpi ne, %1, %c0_i32_0 : i32
    scf.if %2 {
      %cst_40 = arith.constant 0xFF800000 : f32
      %44 = vector.broadcast %cst_40 : f32 to vector<4x4x1xf32>
      %c0_41 = arith.constant 0 : index
      %c0_42 = arith.constant 0 : index
      %c0_43 = arith.constant 0 : index
      %45 = vector.load %arg12[%c0_41, %c0_42, %c0_43] : memref<4x4x1xf32, #tpu.memory_space<vmem>>, vector<4x4x1xf32>
      tpu.vector_store %arg12[%c0_41, %c0_42, %c0_43], %44 {strides = array<i32>} : memref<4x4x1xf32, #tpu.memory_space<vmem>>, vector<4x4x1xf32>,
      %cst_44 = arith.constant 0.000000e+00 : f32
      %46 = vector.broadcast %cst_44 : f32 to vector<4x4x1xf32>
      %c0_45 = arith.constant 0 : index
      %c0_46 = arith.constant 0 : index
      %c0_47 = arith.constant 0 : index
      %47 = vector.load %arg13[%c0_45, %c0_46, %c0_47] : memref<4x4x1xf32, #tpu.memory_space<vmem>>, vector<4x4x1xf32>
      tpu.vector_store %arg13[%c0_45, %c0_46, %c0_47], %46 {strides = array<i32>} : memref<4x4x1xf32, #tpu.memory_space<vmem>>, vector<4x4x1xf32>,
      %cst_48 = arith.constant 0.000000e+00 : f32
      %48 = vector.broadcast %cst_48 : f32 to vector<4x4x8xf32>
      %c0_49 = arith.constant 0 : index
      %c0_50 = arith.constant 0 : index
      %c0_51 = arith.constant 0 : index
      %49 = vector.load %arg14[%c0_49, %c0_50, %c0_51] : memref<4x4x8xf32, #tpu.memory_space<vmem>>, vector<4x4x8xf32>
      tpu.vector_store %arg14[%c0_49, %c0_50, %c0_51], %48 {strides = array<i32>} : memref<4x4x8xf32, #tpu.memory_space<vmem>>, vector<4x4x8xf32>,
    } else {
    }
    %c0 = arith.constant 0 : index
    %c0_1 = arith.constant 0 : index
    %c0_2 = arith.constant 0 : index
    %c0_3 = arith.constant 0 : index
    %3 = vector.load %arg3[%c0, %c0_1, %c0_2, %c0_3] : memref<1x4x4x8xf32, #tpu.memory_space<vmem>>, vector<1x4x4x8xf32>
    %4 = vector.shape_cast %3 : vector<1x4x4x8xf32> to vector<4x4x8xf32>
    %c0_4 = arith.constant 0 : index
    %c0_5 = arith.constant 0 : index
    %c0_6 = arith.constant 0 : index
    %c0_7 = arith.constant 0 : index
    %5 = vector.load %arg4[%c0_4, %c0_5, %c0_6, %c0_7] : memref<1x4x9x8xf32, #tpu.memory_space<vmem>>, vector<1x4x9x8xf32>
    %6 = vector.shape_cast %5 : vector<1x4x9x8xf32> to vector<4x9x8xf32>
    %c0_8 = arith.constant 0 : index
    %c0_9 = arith.constant 0 : index
    %c0_10 = arith.constant 0 : index
    %c0_11 = arith.constant 0 : index
    %7 = vector.load %arg5[%c0_8, %c0_9, %c0_10, %c0_11] : memref<1x4x9x8xf32, #tpu.memory_space<vmem>>, vector<1x4x9x8xf32>
    %8 = vector.shape_cast %7 : vector<1x4x9x8xf32> to vector<4x9x8xf32>
    "tpu.trace_start"() <{level = 10 : i32, message = "hqd,hkd->hqk"}> : () -> ()
    %cst = arith.constant dense<0.000000e+00> : vector<4x4x9xf32>
    %9 = tpu.matmul %4, %6, %cst {dimension_numbers = #tpu.dot_dimension_numbers<[2], [2], [1], [1], [0, 0, 0, 1, 1, 1], [0], [0]>} : vector<4x4x8xf32>, vector<4x9x8xf32>, vector<4x4x9xf32> -> vector<4x4x9xf32>
    "tpu.trace_stop"() : () -> ()
    %c0_12 = arith.constant 0 : index
    %c0_13 = arith.constant 0 : index
    %c0_14 = arith.constant 0 : index
    %10 = vector.load %arg6[%c0_12, %c0_13, %c0_14] : memref<1x1x9xf32, #tpu.memory_space<vmem>>, vector<1x1x9xf32>
    %11 = vector.shape_cast %10 : vector<1x1x9xf32> to vector<1x9xf32>
    %12 = vector.shape_cast %11 : vector<1x9xf32> to vector<1x1x9xf32>
    %cst_15 = arith.constant 0.000000e+00 : f32
    %13 = vector.broadcast %cst_15 : f32 to vector<1x1x9xf32>
    %14 = arith.cmpf one, %12, %13 : vector<1x1x9xf32>
    %cst_16 = arith.constant -1.76776698E+19 : f32
    %15 = vector.shape_cast %14 : vector<1x1x9xi1> to vector<1x1x9xi1>
    %16 = vector.broadcast %15 : vector<1x1x9xi1> to vector<4x4x9xi1>
    %17 = vector.broadcast %cst_16 : f32 to vector<4x4x9xf32>
    %18 = arith.select %16, %9, %17 : vector<4x4x9xi1>, vector<4x4x9xf32>
    %c0_17 = arith.constant 0 : index
    %c0_18 = arith.constant 0 : index
    %c0_19 = arith.constant 0 : index
    %19 = vector.load %arg12[%c0_17, %c0_18, %c0_19] : memref<4x4x1xf32, #tpu.memory_space<vmem>>, vector<4x4x1xf32>
    %cst_20 = arith.constant dense<0xFF800000> : vector<4x4xf32>
    %20 = vector.multi_reduction <maximumf>, %18, %cst_20 [2] : vector<4x4x9xf32> to vector<4x4xf32>
    %21 = vector.shape_cast %20 : vector<4x4xf32> to vector<4x4x1xf32>
    %22 = arith.maximumf %19, %21 : vector<4x4x1xf32>
    %23 = arith.subf %19, %22 : vector<4x4x1xf32>
    %24 = math.exp %23 : vector<4x4x1xf32>
    %25 = vector.broadcast %22 : vector<4x4x1xf32> to vector<4x4x9xf32>
    %26 = arith.subf %18, %25 : vector<4x4x9xf32>
    %27 = math.exp %26 : vector<4x4x9xf32>
    %c0_21 = arith.constant 0 : index
    %c0_22 = arith.constant 0 : index
    %c0_23 = arith.constant 0 : index
    %28 = vector.load %arg13[%c0_21, %c0_22, %c0_23] : memref<4x4x1xf32, #tpu.memory_space<vmem>>, vector<4x4x1xf32>
    %29 = arith.mulf %24, %28 : vector<4x4x1xf32>
    %cst_24 = arith.constant dense<0.000000e+00> : vector<4x4xf32>
    %30 = vector.multi_reduction <add>, %27, %cst_24 [2] : vector<4x4x9xf32> to vector<4x4xf32>
    %31 = vector.shape_cast %30 : vector<4x4xf32> to vector<4x4x1xf32>
    %32 = arith.addf %29, %31 : vector<4x4x1xf32>
    %c0_25 = arith.constant 0 : index
    %c0_26 = arith.constant 0 : index
    %c0_27 = arith.constant 0 : index
    %33 = vector.load %arg13[%c0_25, %c0_26, %c0_27] : memref<4x4x1xf32, #tpu.memory_space<vmem>>, vector<4x4x1xf32>
    tpu.vector_store %arg13[%c0_25, %c0_26, %c0_27], %32 {strides = array<i32>} : memref<4x4x1xf32, #tpu.memory_space<vmem>>, vector<4x4x1xf32>,
    %c0_28 = arith.constant 0 : index
    %c0_29 = arith.constant 0 : index
    %c0_30 = arith.constant 0 : index
    %34 = vector.load %arg14[%c0_28, %c0_29, %c0_30] : memref<4x4x8xf32, #tpu.memory_space<vmem>>, vector<4x4x8xf32>
    %35 = vector.broadcast %24 : vector<4x4x1xf32> to vector<4x4x8xf32>
    %36 = arith.mulf %35, %34 : vector<4x4x8xf32>
    "tpu.trace_start"() <{level = 10 : i32, message = "hqk,hkd->hqd"}> : () -> ()
    %cst_31 = arith.constant dense<0.000000e+00> : vector<4x4x8xf32>
    %37 = tpu.matmul %27, %8, %cst_31 {dimension_numbers = #tpu.dot_dimension_numbers<[2], [1], [1], [2], [0, 0, 0, 1, 1, 2], [0], [0]>} : vector<4x4x9xf32>, vector<4x9x8xf32>, vector<4x4x8xf32> -> vector<4x4x8xf32>
    "tpu.trace_stop"() : () -> ()
    %38 = arith.addf %36, %37 : vector<4x4x8xf32>
    %c0_32 = arith.constant 0 : index
    %c0_33 = arith.constant 0 : index
    %c0_34 = arith.constant 0 : index
    %39 = vector.load %arg14[%c0_32, %c0_33, %c0_34] : memref<4x4x8xf32, #tpu.memory_space<vmem>>, vector<4x4x8xf32>
    tpu.vector_store %arg14[%c0_32, %c0_33, %c0_34], %38 {strides = array<i32>} : memref<4x4x8xf32, #tpu.memory_space<vmem>>, vector<4x4x8xf32>,
    %c0_35 = arith.constant 0 : index
    %c0_36 = arith.constant 0 : index
    %c0_37 = arith.constant 0 : index
    %40 = vector.load %arg12[%c0_35, %c0_36, %c0_37] : memref<4x4x1xf32, #tpu.memory_space<vmem>>, vector<4x4x1xf32>
    tpu.vector_store %arg12[%c0_35, %c0_36, %c0_37], %22 {strides = array<i32>} : memref<4x4x1xf32, #tpu.memory_space<vmem>>, vector<4x4x1xf32>,
    %c0_i32_38 = arith.constant 0 : i32
    %41 = arith.cmpi eq, %arg2, %c0_i32_38 : i32
    %42 = arith.extui %41 : i1 to i32
    %c0_i32_39 = arith.constant 0 : i32
    %43 = arith.cmpi ne, %42, %c0_i32_39 : i32
    scf.if %43 {
      %c0_40 = arith.constant 0 : index
      %c0_41 = arith.constant 0 : index
      %c0_42 = arith.constant 0 : index
      %44 = vector.load %arg13[%c0_40, %c0_41, %c0_42] : memref<4x4x1xf32, #tpu.memory_space<vmem>>, vector<4x4x1xf32>
      %cst_43 = arith.constant 1.000000e+00 : f32
      %45 = vector.broadcast %cst_43 : f32 to vector<4x4x1xf32>
      %46 = arith.divf %45, %44 : vector<4x4x1xf32>
      %c0_44 = arith.constant 0 : index
      %c0_45 = arith.constant 0 : index
      %c0_46 = arith.constant 0 : index
      %47 = vector.load %arg14[%c0_44, %c0_45, %c0_46] : memref<4x4x8xf32, #tpu.memory_space<vmem>>, vector<4x4x8xf32>
      %48 = vector.broadcast %46 : vector<4x4x1xf32> to vector<4x4x8xf32>
      %49 = arith.mulf %47, %48 : vector<4x4x8xf32>
      %c0_47 = arith.constant 0 : index
      %c0_48 = arith.constant 0 : index
      %c0_49 = arith.constant 0 : index
      %50 = vector.load %arg8[%c0_47, %c0_48, %c0_49] : memref<4x8x32xf32, #tpu.memory_space<vmem>>, vector<4x8x32xf32>
      "tpu.trace_start"() <{level = 10 : i32, message = "hqd,hde->hqe"}> : () -> ()
      %cst_50 = arith.constant dense<0.000000e+00> : vector<4x4x32xf32>
      %51 = tpu.matmul %49, %50, %cst_50 {dimension_numbers = #tpu.dot_dimension_numbers<[2], [1], [1], [2], [0, 0, 0, 1, 1, 2], [0], [0]>} : vector<4x4x8xf32>, vector<4x8x32xf32>, vector<4x4x32xf32> -> vector<4x4x32xf32>
      "tpu.trace_stop"() : () -> ()
      %cst_51 = arith.constant dense<0.000000e+00> : vector<4x32xf32>
      %52 = vector.multi_reduction <add>, %51, %cst_51 [0] : vector<4x4x32xf32> to vector<4x32xf32>
      %c0_52 = arith.constant 0 : index
      %c0_53 = arith.constant 0 : index
      %c0_54 = arith.constant 0 : index
      %53 = vector.load %arg7[%c0_52, %c0_53, %c0_54] : memref<1x4x32xf32, #tpu.memory_space<vmem>>, vector<1x4x32xf32>
      %54 = vector.shape_cast %53 : vector<1x4x32xf32> to vector<4x32xf32>
      %55 = arith.addf %52, %54 : vector<4x32xf32>
      %cst_55 = arith.constant dense<0.000000e+00> : vector<4xf32>
      %56 = vector.multi_reduction <add>, %55, %cst_55 [1] : vector<4x32xf32> to vector<4xf32>
      %57 = vector.shape_cast %56 : vector<4xf32> to vector<4x1xf32>
      %cst_56 = arith.constant 3.200000e+01 : f32
      %58 = vector.broadcast %cst_56 : f32 to vector<4x1xf32>
      %59 = arith.divf %57, %58 : vector<4x1xf32>
      %60 = vector.broadcast %59 : vector<4x1xf32> to vector<4x32xf32>
      %61 = arith.subf %55, %60 : vector<4x32xf32>
      %62 = arith.mulf %61, %61 : vector<4x32xf32>
      %cst_57 = arith.constant dense<0.000000e+00> : vector<4xf32>
      %63 = vector.multi_reduction <add>, %62, %cst_57 [1] : vector<4x32xf32> to vector<4xf32>
      %64 = vector.shape_cast %63 : vector<4xf32> to vector<4x1xf32>
      %cst_58 = arith.constant 3.200000e+01 : f32
      %65 = vector.broadcast %cst_58 : f32 to vector<4x1xf32>
      %66 = arith.divf %64, %65 : vector<4x1xf32>
      %cst_59 = arith.constant 9.99999974E-6 : f32
      %67 = vector.broadcast %cst_59 : f32 to vector<4x1xf32>
      %68 = arith.addf %66, %67 : vector<4x1xf32>
      %69 = math.rsqrt %68 : vector<4x1xf32>
      %70 = vector.broadcast %69 : vector<4x1xf32> to vector<4x32xf32>
      %71 = arith.mulf %61, %70 : vector<4x32xf32>
      %c0_60 = arith.constant 0 : index
      %c0_61 = arith.constant 0 : index
      %72 = vector.load %arg9[%c0_60, %c0_61] : memref<1x32xf32, #tpu.memory_space<vmem>>, vector<1x32xf32>
      %73 = vector.broadcast %72 : vector<1x32xf32> to vector<4x32xf32>
      %74 = arith.mulf %71, %73 : vector<4x32xf32>
      %c0_62 = arith.constant 0 : index
      %c0_63 = arith.constant 0 : index
      %75 = vector.load %arg10[%c0_62, %c0_63] : memref<1x32xf32, #tpu.memory_space<vmem>>, vector<1x32xf32>
      %76 = vector.broadcast %75 : vector<1x32xf32> to vector<4x32xf32>
      %77 = arith.addf %74, %76 : vector<4x32xf32>
      %c0_64 = arith.constant 0 : index
      %c0_65 = arith.constant 0 : index
      %c0_66 = arith.constant 0 : index
      %78 = vector.load %arg11[%c0_64, %c0_65, %c0_66] : memref<1x4x32xf32, #tpu.memory_space<vmem>>, vector<1x4x32xf32>
      %79 = vector.shape_cast %78 : vector<1x4x32xf32> to vector<4x32xf32>
      %80 = vector.shape_cast %77 : vector<4x32xf32> to vector<1x4x32xf32>
      tpu.vector_store %arg11[%c0_64, %c0_65, %c0_66], %80 {strides = array<i32>} : memref<1x4x32xf32, #tpu.memory_space<vmem>>, vector<1x4x32xf32>,
    } else {
    }
    return
  }
  func.func @transform_0(%arg0: i32, %arg1: i32, %arg2: i32) -> (i32, i32, i32, i32) {
    %c0_i32 = arith.constant 0 : i32
    %c0_i32_0 = arith.constant 0 : i32
    %c0_i32_1 = arith.constant 0 : i32
    return %arg0, %c0_i32, %arg1, %c0_i32_0 : i32, i32, i32, i32
  }
  func.func @transform_1(%arg0: i32, %arg1: i32, %arg2: i32) -> (i32, i32, i32, i32) {
    %c0_i32 = arith.constant 0 : i32
    %c0_i32_0 = arith.constant 0 : i32
    %c0_i32_1 = arith.constant 0 : i32
    return %arg0, %c0_i32, %arg2, %c0_i32_0 : i32, i32, i32, i32
  }
  func.func @transform_2(%arg0: i32, %arg1: i32, %arg2: i32) -> (i32, i32, i32, i32) {
    %c0_i32 = arith.constant 0 : i32
    %c0_i32_0 = arith.constant 0 : i32
    %c0_i32_1 = arith.constant 0 : i32
    return %arg0, %c0_i32, %arg2, %c0_i32_0 : i32, i32, i32, i32
  }
  func.func @transform_3(%arg0: i32, %arg1: i32, %arg2: i32) -> (i32, i32, i32) {
    %c0_i32 = arith.constant 0 : i32
    %c0_i32_0 = arith.constant 0 : i32
    return %arg0, %c0_i32, %arg2 : i32, i32, i32
  }
  func.func @transform_4(%arg0: i32, %arg1: i32, %arg2: i32) -> (i32, i32, i32) {
    %c0_i32 = arith.constant 0 : i32
    %c0_i32_0 = arith.constant 0 : i32
    return %arg0, %arg1, %c0_i32 : i32, i32, i32
  }
  func.func @transform_5(%arg0: i32, %arg1: i32, %arg2: i32) -> (i32, i32, i32) {
    %c0_i32 = arith.constant 0 : i32
    %c0_i32_0 = arith.constant 0 : i32
    %c0_i32_1 = arith.constant 0 : i32
    %c0_i32_2 = arith.constant 0 : i32
    return %c0_i32, %c0_i32_0, %c0_i32_1 : i32, i32, i32
  }
  func.func @transform_6(%arg0: i32, %arg1: i32, %arg2: i32) -> (i32, i32) {
    %c0_i32 = arith.constant 0 : i32
    %c0_i32_0 = arith.constant 0 : i32
    %c0_i32_1 = arith.constant 0 : i32
    return %c0_i32, %c0_i32_0 : i32, i32
  }
  func.func @transform_7(%arg0: i32, %arg1: i32, %arg2: i32) -> (i32, i32) {
    %c0_i32 = arith.constant 0 : i32
    %c0_i32_0 = arith.constant 0 : i32
    %c0_i32_1 = arith.constant 0 : i32
    return %c0_i32, %c0_i32_0 : i32, i32
  }
  func.func @transform_8(%arg0: i32, %arg1: i32, %arg2: i32) -> (i32, i32, i32) {
    %c0_i32 = arith.constant 0 : i32
    %c0_i32_0 = arith.constant 0 : i32
    return %arg0, %arg1, %c0_i32 : i32, i32, i32
  }
}

</mosaic_0001>

<bundles_post_ra>
// kernel: transformer_fwd.12
= control target key start
LH: loop header
LB: loop body
LE: loop exit
PB: predicated region body
PF: predicated region fallthrough
CT: control target
= control target key end

     0   :  { %v406_v0 = vmov 0.0|0.0   ;;  %vm407_vm0 = vmmov 0   ;;  %v408_v4 = vmov 0.0   ;;  %vm40_vm1 = vcmask 261120   ;;  %s533_s1 = inlined_call_operand.vmem [shape: f32[32,64], index: 1, kind: input, shape index: {}]   ;;  %s534_s3 = inlined_call_operand.vmem [shape: f32[64,32], index: 3, kind: input, shape index: {}]   ;;  %s535_s0 = inlined_call_operand.vmem [shape: f32[18,32], index: 0, kind: input, shape index: {}]   ;;  %s536_s2 = inlined_call_operand.vmem [shape: f32[1,64], index: 2, kind: input, shape index: {}]   ;;  %s537_s4 = inlined_call_operand.vmem [shape: f32[1,32], index: 4, kind: input, shape index: {}]   ;;  %s538_s5 = inlined_call_operand.vmem [shape: f32[1,32], index: 5, kind: input, shape index: {}]   ;;  %s539_s6 = inlined_call_operand.vmem [shape: f32[1,32], index: 6, kind: input, shape index: {}]   ;;  %s540_s7 = inlined_call_operand.vmem [shape: f32[18,32], index: 7, kind: output, shape index: {}]  }
   0x1   :  { %379 = vmatprep.subr.bf16.mxu0 %v406_v0  ;;  %v29_v1 = vld [vmem:[%s533_s1] sm:$0xff]  ;;  %v30_v2 = vld [vmem:[%s533_s1 + $0x8] sm:$0xff]  ;;  %v31_v3 = vld [vmem:[%s533_s1 + $0x10] sm:$0xff]  ;;  %345 = vmatprep.mubr.msk.f32.mxu0 %vm407_vm0, %v408_v4  ;;  %vm148_vm2 = vcmask 523264   ;;  %vm247_vm3 = vcmask 254976  }
   0x2   :  { %v380_v5 = vpack.c.bf16 %v30_v2, %v29_v1  ;;  %v32_v6 = vld [vmem:[%s533_s1 + $0x18] sm:$0xff]  ;;  %385 = vmatprep.subr.bf16.mxu1 %v406_v0  ;;  %370 = vmatprep.mubr.msk.f32.mxu1 %vm407_vm0, %v408_v4  ;;  %v133_v7 = vld [vmem:[%s534_s3] sm:$0xff]  ;;  %v134_v8 = vld [vmem:[%s534_s3 + $0x8] sm:$0xff] }
   0x3   :  { %v383_v9 = vpack.c.bf16 %v32_v6, %v31_v3  ;;  %v386_v10 = vpack.c.bf16 %v134_v8, %v133_v7  ;;  %v135_v11 = vld [vmem:[%s534_s3 + $0x10] sm:$0xff]  ;;  %v136_v12 = vld [vmem:[%s534_s3 + $0x18] sm:$0xff]  ;;  %v137_v14 = vld [vmem:[%s534_s3 + $0x20] sm:$0xff] }
   0x4   :  { %381 = vmatpush3.bf16.msra.mxu0 %v380_v5  ;;  %v389_v13 = vpack.c.bf16 %v136_v12, %v135_v11  ;;  %v138_v15 = vld [vmem:[%s534_s3 + $0x28] sm:$0xff]  ;;  %v26_v16 = vld [vmem:[%s535_s0] sm:$0xff]  ;;  %v28_v19 = vld [vmem:[%s535_s0 + $0x10] sm:$0x3] }
   0x5   :  { %382 = vmatprep.subr.bf16.mxu0 %v406_v0  ;;  %387 = vmatpush3.bf16.msra.mxu1 %v386_v10  ;;  %v392_v17 = vpack.c.bf16 %v138_v15, %v137_v14  ;;  %v27_v18 = vld [vmem:[%s535_s0 + $0x8] sm:$0xff]  ;;  %v139_v20 = vld [vmem:[%s534_s3 + $0x30] sm:$0xff]  ;;  %v140_v21 = vld [vmem:[%s534_s3 + $0x38] sm:$0xff] }
   0x6   :  { %388 = vmatprep.subr.bf16.mxu1 %v406_v0  ;;  %v395_v22 = vpack.c.bf16 %v140_v21, %v139_v20  ;;  %v309_v23 = vld [vmem:[%s536_s2] ss:$0 sm:$0xff] }
   0x7   :  { %v313_v36 = vld [vmem:[%s537_s4] ss:$0 sm:$0xff] }
   0x8   :  { %384 = vmatpush3.bf16.msra.mxu0 %v383_v9  ;;  %v318_v15 = vld [vmem:[%s539_s6] ss:$0 sm:$0xff] }
   0x9   :  { %390 = vmatpush3.bf16.msra.mxu1 %v389_v13  ;;  %v317_v13 = vld [vmem:[%s538_s5] ss:$0 sm:$0xff] }
   0xa   :  { %391 = vmatprep.subr.bf16.mxu1 %v406_v0 }
   0xb   :  { %346 = vmatmul.mubr.msk.f32.vlgmr.msra.gmra.mrb[0].mxu0 %vm40_vm1, %v26_v16 }
   0xc   :  { %348 = vmatprep.mubr.msk.f32.mxu0 %vm407_vm0, %v408_v4 }
   0xd   :  { %393 = vmatpush3.bf16.msra.mxu1 %v392_v17 }
   0xe   :  { %394 = vmatprep.subr.bf16.mxu1 %v406_v0 }
   0xf   :  { %349 = vmatmul.mubr.msk.f32.gmra.mrb[2].mxu0 %vm40_vm1, %v27_v18 }
  0x10   :  { %351 = vmatprep.mubr.msk.f32.mxu0 %vm407_vm0, %v408_v4 }
  0x11   :  { %396 = vmatpush3.bf16.msra.mxu1 %v395_v22 }
  0x13   :  { %352 = vmatmul.mubr.msk.f32.gmra.mrb[4].mxu0 %vm40_vm1, %v28_v19 }
  0xde   :  { %v116_v24 = vpop.f32.mrb[0].mxu0 }
  0xdf   :  { %v117_v25 = vadd.f32 %v309_v23, %v116_v24  ;;  %v347_v26 = vpop.f32.mrb[1].mxu0 }
  0xe1   :  { %v130_v27 = vmax.f32 %v117_v25, 0.0 }
  0xe2   :  { %v121_v28 = vpop.f32.mrb[2].mxu0 }
  0xe3   :  { %v122_v29 = vadd.f32 %v309_v23, %v121_v28  ;;  %v350_v30 = vpop.f32.mrb[3].mxu0  ;;  %371 = vmatmul.mubr.msk.f32.vlgmr.msra.gmra.mrb[0].mxu1 %vm148_vm2, %v130_v27 }
  0xe4   :  { %373 = vmatprep.mubr.msk.f32.mxu1 %vm407_vm0, %v408_v4 }
  0xe5   :  { %v131_v31 = vmax.f32 %v122_v29, 0.0 }
  0xe6   :  { %v126_v32 = vpop.f32.mrb[4].mxu0 }
  0xe7   :  { %v127_v33 = vadd.f32 %v309_v23, %v126_v32  ;;  %v353_v34 = vpop.f32.mrb[5].mxu0  ;;  %374 = vmatmul.mubr.msk.f32.gmra.mrb[2].mxu1 %vm148_vm2, %v131_v31 }
  0xe8   :  { %376 = vmatprep.mubr.msk.f32.mxu1 %vm407_vm0, %v408_v4 }
  0xe9   :  { %v132_v35 = vmax.f32 %v127_v33, 0.0 }
  0xeb   :  { %377 = vmatmul.mubr.msk.f32.gmra.mrb[4].mxu1 %vm148_vm2, %v132_v35 }
 0x1b6   :  { %v224_v37 = vpop.f32.mrb[0].mxu1 }
 0x1b7   :  { %v225_v38 = vadd.f32 %v313_v36, %v224_v37  ;;  %v372_v39 = vpop.f32.mrb[1].mxu1 }
 0x1b9   :  { %v238_v40 = vadd.f32 %v225_v38, %v26_v16 }
 0x1ba   :  { %v229_v41 = vpop.f32.mrb[2].mxu1 }
 0x1bb   :  { %v230_v42 = vadd.f32 %v313_v36, %v229_v41  ;;  %v375_v43 = vpop.f32.mrb[3].mxu1  ;;  %v241_v44 = vsel %vm40_vm1, %v238_v40, 0.0 }
 0x1bc   :  { %242 = vadd.xlane.f32.xlu0 %v241_v44 }
 0x1bd   :  { %v239_v45 = vadd.f32 %v230_v42, %v27_v18 }
 0x1be   :  { %v234_v46 = vpop.f32.mrb[4].mxu1 }
 0x1bf   :  { %v235_v47 = vadd.f32 %v313_v36, %v234_v46  ;;  %v378_v48 = vpop.f32.mrb[5].mxu1  ;;  %v244_v49 = vsel %vm40_vm1, %v239_v45, 0.0 }
 0x1c0   :  { %245 = vadd.xlane.f32.xlu0 %v244_v49 }
 0x1c1   :  { %v240_v50 = vadd.f32 %v235_v47, %v28_v19 }
 0x1c3   :  { %v248_v51 = vsel %vm247_vm3, %v240_v50, 0.0 }
 0x1c4   :  { %249 = vadd.xlane.f32.xlu1 %v248_v51 }
 0x249   :  { %v243_v52 = vpop.xlane.xlu0 %242 }
 0x24a   :  { %v252_v53 = vmul.f32 0.03125, %v243_v52 }
 0x24c   :  { %v255_v54 = vsub.f32 %v238_v40, %v252_v53 }
 0x24d   :  { %v246_v55 = vpop.xlane.xlu0 %245 }
 0x24e   :  { %v253_v56 = vmul.f32 0.03125, %v246_v55  ;;  %v258_v57 = vmul.f32 %v255_v54, %v255_v54 }
 0x250   :  { %v256_v58 = vsub.f32 %v239_v45, %v253_v56  ;;  %v261_v59 = vsel %vm40_vm1, %v258_v57, 0.0 }
 0x251   :  { %262 = vadd.xlane.f32.xlu1 %v261_v59  ;;  %v250_v60 = vpop.xlane.xlu1 %249 }
 0x252   :  { %v254_v61 = vmul.f32 0.03125, %v250_v60  ;;  %v259_v62 = vmul.f32 %v256_v58, %v256_v58 }
 0x254   :  { %v257_v63 = vsub.f32 %v240_v50, %v254_v61  ;;  %v264_v0 = vsel %vm40_vm1, %v259_v62, 0.0 }
 0x255   :  { %265 = vadd.xlane.f32.xlu0 %v264_v0 }
 0x256   :  { %v260_v1 = vmul.f32 %v257_v63, %v257_v63 }
 0x258   :  { %v267_v2 = vsel %vm247_vm3, %v260_v1, 0.0 }
 0x259   :  { %268 = vadd.xlane.f32.xlu1 %v267_v2 }
 0x2de   :  { %v263_v3 = vpop.xlane.xlu1 %262 }
 0x2df   :  { %v270_v4 = vmul.f32 0.03125, %v263_v3 }
 0x2e1   :  { %v273_v5 = vadd.f32 1e-05, %v270_v4 }
 0x2e2   :  { %v266_v6 = vpop.xlane.xlu0 %265 }
 0x2e3   :  { %400 = vrsqrt.f32 %v273_v5  ;;  %v271_v7 = vmul.f32 0.03125, %v266_v6 }
 0x2e5   :  { %v274_v8 = vadd.f32 1e-05, %v271_v7 }
 0x2e6   :  { %v269_v9 = vpop.xlane.xlu1 %268 }
 0x2e7   :  { %402 = vrsqrt.f32 %v274_v8  ;;  %v272_v10 = vmul.f32 0.03125, %v269_v9 }
 0x2e9   :  { %v275_v11 = vadd.f32 1e-05, %v272_v10 }
 0x2eb   :  { %404 = vrsqrt.f32 %v275_v11 }
 0x2ed   :  { %v401_v12 = vpop.eup %400 }
 0x2ee   :  { %v279_v14 = vmul.f32 %v401_v12, %v255_v54 }
 0x2f0   :  { %v289_v16 = vmul.f32 %v317_v13, %v279_v14 }
 0x2f1   :  { %v403_v17 = vpop.eup %402 }
 0x2f2   :  { %v299_v18 = vadd.f32 %v318_v15, %v289_v16  ;;  %v280_v19 = vmul.f32 %v403_v17, %v256_v58 }
 0x2f4   :  { %302 = vst.msk [vmem:[%s540_s7] sm:$0xff] %vm40_vm1, %v299_v18  ;;  %v290_v20 = vmul.f32 %v317_v13, %v280_v19 }
 0x2f5   :  { %v405_v21 = vpop.eup %404 }
 0x2f6   :  { %v300_v22 = vadd.f32 %v318_v15, %v290_v20  ;;  %v281_v23 = vmul.f32 %v405_v21, %v257_v63 }
 0x2f8   :  { %303 = vst.msk [vmem:[%s540_s7 + $0x8] sm:$0xff] %vm40_vm1, %v300_v22  ;;  %v291_v24 = vmul.f32 %v317_v13, %v281_v23 }
 0x2fa   :  { %v301_v25 = vadd.f32 %v318_v15, %v291_v24 }
 0x2fc   :  { %304 = vst.msk [vmem:[%s540_s7 + $0x10] sm:$0x3] %vm247_vm3, %v301_v25 }

// kernel: transformer_fwd.10
= control target key start
LH: loop header
LB: loop body
LE: loop exit
PB: predicated region body
PF: predicated region fallthrough
CT: control target
= control target key end

     0   :  { %v157_v0 = vmov 0.0|0.0   ;;  %vm158_vm0 = vmmov 0   ;;  %v159_v6 = vmov 0.0   ;;  %vm18_vm1 = vcmask 261120   ;;  %s208_s1 = inlined_call_operand.vmem [shape: f32[32,96], index: 1, kind: input, shape index: {}]   ;;  %s209_s0 = inlined_call_operand.vmem [shape: f32[18,32], index: 0, kind: input, shape index: {}]   ;;  %s210_s2 = inlined_call_operand.vmem [shape: f32[18,96], index: 2, kind: output, shape index: {}]  }
   0x1   :  { %150 = vmatprep.subr.bf16.mxu1 %v157_v0  ;;  %v14_v1 = vld [vmem:[%s208_s1] sm:$0xff]  ;;  %v15_v2 = vld [vmem:[%s208_s1 + $0x8] sm:$0xff]  ;;  %144 = vmatprep.subr.bf16.mxu0 %v157_v0  ;;  %v16_v3 = vld [vmem:[%s208_s1 + $0x10] sm:$0xff]  ;;  %vm108_vm2 = vcmask 785408   ;;  %vm111_vm3 = vcmask 779264  }
   0x2   :  { %v145_v4 = vpack.c.bf16 %v15_v2, %v14_v1  ;;  %v17_v5 = vld [vmem:[%s208_s1 + $0x18] sm:$0xff]  ;;  %138 = vmatprep.mubr.msk.f32.mxu1 %vm158_vm0, %v159_v6  ;;  %135 = vmatprep.mubr.msk.f32.mxu0 %vm158_vm0, %v159_v6  ;;  %v12_v8 = vld [vmem:[%s209_s0 + $0x8] sm:$0xff]  ;;  %v11_v9 = vld [vmem:[%s209_s0] sm:$0xff] }
   0x3   :  { %v148_v7 = vpack.c.bf16 %v17_v5, %v16_v3  ;;  %v13_v10 = vld [vmem:[%s209_s0 + $0x10] sm:$0x3] }
   0x4   :  { %152 = vmatpush3.bf16.msra.mxu1 %v145_v4  ;;  %146 = vmatpush3.bf16.msra.mxu0 %v145_v4 }
   0x5   :  { %151 = vmatprep.subr.bf16.mxu1 %v157_v0  ;;  %147 = vmatprep.subr.bf16.mxu0 %v157_v0 }
   0x8   :  { %153 = vmatpush3.bf16.msra.mxu1 %v148_v7  ;;  %149 = vmatpush3.bf16.msra.mxu0 %v148_v7 }
   0xb   :  { %139 = vmatmul.mubr.msk.f32.vlgmr.msra.gmra.mrb[0].mxu1 %vm18_vm1, %v12_v8  ;;  %136 = vmatmul.mubr.msk.f32.vlgmr.msra.gmra.mrb[0].mxu0 %vm18_vm1, %v11_v9 }
   0xc   :  { %141 = vmatprep.mubr.msk.f32.mxu1 %vm158_vm0, %v159_v6 }
   0xf   :  { %142 = vmatmul.mubr.msk.f32.gmra.mrb[2].mxu1 %vm18_vm1, %v13_v10 }
  0xde   :  { %v99_v11 = vpop.f32.mrb[0].mxu1  ;;  %v94_v12 = vpop.f32.mrb[0].mxu0 }
  0xdf   :  { %110 = vst.msk [vmem:[%s210_s2 + $0x8] sm:$0xff] %vm108_vm2, %v99_v11  ;;  %v140_v13 = vpop.f32.mrb[1].mxu1  ;;  %109 = vst.msk [vmem:[%s210_s2] sm:$0xff] %vm108_vm2, %v94_v12  ;;  %v137_v14 = vpop.f32.mrb[1].mxu0 }
  0xe2   :  { %v104_v15 = vpop.f32.mrb[2].mxu1 }
  0xe3   :  { %112 = vst.msk [vmem:[%s210_s2 + $0x10] sm:$0x3] %vm111_vm3, %v104_v15  ;;  %v143_v16 = vpop.f32.mrb[3].mxu1 }

// kernel: transformer_fwd.16
= control target key start
LH: loop header
LB: loop body
LE: loop exit
PB: predicated region body
PF: predicated region fallthrough
CT: control target
= control target key end

     0   :  { %v157_v0 = vmov 0.0|0.0   ;;  %vm158_vm0 = vmmov 0   ;;  %v159_v6 = vmov 0.0   ;;  %vm18_vm1 = vcmask 261120   ;;  %s208_s1 = inlined_call_operand.vmem [shape: f32[32,64], index: 1, kind: input, shape index: {}]   ;;  %s209_s0 = inlined_call_operand.vmem [shape: f32[18,32], index: 0, kind: input, shape index: {}]   ;;  %s210_s2 = inlined_call_operand.vmem [shape: f32[18,64], index: 2, kind: output, shape index: {}]  }
   0x1   :  { %150 = vmatprep.subr.bf16.mxu1 %v157_v0  ;;  %v14_v1 = vld [vmem:[%s208_s1] sm:$0xff]  ;;  %v15_v2 = vld [vmem:[%s208_s1 + $0x8] sm:$0xff]  ;;  %144 = vmatprep.subr.bf16.mxu0 %v157_v0  ;;  %v16_v3 = vld [vmem:[%s208_s1 + $0x10] sm:$0xff]  ;;  %vm108_vm2 = vcmask 523264   ;;  %vm111_vm3 = vcmask 517120  }
   0x2   :  { %v145_v4 = vpack.c.bf16 %v15_v2, %v14_v1  ;;  %v17_v5 = vld [vmem:[%s208_s1 + $0x18] sm:$0xff]  ;;  %138 = vmatprep.mubr.msk.f32.mxu1 %vm158_vm0, %v159_v6  ;;  %135 = vmatprep.mubr.msk.f32.mxu0 %vm158_vm0, %v159_v6  ;;  %v12_v8 = vld [vmem:[%s209_s0 + $0x8] sm:$0xff]  ;;  %v11_v9 = vld [vmem:[%s209_s0] sm:$0xff] }
   0x3   :  { %v148_v7 = vpack.c.bf16 %v17_v5, %v16_v3  ;;  %v13_v10 = vld [vmem:[%s209_s0 + $0x10] sm:$0x3] }
   0x4   :  { %152 = vmatpush3.bf16.msra.mxu1 %v145_v4  ;;  %146 = vmatpush3.bf16.msra.mxu0 %v145_v4 }
   0x5   :  { %151 = vmatprep.subr.bf16.mxu1 %v157_v0  ;;  %147 = vmatprep.subr.bf16.mxu0 %v157_v0 }
   0x8   :  { %153 = vmatpush3.bf16.msra.mxu1 %v148_v7  ;;  %149 = vmatpush3.bf16.msra.mxu0 %v148_v7 }
   0xb   :  { %139 = vmatmul.mubr.msk.f32.vlgmr.msra.gmra.mrb[0].mxu1 %vm18_vm1, %v12_v8  ;;  %136 = vmatmul.mubr.msk.f32.vlgmr.msra.gmra.mrb[0].mxu0 %vm18_vm1, %v11_v9 }
   0xc   :  { %141 = vmatprep.mubr.msk.f32.mxu1 %vm158_vm0, %v159_v6 }
   0xf   :  { %142 = vmatmul.mubr.msk.f32.gmra.mrb[2].mxu1 %vm18_vm1, %v13_v10 }
  0xde   :  { %v99_v11 = vpop.f32.mrb[0].mxu1  ;;  %v94_v12 = vpop.f32.mrb[0].mxu0 }
  0xdf   :  { %110 = vst.msk [vmem:[%s210_s2 + $0x8] sm:$0xff] %vm108_vm2, %v99_v11  ;;  %v140_v13 = vpop.f32.mrb[1].mxu1  ;;  %109 = vst.msk [vmem:[%s210_s2] sm:$0xff] %vm108_vm2, %v94_v12  ;;  %v137_v14 = vpop.f32.mrb[1].mxu0 }
  0xe2   :  { %v104_v15 = vpop.f32.mrb[2].mxu1 }
  0xe3   :  { %112 = vst.msk [vmem:[%s210_s2 + $0x10] sm:$0x3] %vm111_vm3, %v104_v15  ;;  %v143_v16 = vpop.f32.mrb[3].mxu1 }

// kernel: transformer_fwd.11
= control target key start
LH: loop header
LB: loop body
LE: loop exit
PB: predicated region body
PF: predicated region fallthrough
CT: control target
= control target key end

     0   :  { %s2529_s27 = smov 0   ;;  %s2531_s28 = smov 0   ;;  %s2920_s0 = inlined_call_operand.vmem [shape: f32[2,4,9,8], index: 0, kind: input, shape index: {}]   ;;  %s2921_s1 = inlined_call_operand.vmem [shape: f32[2,4,9,8], index: 1, kind: input, shape index: {}]   ;;  %s2922_s2 = inlined_call_operand.vmem [shape: f32[2,4,9,8], index: 2, kind: input, shape index: {}]   ;;  %s2923_s3 = inlined_call_operand.vmem [shape: f32[2,1,9], index: 3, kind: input, shape index: {}]   ;;  %s2924_s4 = inlined_call_operand.vmem [shape: f32[2,9,32], index: 4, kind: input, shape index: {}]   ;;  %s2925_s5 = inlined_call_operand.vmem [shape: f32[4,8,32], index: 5, kind: input, shape index: {}]   ;;  %s2926_s6 = inlined_call_operand.vmem [shape: f32[1,32], index: 6, kind: input, shape index: {}]   ;;  %s2927_s7 = inlined_call_operand.vmem [shape: f32[1,32], index: 7, kind: input, shape index: {}]   ;;  %s2928_s8 = inlined_call_operand.vmem [shape: f32[2,9,32], index: 8, kind: output, shape index: {}]  }
   0x1   :  { %s2533_s29 = smov 0  }
   0x2 LB: > { %s37_s30 = sadd.s32 1, %s2474_s28  ;;  %p2150_p0 = scmp.ge.s32.totalorder %s2478_s29, 1  ;;  %s2478_s29 = sphi %s2533_s29, %s18_s29   ;;  %s2474_s28 = sphi %s2531_s28, %s2934_s28   ;;  %s2470_s27 = sphi %s2529_s27, %s2933_s27  }
   0x3   : > { %p39_p1 = scmp.ge.s32.totalorder %s37_s30, 2  ;;  %p354_p2 = scmp.lt.s32.totalorder %s2478_s29, 3 }
   0x5   : > { %s2936_s30 = smov (%p39_p1, %s37_s30), 0  ;;  %p355_p3 = pnand %p2150_p0, %p354_p2 }
   0x6   : > { %p430_p4 = scmp.lt.s32.totalorder (!%p355_p3), %s2470_s27, 1  ;;  %vm507_vm0 = vcmask (!%p355_p3), 64512   ;;  %v2480_v21 = vmov (!%p355_p3), 0   ;;  %vm491_vm2 = vcmask (!%p355_p3), 0   ;;  %v2481_v22 = vmov (!%p355_p3), -inf  }
   0x7   : > { %358 = sbr.rel (%p355_p3) target bundleno = 1379 (0x563), region = 52  ;;  %vm2558_vm1 = vmpackc.low (!%p355_p3), %vm507_vm0, %vm507_vm0  ;;  %2403 = vset.pattern.permute.xlu1 (!%p355_p3), %v2480_v21  ;;  %2402 = vset.pattern.permute.xlu0 (!%p355_p3), %v2480_v21  ;;  %494 = vst.msk [vmem:[#allocation2 + $0x18] sm:$0x1] (!%p355_p3), %vm491_vm2, %v2481_v22  ;;  %v893_v23 = vlaneseq (!%p355_p3)  ;;  %vm918_vm5 = vcmask (!%p355_p3), 65536   ;;  %vm914_vm6 = vcmask (!%p355_p3), 72704   ;;  %vm489_vm7 = vcmask (!%p355_p3), 7168  }
   0x8   : > { %492 = vst.msk [vmem:[#allocation2 + $0x8] sm:$0x1] (!%p355_p3), %vm491_vm2, %v2481_v22  ;;  %496 = vst.msk [vmem:[#allocation2 + $0x28] sm:$0x1] (!%p355_p3), %vm491_vm2, %v2481_v22  ;;  %v2482_v53 = vmov (!%p355_p3), 0.0   ;;  %vm1156_vm8 = vcmask (!%p355_p3), 1040384  }
   0x9   : > { %498 = vst.msk [vmem:[#allocation2 + $0x38] sm:$0x1] (!%p355_p3), %vm491_vm2, %v2481_v22  ;;  %v894_v25 = vshrl.u32 (!%p355_p3), %v893_v23, 7  ;;  %500 = vst.msk [vmem:[#allocation3 + $0x8] sm:$0x1] (!%p355_p3), %vm491_vm2, %v2482_v53  ;;  %vm2483_vm9 = vmmov (!%p355_p3), 1  }
   0xa   : > { %493 = vst.msk [vmem:[#allocation2 + $0x10] sm:$0xff] (!%p355_p3), %vm489_vm7, %v2481_v22  ;;  %490 = vst.msk [vmem:[#allocation2] sm:$0xff] (!%p355_p3), %vm489_vm7, %v2481_v22  ;;  %vm509_vm11 = vcmask (!%p355_p3), 57344   ;;  %vm1931_vm12 = vcmask (!%p355_p3), 253952   ;;  %vm1923_vm13 = vcmask (!%p355_p3), 261120  }
   0xb   : > { %v895_v26 = vsub.s32 (!%p355_p3), 0, %v894_v25  ;;  %495 = vst.msk [vmem:[#allocation2 + $0x20] sm:$0xff] (!%p355_p3), %vm489_vm7, %v2481_v22  ;;  %497 = vst.msk [vmem:[#allocation2 + $0x30] sm:$0xff] (!%p355_p3), %vm489_vm7, %v2481_v22 }
   0xc   : > { %499 = vst.msk [vmem:[#allocation3] sm:$0xff] (!%p355_p3), %vm489_vm7, %v2482_v53  ;;  %501 = vst.msk [vmem:[#allocation3 + $0x10] sm:$0xff] (!%p355_p3), %vm489_vm7, %v2482_v53 }
   0xd   : > { %502 = vst.msk [vmem:[#allocation3 + $0x18] sm:$0x1] (!%p355_p3), %vm491_vm2, %v2482_v53  ;;  %504 = vst.msk [vmem:[#allocation3 + $0x28] sm:$0x1] (!%p355_p3), %vm491_vm2, %v2482_v53 }
   0xe   : > { %s2938_s27 = smov (!%p430_p4, %s2470_s27), 1  ;;  %503 = vst.msk [vmem:[#allocation3 + $0x20] sm:$0xff] %vm489_vm7, %v2482_v53  ;;  %505 = vst.msk [vmem:[#allocation3 + $0x30] sm:$0xff] %vm489_vm7, %v2482_v53  ;;  %v2678_v55 = vld [vmem:[#allocation2 + $0x18] sm:$0x1] }
   0xf   : > { %s2550_s9 = sshll.u32 %s2938_s27, 6  ;;  %s464_s18 = scalar_lea.vmem %s2923_s3, %s2938_s27  ;;  %506 = vst.msk [vmem:[#allocation3 + $0x38] sm:$0x1] %vm491_vm2, %v2482_v53  ;;  %v2676_v54 = vld [vmem:[#allocation2 + $0x8] sm:$0x1]  ;;  %vm2758_vm10 = vmpackc.low %vm1156_vm8, %vm2483_vm9 }
  0x10   : > { %s447_s12 = scalar_lea.vmem %s2921_s1, %s2550_s9  ;;  %s2566_s15 = scalar_lea.vmem %s2920_s0, %s2550_s9  ;;  %v890_v24 = vld [vmem:[%s464_s18] sm:$0x1]  ;;  %508 = vst.msk [vmem:[#allocation4] sm:$0xff] %vm507_vm0, %v2482_v53  ;;  %511 = vst.msk [vmem:[#allocation4 + $0x10] sm:$0xff] %vm507_vm0, %v2482_v53 }
  0x11   : > { %v525_v1 = vld [vmem:[%s447_s12] sm:$0xff]  ;;  %v526_v2 = vld [vmem:[%s447_s12 + $0x8] sm:$0x1]  ;;  %v527_v3 = vld [vmem:[%s447_s12 + $0x10] sm:$0xff]  ;;  %vm891_vm3 = vcmp.ne.f32.partialorder %v890_v24, 0.0  ;;  %513 = vst.msk [vmem:[#allocation4 + $0x20] sm:$0xff] %vm507_vm0, %v2482_v53  ;;  %s457_s21 = scalar_lea.vmem %s2922_s2, %s2550_s9 }
  0x12   : > { %v2326_v4 = vpack.c.bf16 %v526_v2, %v525_v1  ;;  %v528_v5 = vld [vmem:[%s447_s12 + $0x18] sm:$0x1]  ;;  %v517_v6 = vld [vmem:[%s2566_s15] sm:$0xff]  ;;  %v519_v7 = vld [vmem:[%s2566_s15 + $0x10] sm:$0xff]  ;;  %v892_v27 = vsel %vm891_vm3, 1, %v2480_v21  ;;  %515 = vst.msk [vmem:[#allocation4 + $0x30] sm:$0xff] %vm507_vm0, %v2482_v53 }
  0x13   : > { %v2332_v8 = vpack.c.bf16 %v528_v5, %v527_v3  ;;  %2254 = vmatprep.mubr.msk.f32.mxu0 %vm507_vm0, %v517_v6  ;;  %2261 = vmatprep.mubr.msk.f32.mxu1 %vm507_vm0, %v519_v7  ;;  %v529_v9 = vld [vmem:[%s447_s12 + $0x20] sm:$0xff]  ;;  %v530_v10 = vld [vmem:[%s447_s12 + $0x28] sm:$0x1]  ;;  %v531_v11 = vld [vmem:[%s447_s12 + $0x30] sm:$0xff]  ;;  %v896_v28 = vrot.slane %v892_v27, %v895_v26  ;;  %510 = vst.msk [vmem:[#allocation4 + $0x8] sm:$0x1] %vm509_vm11, %v2482_v53 }
  0x14   : > { %2328 = vmatprep.subr.msk.bf16.mxu0 %vm2558_vm1, %v2326_v4  ;;  %v2338_v12 = vpack.c.bf16 %v530_v10, %v529_v9  ;;  %v532_v13 = vld [vmem:[%s447_s12 + $0x38] sm:$0x1]  ;;  %v518_v15 = vld [vmem:[%s2566_s15 + $0x8] sm:$0x1]  ;;  %v521_v17 = vld [vmem:[%s2566_s15 + $0x20] sm:$0xff]  ;;  %s2204_s12 = sshll.u32 %s2938_s27, 4 }
  0x15   : > { %2334 = vmatprep.subr.msk.bf16.mxu1 %vm2558_vm1, %v2332_v8  ;;  %2331 = vmatpush3.bf16.xpose.msk.msra.mxu0 %vm2558_vm1, %v2326_v4  ;;  %v2344_v14 = vpack.c.bf16 %v532_v13, %v531_v11  ;;  %v520_v16 = vld [vmem:[%s2566_s15 + $0x18] sm:$0x1]  ;;  %v523_v18 = vld [vmem:[%s2566_s15 + $0x30] sm:$0xff]  ;;  %v522_v19 = vld [vmem:[%s2566_s15 + $0x28] sm:$0x1]  ;;  %vm897_vm4 = vcmp.eq.s32.totalorder %v896_v28, 1  ;;  %s483_s22 = scalar_lea.vmem %s2928_s8, %s2204_s12 }
  0x16   : > { %2337 = vmatpush3.bf16.xpose.msk.msra.mxu1 %vm2558_vm1, %v2332_v8  ;;  %2340 = vmatprep.subr.msk.bf16.mxu0 %vm2558_vm1, %v2338_v12  ;;  %v524_v20 = vld [vmem:[%s2566_s15 + $0x38] sm:$0x1]  ;;  %v2686_v60 = vld [vmem:[#allocation2] sm:$0xff]  ;;  %v2693_v62 = vld [vmem:[#allocation2 + $0x10] sm:$0xff]  ;;  %512 = vst.msk [vmem:[#allocation4 + $0x18] sm:$0x1] %vm509_vm11, %v2482_v53  ;;  %s473_s15 = scalar_lea.vmem %s2924_s4, %s2204_s12 }
  0x17   : > { %2346 = vmatprep.subr.msk.bf16.mxu1 %vm2558_vm1, %v2344_v14  ;;  %v2711_v5 = vld [vmem:[#allocation2 + $0x28] sm:$0x1]  ;;  %v2713_v6 = vld [vmem:[#allocation2 + $0x20] sm:$0xff]  ;;  %v2728_v13 = vld [vmem:[#allocation2 + $0x30] sm:$0xff]  ;;  %514 = vst.msk [vmem:[#allocation4 + $0x28] sm:$0x1] %vm509_vm11, %v2482_v53 }
  0x18   : > { %v533_v22 = vld [vmem:[%s457_s21] sm:$0xff]  ;;  %v534_v23 = vld [vmem:[%s457_s21 + $0x8] sm:$0x1]  ;;  %v535_v26 = vld [vmem:[%s457_s21 + $0x10] sm:$0xff]  ;;  %516 = vst.msk [vmem:[#allocation4 + $0x38] sm:$0x1] %vm509_vm11, %v2482_v53 }
  0x19   : > { %v2350_v24 = vpack.c.bf16 %v534_v23, %v533_v22  ;;  %v536_v27 = vld [vmem:[%s457_s21 + $0x18] sm:$0x1] }
  0x1a   : > { %v2356_v28 = vpack.c.bf16 %v536_v27, %v535_v26 }
  0x1c   : > { %2255 = vmatmul.mubr.msk.f32.vlgmr.msra.gmra.mrb[0].mxu0 %vm507_vm0, %v518_v15 }
  0x1d   : > { %2262 = vmatmul.mubr.msk.f32.vlgmr.msra.gmra.mrb[0].mxu1 %vm507_vm0, %v520_v16  ;;  %2343 = vmatpush3.bf16.xpose.msk.msra.mxu0 %vm2558_vm1, %v2338_v12  ;;  %v2726_v12 = vld [vmem:[#allocation2 + $0x38] sm:$0x1] }
  0x1e   : > { %2268 = vmatprep.mubr.msk.f32.mxu0 %vm507_vm0, %v521_v17  ;;  %2349 = vmatpush3.bf16.xpose.msk.msra.mxu1 %vm2558_vm1, %v2344_v14 }
  0x1f   : > { %2275 = vmatprep.mubr.msk.f32.mxu1 %vm507_vm0, %v523_v18  ;;  %2352 = vmatprep.subr.msk.bf16.mxu0 %vm2758_vm10, %v2350_v24 }
  0x20   : > { %2358 = vmatprep.subr.msk.bf16.mxu1 %vm2758_vm10, %v2356_v28 }
  0x24   : > { %2269 = vmatmul.mubr.msk.f32.vlgmr.msra.gmra.mrb[2].mxu0 %vm507_vm0, %v522_v19 }
  0x25   : > { %2276 = vmatmul.mubr.msk.f32.vlgmr.msra.gmra.mrb[2].mxu1 %vm507_vm0, %v524_v20  ;;  %2355 = vmatpush3.bf16.msk.msra.mxu0 %vm2758_vm10, %v2350_v24 }
  0x26   : > { %2361 = vmatpush3.bf16.msk.msra.mxu1 %vm2758_vm10, %v2356_v28 }
  0xef   : > { %v2256_v29 = vpop.f32.mrb[0].mxu0 }
  0xf0   : > { %v2609_v30 = vsel %vm897_vm4, %v2256_v29, -1.767767e+19  ;;  %v2263_v31 = vpop.f32.mrb[0].mxu1  ;;  %v620_v32 = vpop.f32.mrb[1].mxu0  ;;  %v537_v29 = vld [vmem:[%s457_s21 + $0x20] sm:$0xff] }
  0xf1   : > { %v2612_v33 = vsel %vm897_vm4, %v2263_v31, -1.767767e+19  ;;  %v2615_v34 = vsel %vm897_vm4, %v620_v32, -1.767767e+19  ;;  %v919_v35 = vsel %vm918_vm5, %v2609_v30, -inf  ;;  %v707_v36 = vpop.f32.mrb[1].mxu1 }
  0xf2   : > { %v925_v37 = vsel %vm918_vm5, %v2612_v33, -inf  ;;  %920 = vmax.xlane.f32.xlu0 %v919_v35  ;;  %v2622_v38 = vsel %vm897_vm4, %v707_v36, -1.767767e+19  ;;  %v915_v40 = vsel %vm914_vm6, %v2615_v34, -inf  ;;  %v538_v31 = vld [vmem:[%s457_s21 + $0x28] sm:$0x1] }
  0xf3   : > { %926 = vmax.xlane.f32.xlu1 %v925_v37  ;;  %v922_v39 = vsel %vm914_vm6, %v2622_v38, -inf  ;;  %v2362_v32 = vpack.c.bf16 %v538_v31, %v537_v29  ;;  %v539_v35 = vld [vmem:[%s457_s21 + $0x30] sm:$0xff]  ;;  %v540_v36 = vld [vmem:[%s457_s21 + $0x38] sm:$0x1] }
  0xf4   : > { %v2368_v37 = vpack.c.bf16 %v540_v36, %v539_v35 }
  0xf5   : > { %2364 = vmatprep.subr.msk.bf16.mxu0 %vm2758_vm10, %v2362_v32 }
  0xf6   : > { %916 = vmax.xlane.f32.xlu0 %v915_v40  ;;  %2370 = vmatprep.subr.msk.bf16.mxu1 %vm2758_vm10, %v2368_v37 }
  0xf7   : > { %923 = vmax.xlane.f32.xlu1 %v922_v39  ;;  %v2270_v41 = vpop.f32.mrb[2].mxu0 }
  0xf8   : > { %v2629_v42 = vsel %vm897_vm4, %v2270_v41, -1.767767e+19  ;;  %v794_v43 = vpop.f32.mrb[3].mxu0  ;;  %v2277_v44 = vpop.f32.mrb[2].mxu1 }
  0xf9   : > { %v2632_v45 = vsel %vm897_vm4, %v794_v43, -1.767767e+19  ;;  %v931_v46 = vsel %vm918_vm5, %v2629_v42, -inf  ;;  %v2637_v47 = vsel %vm897_vm4, %v2277_v44, -1.767767e+19  ;;  %v881_v48 = vpop.f32.mrb[3].mxu1 }
  0xfa   : > { %v928_v49 = vsel %vm914_vm6, %v2632_v45, -inf  ;;  %v2642_v50 = vsel %vm897_vm4, %v881_v48, -1.767767e+19  ;;  %v937_v51 = vsel %vm918_vm5, %v2637_v47, -inf }
  0xfb   : > { %932 = vmax.xlane.f32.xlu1 %v931_v46  ;;  %929 = vmax.xlane.f32.xlu0 %v928_v49  ;;  %v934_v52 = vsel %vm914_vm6, %v2642_v50, -inf }
  0xff   : > { %938 = vmax.xlane.f32.xlu1 %v937_v51  ;;  %935 = vmax.xlane.f32.xlu0 %v934_v52 }
 0x17f   : > { %v921_v56 = vpop.xlane.xlu0 %920 }
 0x180   : > { %v927_v57 = vpop.xlane.xlu1 %926  ;;  %v2681_v58 = vmax.f32 %v2676_v54, %v921_v56 }
 0x181   : > { %v2684_v59 = vmax.f32 %v2678_v55, %v927_v57 }
 0x182   : > { %v949_v61 = vsub.f32 %v2676_v54, %v2681_v58  ;;  %1505 = vst.msk [vmem:[#allocation2 + $0x8] sm:$0x1] %vm491_vm2, %v2681_v58  ;;  %979 = vperm.xlu1 %2403, %v2681_v58  }
 0x183   : > { %v951_v63 = vsub.f32 %v2678_v55, %v2684_v59  ;;  %1507 = vst.msk [vmem:[#allocation2 + $0x18] sm:$0x1] %vm491_vm2, %v2684_v59  ;;  %v917_v0 = vpop.xlane.xlu0 %916 }
 0x184   : > { %v924_v1 = vpop.xlane.xlu1 %923  ;;  %v2700_v2 = vmax.f32 %v2686_v60, %v917_v0 }
 0x185   : > { %v2703_v3 = vmax.f32 %v2693_v62, %v924_v1 }
 0x186   : > { %v948_v4 = vsub.f32 %v2686_v60, %v2700_v2  ;;  %1504 = vst.msk [vmem:[#allocation2] sm:$0xff] %vm489_vm7, %v2700_v2  ;;  %989 = vperm.xlu1 %2403, %v2684_v59   ;;  %974 = vperm.xlu0 %2402, %v2700_v2  }
 0x187   : > { %v950_v7 = vsub.f32 %v2693_v62, %v2703_v3  ;;  %1506 = vst.msk [vmem:[#allocation2 + $0x10] sm:$0xff] %vm489_vm7, %v2703_v3 }
 0x188   : > { %v933_v8 = vpop.xlane.xlu1 %932  ;;  %v930_v9 = vpop.xlane.xlu0 %929 }
 0x189   : > { %v2720_v10 = vmax.f32 %v2711_v5, %v933_v8  ;;  %v2723_v11 = vmax.f32 %v2713_v6, %v930_v9 }
 0x18a   : > { %984 = vperm.xlu1 %2403, %v2703_v3  }
 0x18b   : > { %v953_v14 = vsub.f32 %v2711_v5, %v2720_v10  ;;  %1509 = vst.msk [vmem:[#allocation2 + $0x28] sm:$0x1] %vm491_vm2, %v2720_v10  ;;  %v952_v15 = vsub.f32 %v2713_v6, %v2723_v11  ;;  %v1037_v5 = vld [vmem:[#allocation3 + $0x8] sm:$0x1] }
 0x18c   : > { %1508 = vst.msk [vmem:[#allocation2 + $0x20] sm:$0xff] %vm489_vm7, %v2723_v11  ;;  %v939_v16 = vpop.xlane.xlu1 %938  ;;  %v936_v17 = vpop.xlane.xlu0 %935 }
 0x18d   : > { %v2743_v18 = vmax.f32 %v2726_v12, %v939_v16  ;;  %v2746_v19 = vmax.f32 %v2728_v13, %v936_v17  ;;  %v964_v54 = vmul.f32 1.442695, %v952_v15  ;;  %v966_v58 = vmul.f32 1.442695, %v953_v14  ;;  %v1038_v14 = vld [vmem:[#allocation3 + $0x10] sm:$0xff] }
 0x18e   : > { %999 = vperm.xlu1 %2403, %v2720_v10   ;;  %v1039_v10 = vld [vmem:[#allocation3 + $0x18] sm:$0x1] }
 0x18f   : > { %v955_v20 = vsub.f32 %v2726_v12, %v2743_v18  ;;  %1511 = vst.msk [vmem:[#allocation2 + $0x38] sm:$0x1] %vm491_vm2, %v2743_v18  ;;  %v954_v21 = vsub.f32 %v2728_v13, %v2746_v19 }
 0x190   : > { %1510 = vst.msk [vmem:[#allocation2 + $0x30] sm:$0xff] %vm489_vm7, %v2746_v19 }
 0x191   : > { %v968_v55 = vmul.f32 1.442695, %v954_v21  ;;  %v970_v59 = vmul.f32 1.442695, %v955_v20 }
 0x192   : > { %994 = vperm.xlu1 %2403, %v2723_v11  }
 0x196   : > { %1004 = vperm.xlu1 %2403, %v2746_v19  }
 0x19a   : > { %1009 = vperm.xlu1 %2403, %v2743_v18   ;;  %v1036_v18 = vld [vmem:[#allocation3] sm:$0xff] }
 0x201   : > { %v980_v39 = vpop.permute.xlu1 %979 }
 0x202   : > { %v1013_v40 = vsub.f32 %v2609_v30, %v980_v39 }
 0x204   : > { %v1022_v41 = vmul.f32 1.442695, %v1013_v40  ;;  %v958_v40 = vmul.f32 1.442695, %v949_v61 }
 0x205   : > { %v990_v43 = vpop.permute.xlu1 %989  ;;  %v975_v44 = vpop.permute.xlu0 %974 }
 0x206   : > { %2404 = vpow2.f32 %v1022_v41  ;;  %v1015_v46 = vsub.f32 %v2612_v33, %v990_v43  ;;  %v1012_v48 = vsub.f32 %v2615_v34, %v975_v44  ;;  %v956_v41 = vmul.f32 1.442695, %v948_v4 }
 0x207   : > { %v960_v43 = vmul.f32 1.442695, %v950_v7  ;;  %v962_v44 = vmul.f32 1.442695, %v951_v63 }
 0x208   : > { %v1026_v49 = vmul.f32 1.442695, %v1015_v46  ;;  %v1020_v51 = vmul.f32 1.442695, %v1012_v48 }
 0x209   : > { %v985_v52 = vpop.permute.xlu1 %984 }
 0x20a   : > { %2406 = vpow2.f32 %v1026_v49  ;;  %v1014_v56 = vsub.f32 %v2622_v38, %v985_v52  ;;  %v1041_v49 = vld [vmem:[#allocation3 + $0x28] sm:$0x1] }
 0x20b   : > { %2408 = vpow2.f32 %v1020_v51 }
 0x20c   : > { %v1024_v57 = vmul.f32 1.442695, %v1014_v56 }
 0x20d   : > { %v1000_v0 = vpop.permute.xlu1 %999 }
 0x20e   : > { %2410 = vpow2.f32 %v1024_v57  ;;  %v1017_v30 = vsub.f32 %v2629_v42, %v1000_v0  ;;  %v1040_v57 = vld [vmem:[#allocation3 + $0x20] sm:$0xff] }
 0x210   : > { %v2405_v1 = vpop.eup %2404  ;;  %v1030_v8 = vmul.f32 1.442695, %v1017_v30 }
 0x211   : > { %v995_v9 = vpop.permute.xlu1 %994  ;;  %v1055_v16 = vsel %vm918_vm5, %v2405_v1, 0.0 }
 0x212   : > { %2412 = vpow2.f32 %v1030_v8  ;;  %v1016_v33 = vsub.f32 %v2632_v45, %v995_v9  ;;  %1056 = vadd.xlane.f32.xlu0 %v1055_v16  ;;  %v1042_v16 = vld [vmem:[#allocation3 + $0x30] sm:$0xff] }
 0x214   : > { %v2407_v34 = vpop.eup %2406  ;;  %v1028_v17 = vmul.f32 1.442695, %v1016_v33 }
 0x215   : > { %v2409_v22 = vpop.eup %2408  ;;  %v1005_v23 = vpop.permute.xlu1 %1004  ;;  %v1061_v38 = vsel %vm918_vm5, %v2407_v34, 0.0 }
 0x216   : > { %2414 = vpow2.f32 %v1028_v17  ;;  %v1018_v24 = vsub.f32 %v2642_v50, %v1005_v23  ;;  %2282 = vmatprep.mubr.msk.f32.mxu0 %vm914_vm6, %v2409_v22  ;;  %1062 = vadd.xlane.f32.xlu1 %v1061_v38  ;;  %v1052_v50 = vsel %vm914_vm6, %v2409_v22, 0.0  ;;  %v1043_v23 = vld [vmem:[#allocation3 + $0x38] sm:$0x1] }
 0x217   : > { %2283 = vmatmul.mubr.msk.f32.vlgmr.msra.gmra.mrb[4].mxu0 %vm914_vm6, %v2405_v1 }
 0x218   : > { %v2411_v42 = vpop.eup %2410  ;;  %v1032_v26 = vmul.f32 1.442695, %v1018_v24  ;;  %2367 = vmatpush3.bf16.msk.msra.mxu0 %vm2758_vm10, %v2362_v32 }
 0x219   : > { %2289 = vmatprep.mubr.msk.f32.mxu1 %vm914_vm6, %v2411_v42  ;;  %v1010_v45 = vpop.permute.xlu1 %1009  ;;  %v1058_v27 = vsel %vm914_vm6, %v2411_v42, 0.0 }
 0x21a   : > { %2416 = vpow2.f32 %v1032_v26  ;;  %v1019_v28 = vsub.f32 %v2637_v47, %v1010_v45  ;;  %2290 = vmatmul.mubr.msk.f32.vlgmr.msra.gmra.mrb[4].mxu1 %vm914_vm6, %v2407_v34  ;;  %1059 = vadd.xlane.f32.xlu0 %v1058_v27 }
 0x21b   : > { %1053 = vadd.xlane.f32.xlu1 %v1052_v50  ;;  %2373 = vmatpush3.bf16.msk.msra.mxu1 %vm2758_vm10, %v2368_v37 }
 0x21c   : > { %v2413_v29 = vpop.eup %2412  ;;  %v1034_v31 = vmul.f32 1.442695, %v1019_v28 }
 0x21d   : > { %v1067_v32 = vsel %vm918_vm5, %v2413_v29, 0.0 }
 0x21e   : > { %2418 = vpow2.f32 %v1034_v31 }
 0x21f   : > { %1068 = vadd.xlane.f32.xlu1 %v1067_v32  ;;  %2420 = vpow2.f32 %v958_v40  ;;  %v2853_v40 = vld [vmem:[%s2925_s5 + $0x10] sm:$0xff] }
 0x220   : > { %v2415_v35 = vpop.eup %2414  ;;  %2422 = vpow2.f32 %v956_v41 }
 0x221   : > { %2296 = vmatprep.mubr.msk.f32.mxu0 %vm914_vm6, %v2415_v35  ;;  %v1064_v47 = vsel %vm914_vm6, %v2415_v35, 0.0  ;;  %2424 = vpow2.f32 %v960_v43  ;;  %v1595_v35 = vld [vmem:[%s2925_s5] sm:$0xff]  ;;  %v2859_v43 = vld [vmem:[%s2925_s5 + $0x18] sm:$0xff] }
 0x222   : > { %1065 = vadd.xlane.f32.xlu0 %v1064_v47  ;;  %2297 = vmatmul.mubr.msk.f32.vlgmr.msra.gmra.mrb[6].mxu0 %vm914_vm6, %v2413_v29  ;;  %2426 = vpow2.f32 %v962_v44 }
 0x223   : > { %2428 = vpow2.f32 %v964_v54  ;;  %2306 = vmatprep.subr.mxu0 %v1595_v35 }
 0x224   : > { %v2417_v36 = vpop.eup %2416  ;;  %2430 = vpow2.f32 %v966_v58  ;;  %2307 = vmatpush3.msra.mxu0 %v1595_v35 }
 0x225   : > { %2303 = vmatprep.mubr.msk.f32.mxu1 %vm914_vm6, %v2417_v36  ;;  %v1070_v25 = vsel %vm914_vm6, %v2417_v36, 0.0  ;;  %2432 = vpow2.f32 %v968_v55  ;;  %2316 = vmatprep.subr.mxu0 %v2853_v40  ;;  %v1095_v55 = vld [vmem:[#allocation4 + $0x8] sm:$0x1] }
 0x226   : > { %1071 = vadd.xlane.f32.xlu0 %v1070_v25  ;;  %2434 = vpow2.f32 %v970_v59  ;;  %v1094_v59 = vld [vmem:[#allocation4] sm:$0xff] }
 0x228   : > { %v2419_v37 = vpop.eup %2418 }
 0x229   : > { %2304 = vmatmul.mubr.msk.f32.vlgmr.msra.gmra.mrb[6].mxu1 %vm914_vm6, %v2419_v37  ;;  %v1073_v39 = vsel %vm918_vm5, %v2419_v37, 0.0  ;;  %v2421_v60 = vpop.eup %2420  ;;  %v1596_v37 = vld [vmem:[%s2925_s5 + $0x8] sm:$0xff] }
 0x22a   : > { %1074 = vadd.xlane.f32.xlu1 %v1073_v39  ;;  %v2423_v61 = vpop.eup %2422  ;;  %v1045_v6 = vmul.f32 %v2421_v60, %v1037_v5  ;;  %2311 = vmatprep.subr.mxu1 %v1596_v37 }
 0x22b   : > { %v2425_v62 = vpop.eup %2424  ;;  %v1044_v20 = vmul.f32 %v2423_v61, %v1036_v18  ;;  %2312 = vmatpush3.msra.mxu1 %v1596_v37 }
 0x22c   : > { %v2427_v63 = vpop.eup %2426  ;;  %v1046_v19 = vmul.f32 %v2425_v62, %v1038_v14  ;;  %2321 = vmatprep.subr.mxu1 %v2859_v43 }
 0x22d   : > { %v2429_v53 = vpop.eup %2428  ;;  %v1047_v12 = vmul.f32 %v2427_v63, %v1039_v10 }
 0x22e   : > { %v2431_v2 = vpop.eup %2430  ;;  %v1048_v8 = vmul.f32 %v2429_v53, %v1040_v57 }
 0x22f   : > { %v2433_v3 = vpop.eup %2432  ;;  %v1049_v56 = vmul.f32 %v2431_v2, %v1041_v49 }
 0x230   : > { %v2435_v4 = vpop.eup %2434  ;;  %v1050_v34 = vmul.f32 %v2433_v3, %v1042_v16 }
 0x231   : > { %v1051_v26 = vmul.f32 %v2435_v4, %v1043_v23 }
 0x23b   : > { %1109 = vperm.xlu1 %2403, %v2421_v60  }
 0x23c   : > { %1104 = vperm.xlu0 %2402, %v2423_v61   ;;  %v1097_v61 = vld [vmem:[#allocation4 + $0x18] sm:$0x1] }
 0x23f   : > { %1114 = vperm.xlu1 %2403, %v2425_v62  }
 0x240   : > { %1119 = vperm.xlu0 %2402, %v2427_v63  }
 0x243   : > { %1124 = vperm.xlu1 %2403, %v2429_v53   ;;  %v1096_v53 = vld [vmem:[#allocation4 + $0x10] sm:$0xff] }
 0x244   : > { %1129 = vperm.xlu0 %2402, %v2431_v2  }
 0x247   : > { %1134 = vperm.xlu1 %2403, %v2433_v3  }
 0x248   : > { %1139 = vperm.xlu0 %2402, %v2435_v4  }
 0x29f   : > { %v1057_v7 = vpop.xlane.xlu0 %1056 }
 0x2a0   : > { %v1077_v11 = vadd.f32 %v1057_v7, %v1045_v6 }
 0x2a2   : > { %1087 = vst.msk [vmem:[#allocation3 + $0x8] sm:$0x1] %vm491_vm2, %v1077_v11 }
 0x2a3   : > { %v1063_v13 = vpop.xlane.xlu1 %1062 }
 0x2a4   : > { %v1079_v15 = vadd.f32 %v1063_v13, %v1047_v12 }
 0x2a6   : > { %1089 = vst.msk [vmem:[#allocation3 + $0x18] sm:$0x1] %vm491_vm2, %v1079_v15  ;;  %v1099_v15 = vld [vmem:[#allocation4 + $0x28] sm:$0x1] }
 0x2a7   : > { %v1060_v21 = vpop.xlane.xlu0 %1059 }
 0x2a8   : > { %v1054_v46 = vpop.xlane.xlu1 %1053  ;;  %v1078_v48 = vadd.f32 %v1060_v21, %v1046_v19  ;;  %v1098_v19 = vld [vmem:[#allocation4 + $0x20] sm:$0xff] }
 0x2a9   : > { %v1076_v51 = vadd.f32 %v1054_v46, %v1044_v20  ;;  %v1516_v52 = vld [vmem:[#allocation3 + $0x8] sm:$0x1] }
 0x2aa   : > { %1088 = vst.msk [vmem:[#allocation3 + $0x10] sm:$0xff] %vm489_vm7, %v1078_v48  ;;  %2436 = vrcp.f32 %v1516_v52 }
 0x2ab   : > { %1085 = vst.msk [vmem:[#allocation3] sm:$0xff] %vm489_vm7, %v1076_v51 }
 0x2ac   : > { %v1069_v0 = vpop.xlane.xlu1 %1068 }
 0x2ad   : > { %v1081_v30 = vadd.f32 %v1069_v0, %v1049_v56  ;;  %v1518_v1 = vld [vmem:[#allocation3 + $0x18] sm:$0x1]  ;;  %v1100_v0 = vld [vmem:[#allocation4 + $0x30] sm:$0xff] }
 0x2ae   : > { %2438 = vrcp.f32 %v1518_v1  ;;  %v1101_v56 = vld [vmem:[#allocation4 + $0x38] sm:$0x1] }
 0x2af   : > { %1091 = vst.msk [vmem:[#allocation3 + $0x28] sm:$0x1] %vm491_vm2, %v1081_v30  ;;  %v1066_v9 = vpop.xlane.xlu0 %1065 }
 0x2b0   : > { %v1080_v33 = vadd.f32 %v1066_v9, %v1048_v8 }
 0x2b1   : > { %v1517_v38 = vld [vmem:[#allocation3 + $0x10] sm:$0xff] }
 0x2b2   : > { %1090 = vst.msk [vmem:[#allocation3 + $0x20] sm:$0xff] %vm489_vm7, %v1080_v33  ;;  %v1515_v17 = vld [vmem:[#allocation3] sm:$0xff] }
 0x2b3   : > { %v1072_v22 = vpop.xlane.xlu0 %1071  ;;  %2440 = vrcp.f32 %v1515_v17 }
 0x2b4   : > { %v2437_v24 = vpop.eup %2436  ;;  %v1082_v42 = vadd.f32 %v1072_v22, %v1050_v34  ;;  %2442 = vrcp.f32 %v1517_v38 }
 0x2b5   : > { %1554 = vperm.xlu0 %2402, %v2437_v24  }
 0x2b6   : > { %1092 = vst.msk [vmem:[#allocation3 + $0x30] sm:$0xff] %vm489_vm7, %v1082_v42  ;;  %v1520_v45 = vld [vmem:[#allocation3 + $0x28] sm:$0x1] }
 0x2b7   : > { %v1075_v27 = vpop.xlane.xlu1 %1074  ;;  %2444 = vrcp.f32 %v1520_v45 }
 0x2b8   : > { %v2439_v28 = vpop.eup %2438  ;;  %v1083_v50 = vadd.f32 %v1075_v27, %v1051_v26 }
 0x2b9   : > { %1564 = vperm.xlu0 %2402, %v2439_v28   ;;  %v1519_v29 = vld [vmem:[#allocation3 + $0x20] sm:$0xff] }
 0x2ba   : > { %1093 = vst.msk [vmem:[#allocation3 + $0x38] sm:$0x1] %vm491_vm2, %v1083_v50  ;;  %2446 = vrcp.f32 %v1519_v29 }
 0x2bb   : > { %v1105_v54 = vpop.permute.xlu0 %1104  ;;  %v1110_v58 = vpop.permute.xlu1 %1109 }
 0x2bc   : > { %v1143_v60 = vmul.f32 %v1110_v58, %v1095_v55  ;;  %v1142_v63 = vmul.f32 %v1105_v54, %v1094_v59 }
 0x2bd   : > { %v2441_v31 = vpop.eup %2440  ;;  %v1521_v32 = vld [vmem:[#allocation3 + $0x30] sm:$0xff] }
 0x2be   : > { %1549 = vperm.xlu1 %2403, %v2441_v31   ;;  %2448 = vrcp.f32 %v1521_v32  ;;  %v2443_v47 = vpop.eup %2442 }
 0x2bf   : > { %v1120_v62 = vpop.permute.xlu0 %1119  ;;  %v1115_v2 = vpop.permute.xlu1 %1114 }
 0x2c0   : > { %v1145_v6 = vmul.f32 %v1120_v62, %v1097_v61  ;;  %v1144_v10 = vmul.f32 %v1115_v2, %v1096_v53 }
 0x2c1   : > { %v2445_v36 = vpop.eup %2444  ;;  %v1522_v25 = vld [vmem:[#allocation3 + $0x38] sm:$0x1] }
 0x2c2   : > { %1574 = vperm.xlu0 %2402, %v2445_v36   ;;  %1559 = vperm.xlu1 %2403, %v2443_v47   ;;  %2450 = vrcp.f32 %v1522_v25 }
 0x2c3   : > { %v1130_v18 = vpop.permute.xlu0 %1129  ;;  %v1125_v20 = vpop.permute.xlu1 %1124 }
 0x2c4   : > { %v2447_v39 = vpop.eup %2446  ;;  %v1147_v21 = vmul.f32 %v1130_v18, %v1099_v15  ;;  %v1146_v46 = vmul.f32 %v1125_v20, %v1098_v19  ;;  %v1939_v19 = vld [vmem:[%s473_s15] sm:$0xff] }
 0x2c6   : > { %1569 = vperm.xlu1 %2403, %v2447_v39  }
 0x2c7   : > { %v1140_v57 = vpop.permute.xlu0 %1139  ;;  %v1135_v30 = vpop.permute.xlu1 %1134 }
 0x2c8   : > { %v2449_v41 = vpop.eup %2448  ;;  %v1149_v1 = vmul.f32 %v1140_v57, %v1101_v56  ;;  %v1148_v8 = vmul.f32 %v1135_v30, %v1100_v0 }
 0x2ca   : > { %1579 = vperm.xlu1 %2403, %v2449_v41  }
 0x2cc   : > { %v2451_v44 = vpop.eup %2450 }
 0x2cd   : > { %1584 = vperm.xlu0 %2402, %v2451_v44  }
 0x2ea   : > { %v2284_v3 = vpop.f32.mrb[4].mxu0 }
 0x2eb   : > { %v1488_v4 = vadd.f32 %v2284_v3, %v1143_v60  ;;  %v1226_v5 = vpop.f32.mrb[5].mxu0 }
 0x2ec   : > { %v1487_v7 = vadd.f32 %v1226_v5, %v1142_v63 }
 0x2ed   : > { %1497 = vst.msk [vmem:[#allocation4 + $0x8] sm:$0x1] %vm509_vm11, %v1488_v4  ;;  %v2291_v11 = vpop.f32.mrb[4].mxu1 }
 0x2ee   : > { %1495 = vst.msk [vmem:[#allocation4] sm:$0xff] %vm507_vm0, %v1487_v7  ;;  %v1490_v12 = vadd.f32 %v2291_v11, %v1145_v6  ;;  %v1310_v13 = vpop.f32.mrb[5].mxu1 }
 0x2ef   : > { %v1489_v14 = vadd.f32 %v1310_v13, %v1144_v10 }
 0x2f0   : > { %1499 = vst.msk [vmem:[#allocation4 + $0x18] sm:$0x1] %vm509_vm11, %v1490_v12 }
 0x2f1   : > { %1498 = vst.msk [vmem:[#allocation4 + $0x10] sm:$0xff] %vm507_vm0, %v1489_v14  ;;  %v1940_v14 = vld [vmem:[%s473_s15 + $0x8] sm:$0x1] }
 0x2f4   : > { %v1540_v38 = vld [vmem:[#allocation4 + $0x8] sm:$0x1] }
 0x2f5   : > { %v2298_v48 = vpop.f32.mrb[6].mxu0  ;;  %v1539_v23 = vld [vmem:[#allocation4] sm:$0xff] }
 0x2f6   : > { %v1492_v49 = vadd.f32 %v2298_v48, %v1147_v21  ;;  %v1394_v51 = vpop.f32.mrb[7].mxu0 }
 0x2f7   : > { %v1491_v52 = vadd.f32 %v1394_v51, %v1146_v46  ;;  %v1542_v28 = vld [vmem:[#allocation4 + $0x18] sm:$0x1] }
 0x2f8   : > { %1501 = vst.msk [vmem:[#allocation4 + $0x28] sm:$0x1] %vm509_vm11, %v1492_v49  ;;  %v1541_v45 = vld [vmem:[#allocation4 + $0x10] sm:$0xff] }
 0x2f9   : > { %1500 = vst.msk [vmem:[#allocation4 + $0x20] sm:$0xff] %vm507_vm0, %v1491_v52 }
 0x2fc   : > { %v2305_v9 = vpop.f32.mrb[6].mxu1 }
 0x2fd   : > { %v1494_v16 = vadd.f32 %v2305_v9, %v1149_v1  ;;  %v1478_v33 = vpop.f32.mrb[7].mxu1 }
 0x2fe   : > { %v1493_v34 = vadd.f32 %v1478_v33, %v1148_v8 }
 0x2ff   : > { %1503 = vst.msk [vmem:[#allocation4 + $0x38] sm:$0x1] %vm509_vm11, %v1494_v16  ;;  %v1544_v47 = vld [vmem:[#allocation4 + $0x28] sm:$0x1] }
 0x300   : > { %1502 = vst.msk [vmem:[#allocation4 + $0x30] sm:$0xff] %vm507_vm0, %v1493_v34  ;;  %v1543_v32 = vld [vmem:[#allocation4 + $0x20] sm:$0xff] }
 0x306   : > { %v1546_v41 = vld [vmem:[#allocation4 + $0x38] sm:$0x1] }
 0x307   : > { %v1545_v37 = vld [vmem:[#allocation4 + $0x30] sm:$0xff] }
 0x334   : > { %v1555_v17 = vpop.permute.xlu0 %1554 }
 0x335   : > { %v1588_v42 = vmul.f32 %v1555_v17, %v1540_v38 }
 0x338   : > { %v1565_v26 = vpop.permute.xlu0 %1564 }
 0x339   : > { %v1590_v29 = vmul.f32 %v1565_v26, %v1542_v28 }
 0x33d   : > { %v1550_v22 = vpop.permute.xlu1 %1549 }
 0x33e   : > { %v1587_v24 = vmul.f32 %v1550_v22, %v1539_v23 }
 0x340   : > { %2308 = vmatprep.mubr.msk.f32.mxu0 %vm507_vm0, %v1587_v24 }
 0x341   : > { %v1560_v27 = vpop.permute.xlu1 %1559  ;;  %2309 = vmatmul.mubr.msk.f32.vlgmr.msra.gmra.mrb[8].mxu0 %vm507_vm0, %v1588_v42  ;;  %v1575_v31 = vpop.permute.xlu0 %1574  ;;  %v2197_v42 = vld [vmem:[%s2926_s6] ss:$0 sm:$0xff] }
 0x342   : > { %v1589_v50 = vmul.f32 %v1560_v27, %v1541_v45  ;;  %2317 = vmatpush3.msra.mxu0 %v2853_v40  ;;  %v1592_v25 = vmul.f32 %v1575_v31, %v1544_v47  ;;  %v2198_v27 = vld [vmem:[%s2927_s7] ss:$0 sm:$0xff] }
 0x344   : > { %2313 = vmatprep.mubr.msk.f32.mxu1 %vm507_vm0, %v1589_v50 }
 0x345   : > { %v1570_v35 = vpop.permute.xlu1 %1569  ;;  %2314 = vmatmul.mubr.msk.f32.vlgmr.msra.gmra.mrb[8].mxu1 %vm507_vm0, %v1590_v29 }
 0x346   : > { %v1591_v36 = vmul.f32 %v1570_v35, %v1543_v32  ;;  %2322 = vmatpush3.msra.mxu1 %v2859_v43 }
 0x348   : > { %2318 = vmatprep.mubr.msk.f32.mxu0 %vm507_vm0, %v1591_v36 }
 0x349   : > { %v1580_v39 = vpop.permute.xlu1 %1579  ;;  %2319 = vmatmul.mubr.msk.f32.vlgmr.msra.gmra.mrb[10].mxu0 %vm507_vm0, %v1592_v25 }
 0x34a   : > { %v1593_v40 = vmul.f32 %v1580_v39, %v1545_v37 }
 0x34c   : > { %2323 = vmatprep.mubr.msk.f32.mxu1 %vm507_vm0, %v1593_v40  ;;  %v1585_v44 = vpop.permute.xlu0 %1584 }
 0x34d   : > { %v1594_v54 = vmul.f32 %v1585_v44, %v1546_v41 }
 0x34f   : > { %2324 = vmatmul.mubr.msk.f32.vlgmr.msra.gmra.mrb[10].mxu1 %vm507_vm0, %v1594_v54 }
 0x414   : > { %v2310_v58 = vpop.f32.mrb[8].mxu0 }
 0x415   : > { %v1671_v55 = vpop.f32.mrb[9].mxu0  ;;  %v1932_v59 = vsel %vm1931_vm12, %v2310_v58, 0.0 }
 0x416   : > { %v1924_v62 = vsel %vm1923_vm13, %v1671_v55, 0.0 }
 0x418   : > { %v2315_v43 = vpop.f32.mrb[8].mxu1 }
 0x419   : > { %v1933_v60 = vsel %vm1931_vm12, %v2315_v43, 0.0  ;;  %v1752_v61 = vpop.f32.mrb[9].mxu1 }
 0x41a   : > { %v1934_v63 = vadd.f32 %v1933_v60, %v1932_v59  ;;  %v1925_v53 = vsel %vm1923_vm13, %v1752_v61, 0.0 }
 0x41b   : > { %v1926_v2 = vadd.f32 %v1925_v53, %v1924_v62 }
 0x41c   : > { %v2320_v3 = vpop.f32.mrb[10].mxu0 }
 0x41d   : > { %v1935_v4 = vsel %vm1931_vm12, %v2320_v3, 0.0  ;;  %v1833_v5 = vpop.f32.mrb[11].mxu0 }
 0x41e   : > { %v1936_v6 = vadd.f32 %v1935_v4, %v1934_v63  ;;  %v1927_v7 = vsel %vm1923_vm13, %v1833_v5, 0.0 }
 0x41f   : > { %v1928_v10 = vadd.f32 %v1927_v7, %v1926_v2 }
 0x422   : > { %v2325_v11 = vpop.f32.mrb[10].mxu1 }
 0x423   : > { %v1937_v12 = vsel %vm1931_vm12, %v2325_v11, 0.0  ;;  %v1914_v13 = vpop.f32.mrb[11].mxu1 }
 0x424   : > { %v1938_v15 = vadd.f32 %v1937_v12, %v1936_v6  ;;  %v1929_v18 = vsel %vm1923_vm13, %v1914_v13, 0.0 }
 0x425   : > { %v1930_v20 = vadd.f32 %v1929_v18, %v1928_v10 }
 0x426   : > { %v1942_v21 = vadd.f32 %v1940_v14, %v1938_v15 }
 0x427   : > { %v1941_v46 = vadd.f32 %v1939_v19, %v1930_v20 }
 0x428   : > { %v1946_v48 = vsel %vm1931_vm12, %v1942_v21, 0.0 }
 0x429   : > { %1947 = vadd.xlane.f32.xlu0 %v1946_v48  ;;  %v1943_v49 = vsel %vm1923_vm13, %v1941_v46, 0.0 }
 0x42a   : > { %1944 = vadd.xlane.f32.xlu1 %v1943_v49 }
 0x4b6   : > { %v1948_v51 = vpop.xlane.xlu0 %1947 }
 0x4b7   : > { %v1951_v52 = vmul.f32 0.03125, %v1948_v51  ;;  %v1945_v56 = vpop.xlane.xlu1 %1944 }
 0x4b8   : > { %v1950_v57 = vmul.f32 0.03125, %v1945_v56 }
 0x4b9   : > { %v1953_v0 = vsub.f32 %v1942_v21, %v1951_v52 }
 0x4ba   : > { %v1952_v30 = vsub.f32 %v1941_v46, %v1950_v57 }
 0x4bb   : > { %v1955_v1 = vmul.f32 %v1953_v0, %v1953_v0 }
 0x4bc   : > { %v1954_v8 = vmul.f32 %v1952_v30, %v1952_v30 }
 0x4bd   : > { %v1959_v9 = vsel %vm1931_vm12, %v1955_v1, 0.0 }
 0x4be   : > { %1960 = vadd.xlane.f32.xlu1 %v1959_v9  ;;  %v1956_v16 = vsel %vm1923_vm13, %v1954_v8, 0.0 }
 0x4bf   : > { %1957 = vadd.xlane.f32.xlu0 %v1956_v16 }
 0x54b   : > { %v1961_v33 = vpop.xlane.xlu1 %1960 }
 0x54c   : > { %v1963_v34 = vmul.f32 0.03125, %v1961_v33  ;;  %v1958_v17 = vpop.xlane.xlu0 %1957 }
 0x54d   : > { %v1962_v22 = vmul.f32 0.03125, %v1958_v17 }
 0x54e   : > { %v1965_v23 = vadd.f32 1e-05, %v1963_v34 }
 0x54f   : > { %v1964_v38 = vadd.f32 1e-05, %v1962_v22 }
 0x550   : > { %2452 = vrsqrt.f32 %v1965_v23 }
 0x551   : > { %2454 = vrsqrt.f32 %v1964_v38 }
 0x55a   : > { %v2453_v24 = vpop.eup %2452 }
 0x55b   : > { %v2455_v26 = vpop.eup %2454  ;;  %v1969_v45 = vmul.f32 %v2453_v24, %v1953_v0 }
 0x55c   : > { %v1968_v28 = vmul.f32 %v2455_v26, %v1952_v30 }
 0x55d   : > { %v1978_v50 = vmul.f32 %v2197_v42, %v1969_v45 }
 0x55e   : > { %v1977_v29 = vmul.f32 %v2197_v42, %v1968_v28 }
 0x55f   : > { %v1987_v31 = vadd.f32 %v2198_v27, %v1978_v50 }
 0x560   : > { %v1986_v32 = vadd.f32 %v2198_v27, %v1977_v29 }
 0x561   : > { %1989 = vst.msk [vmem:[%s483_s22 + $0x8] sm:$0x1] %vm1931_vm12, %v1987_v31 }
 0x562   : > { %1988 = vst.msk [vmem:[%s483_s22] sm:$0xff] %vm1923_vm13, %v1986_v32 }
 0x563 PF: > { %s18_s29 = sadd.s32 1, %s2478_s29   ;;  %s2933_s27 = smov %s2474_s28 }
 0x564   : > { %p15_p5 = scmp.ge.s32.totalorder %s18_s29, 4   ;;  %s2934_s28 = smov %s2936_s30 }
 0x566   :  { %17 = sbr.rel (!%p15_p5) target bundleno = 2 (0x2), region = 102 }

// kernel: transformer_fwd.13
= control target key start
LH: loop header
LB: loop body
LE: loop exit
PB: predicated region body
PF: predicated region fallthrough
CT: control target
= control target key end

     0   :  { %v122_v0 = vmov 0.0|0.0   ;;  %vm123_vm0 = vmmov 0   ;;  %v124_v4 = vmov 0.0   ;;  %vm16_vm1 = vcmask 261120   ;;  %s158_s1 = inlined_call_operand.vmem [shape: f32[32,96], index: 1, kind: input, shape index: {}]   ;;  %s159_s0 = inlined_call_operand.vmem [shape: f32[8,32], index: 0, kind: input, shape index: {}]   ;;  %s160_s2 = inlined_call_operand.vmem [shape: f32[8,96], index: 2, kind: output, shape index: {}]  }
   0x1   :  { %113 = vmatprep.subr.bf16.mxu0 %v122_v0  ;;  %v12_v1 = vld [vmem:[%s158_s1] sm:$0xff]  ;;  %v13_v2 = vld [vmem:[%s158_s1 + $0x8] sm:$0xff]  ;;  %v14_v3 = vld [vmem:[%s158_s1 + $0x10] sm:$0xff]  ;;  %110 = vmatprep.mubr.msk.f32.mxu0 %vm123_vm0, %v124_v4  ;;  %vm90_vm2 = vcmask 785408  }
   0x2   :  { %v114_v5 = vpack.c.bf16 %v13_v2, %v12_v1  ;;  %v15_v6 = vld [vmem:[%s158_s1 + $0x18] sm:$0xff]  ;;  %v11_v8 = vld [vmem:[%s159_s0] sm:$0xff] }
   0x3   :  { %v117_v7 = vpack.c.bf16 %v15_v6, %v14_v3 }
   0x4   :  { %115 = vmatpush3.bf16.msra.mxu0 %v114_v5 }
   0x5   :  { %116 = vmatprep.subr.bf16.mxu0 %v122_v0 }
   0x8   :  { %118 = vmatpush3.bf16.msra.mxu0 %v117_v7 }
   0xb   :  { %111 = vmatmul.mubr.msk.f32.vlgmr.msra.gmra.mrb[0].mxu0 %vm16_vm1, %v11_v8 }
  0xde   :  { %v86_v9 = vpop.f32.mrb[0].mxu0 }
  0xdf   :  { %91 = vst.msk [vmem:[%s160_s2] sm:$0xff] %vm90_vm2, %v86_v9  ;;  %v112_v10 = vpop.f32.mrb[1].mxu0 }

// kernel: transformer_fwd.15
= control target key start
LH: loop header
LB: loop body
LE: loop exit
PB: predicated region body
PF: predicated region fallthrough
CT: control target
= control target key end

     0   :  { %v121_v0 = vmov 0.0|0.0   ;;  %vm122_vm0 = vmmov 0   ;;  %v123_v4 = vmov 0.0   ;;  %vm16_vm1 = vcmask 261120   ;;  %s157_s1 = inlined_call_operand.vmem [shape: f32[32,32], index: 1, kind: input, shape index: {}]   ;;  %s158_s0 = inlined_call_operand.vmem [shape: f32[8,32], index: 0, kind: input, shape index: {}]   ;;  %s159_s2 = inlined_call_operand.vmem [shape: f32[8,32], index: 2, kind: output, shape index: {}]  }
   0x1   :  { %112 = vmatprep.subr.bf16.mxu0 %v121_v0  ;;  %v12_v1 = vld [vmem:[%s157_s1] sm:$0xff]  ;;  %v13_v2 = vld [vmem:[%s157_s1 + $0x8] sm:$0xff]  ;;  %v14_v3 = vld [vmem:[%s157_s1 + $0x10] sm:$0xff]  ;;  %109 = vmatprep.mubr.msk.f32.mxu0 %vm122_vm0, %v123_v4 }
   0x2   :  { %v113_v5 = vpack.c.bf16 %v13_v2, %v12_v1  ;;  %v15_v6 = vld [vmem:[%s157_s1 + $0x18] sm:$0xff]  ;;  %v11_v8 = vld [vmem:[%s158_s0] sm:$0xff] }
   0x3   :  { %v116_v7 = vpack.c.bf16 %v15_v6, %v14_v3 }
   0x4   :  { %114 = vmatpush3.bf16.msra.mxu0 %v113_v5 }
   0x5   :  { %115 = vmatprep.subr.bf16.mxu0 %v121_v0 }
   0x8   :  { %117 = vmatpush3.bf16.msra.mxu0 %v116_v7 }
   0xb   :  { %110 = vmatmul.mubr.msk.f32.vlgmr.msra.gmra.mrb[0].mxu0 %vm16_vm1, %v11_v8 }
  0xde   :  { %v86_v9 = vpop.f32.mrb[0].mxu0 }
  0xdf   :  { %90 = vst.msk [vmem:[%s159_s2] sm:$0xff] %vm16_vm1, %v86_v9  ;;  %v111_v10 = vpop.f32.mrb[1].mxu0 }

// kernel: transformer_fwd.19
= control target key start
LH: loop header
LB: loop body
LE: loop exit
PB: predicated region body
PF: predicated region fallthrough
CT: control target
= control target key end

     0   :  { %v169_v3 = vmov 0.0|0.0   ;;  %vm170_vm0 = vmmov 0   ;;  %v171_v6 = vmov 0.0   ;;  %s223_s0 = inlined_call_operand.vmem [shape: f32[8,32], index: 0, kind: input, shape index: {}]   ;;  %s224_s1 = inlined_call_operand.vmem [shape: f32[32,50], index: 1, kind: input, shape index: {}]   ;;  %s225_s2 = inlined_call_operand.vmem [shape: f32[1,50], index: 2, kind: input, shape index: {}]   ;;  %s226_s3 = inlined_call_operand.hbm [shape: f32[8,50], index: 3, kind: output, shape index: {}]  }
   0x1   :  { %v16_v0 = vld [vmem:[%s224_s1] sm:$0xff]  ;;  %v17_v1 = vld [vmem:[%s224_s1 + $0x8] sm:$0xff]  ;;  %v18_v2 = vld [vmem:[%s224_s1 + $0x10] sm:$0xff]  ;;  %135 = vmatprep.subr.bf16.mxu0 %v169_v3  ;;  %132 = vmatprep.mubr.msk.f32.mxu0 %vm170_vm0, %v171_v6 }
   0x2   :  { %v136_v4 = vpack.c.bf16 %v17_v1, %v16_v0  ;;  %v19_v5 = vld [vmem:[%s224_s1 + $0x18] sm:$0xff] }
   0x3   :  { %8 = vsyncpa [#allocation3], 0  ;;  %v139_v7 = vpack.c.bf16 %v19_v5, %v18_v2  ;;  %v15_v8 = vld [vmem:[%s223_s0] sm:$0xff]  ;;  %vm27_vm1 = vcmask 261120   ;;  %s172_s24 = smov [#allocation2]   ;;  %vm101_vm2 = vcmask 408576  }
   0x4   :  { %137 = vmatpush3.bf16.msra.mxu0 %v136_v4  ;;  %v117_v9 = vld [vmem:[%s225_s2] ss:$0 sm:$0xff]  ;;  %s109_s1 = sshll.u32 %s172_s24, 4  ;;  %s110_s1 = int_to_ptr.vmem [resolvable:$true] %s109_s1 }
   0x5   :  { %138 = vmatprep.subr.bf16.mxu0 %v169_v3  ;;  %s145_s25 = scalar_lea.vmem %s110_s1, 128  ;;  %p150_p1 = scmp.lt.s32.totalorder %s110_s1, %s110_s1 }
   0x6   :  { %p146_p0 = scmp.ne.s32.totalorder %s110_s1, %s145_s25  ;;  %p151_p2 = scmp.lt.s32.totalorder %s145_s25, %s145_s25 }
   0x8   :  { %140 = vmatpush3.bf16.msra.mxu0 %v139_v7  ;;  %p152_p3 = por %p151_p2, %p150_p1 }
   0xa   :  { %p153_p4 = pnand %p152_p3, %p146_p0 }
   0xb   :  { %133 = vmatmul.mubr.msk.f32.vlgmr.msra.gmra.mrb[0].mxu0 %vm27_vm1, %v15_v8 }
  0xde   :  { %v97_v10 = vpop.f32.mrb[0].mxu0 }
  0xdf   :  { %v98_v11 = vadd.f32 %v117_v9, %v97_v10  ;;  %v134_v12 = vpop.f32.mrb[1].mxu0 }
  0xe1   :  { %102 = vst.msk [vmem:[#allocation2] sm:$0xff] %vm101_vm2, %v98_v11 }
  0xe2   :  { %156 = shalt.err (!%p153_p4)
}
  0xe3   :  { %s157_s27 = scalar_lea.hbm %s226_s3, 128 }
  0xe4   :  { %p158_p5 = scmp.ne.s32.totalorder %s226_s3, %s157_s27  ;;  %p161_p6 = scmp.lt.u32.totalorder %s157_s27, %s226_s3 }
  0xe6   :  { %p163_p7 = pnand %p161_p6, %p158_p5 }
  0xe8   :  { %166 = shalt.err (!%p163_p7)
}
  0xe9   :  { %112 = dma.vmem_to_hbm [thread:$0]  %s110_s1, 128, %s226_s3, [#allocation3]  }
  0xea   :  { %167 = dma.done.wait [#allocation3], 128  }
  0xeb   :  { %168 = vsyncadd [#allocation3], 4294967168 }
  0xec   :  { %116 = vsyncpa [#allocation3], 1 }

// kernel: transformer_fwd.14
= control target key start
LH: loop header
LB: loop body
LE: loop exit
PB: predicated region body
PF: predicated region fallthrough
CT: control target
= control target key end

     0   :  { %s2038_s27 = smov 0   ;;  %s2040_s28 = smov 0   ;;  %s2272_s0 = inlined_call_operand.vmem [shape: f32[2,4,4,8], index: 0, kind: input, shape index: {}]   ;;  %s2273_s1 = inlined_call_operand.vmem [shape: f32[2,4,4,8], index: 1, kind: input, shape index: {}]   ;;  %s2274_s2 = inlined_call_operand.vmem [shape: f32[2,4,4,8], index: 2, kind: input, shape index: {}]   ;;  %s2275_s3 = inlined_call_operand.vmem [shape: f32[2,1,4], index: 3, kind: input, shape index: {}]   ;;  %s2276_s4 = inlined_call_operand.vmem [shape: f32[2,4,32], index: 4, kind: input, shape index: {}]   ;;  %s2277_s5 = inlined_call_operand.vmem [shape: f32[4,8,32], index: 5, kind: input, shape index: {}]   ;;  %s2278_s6 = inlined_call_operand.vmem [shape: f32[1,32], index: 6, kind: input, shape index: {}]   ;;  %s2279_s7 = inlined_call_operand.vmem [shape: f32[1,32], index: 7, kind: input, shape index: {}]   ;;  %s2280_s8 = inlined_call_operand.vmem [shape: f32[2,4,32], index: 8, kind: output, shape index: {}]  }
   0x1   :  { %s2042_s29 = smov 0  }
   0x2 LB: > { %s37_s30 = sadd.s32 1, %s1983_s28  ;;  %p1789_p0 = scmp.ge.s32.totalorder %s1987_s29, 1  ;;  %s1987_s29 = sphi %s2042_s29, %s18_s29   ;;  %s1983_s28 = sphi %s2040_s28, %s2282_s28   ;;  %s1979_s27 = sphi %s2038_s27, %s2281_s27  }
   0x3   : > { %p39_p1 = scmp.ge.s32.totalorder %s37_s30, 2  ;;  %p345_p2 = scmp.lt.s32.totalorder %s1987_s29, 3 }
   0x5   : > { %s2284_s30 = smov (%p39_p1, %s37_s30), 0  ;;  %p346_p3 = pnand %p1789_p0, %p345_p2 }
   0x6   : > { %p413_p4 = scmp.lt.s32.totalorder (!%p346_p3), %s1979_s27, 1  ;;  %v1989_v0 = vmov (!%p346_p3), 0.0   ;;  %vm1990_vm0 = vmmov (!%p346_p3), 0   ;;  %vm487_vm1 = vcmask (!%p346_p3), 64512   ;;  %v1991_v9 = vmov (!%p346_p3), 0  }
   0x7   : > { %349 = sbr.rel (%p346_p3) target bundleno = 1360 (0x550), region = 52  ;;  %1849 = vmatprep.subr.mxu0 (!%p346_p3), %v1989_v0  ;;  %1851 = vmatprep.mubr.msk.f32.mxu0 (!%p346_p3), %vm1990_vm0, %v1989_v0  ;;  %vm461_vm2 = vcmask (!%p346_p3), 3072   ;;  %v1992_v10 = vmov (!%p346_p3), -inf   ;;  %v795_v11 = vlaneseq (!%p346_p3)  ;;  %vm825_vm6 = vcmask (!%p346_p3), 27648  }
   0x8   : > { %1854 = vmatprep.subr.mxu1 (!%p346_p3), %v1989_v0  ;;  %1856 = vmatprep.mubr.msk.f32.mxu1 (!%p346_p3), %vm1990_vm0, %v1989_v0  ;;  %462 = vst.msk [vmem:[#allocation2] sm:$0xf] (!%p346_p3), %vm461_vm2, %v1992_v10  ;;  %463 = vst.msk [vmem:[#allocation2 + $0x4] sm:$0xf] (!%p346_p3), %vm461_vm2, %v1992_v10  ;;  %vm947_vm7 = vcmask (!%p346_p3), 1043456   ;;  %vm943_vm8 = vcmask (!%p346_p3), 31744  }
   0x9   : > { %1937 = vset.pattern.permute.xlu0 (!%p346_p3), %v1991_v9  ;;  %1938 = vset.pattern.permute.xlu1 (!%p346_p3), %v1991_v9  ;;  %464 = vst.msk [vmem:[#allocation2 + $0x8] sm:$0xf] (!%p346_p3), %vm461_vm2, %v1992_v10  ;;  %465 = vst.msk [vmem:[#allocation2 + $0xc] sm:$0xf] (!%p346_p3), %vm461_vm2, %v1992_v10  ;;  %v796_v13 = vshrl.u32 (!%p346_p3), %v795_v11, 7  ;;  %v811_v17 = vand.u32 (!%p346_p3), 127, %v795_v11 }
   0xa   : > { %466 = vst.msk [vmem:[#allocation3] sm:$0xf] (!%p346_p3), %vm461_vm2, %v1989_v0  ;;  %467 = vst.msk [vmem:[#allocation3 + $0x4] sm:$0xf] (!%p346_p3), %vm461_vm2, %v1989_v0  ;;  %vm470_vm9 = vcmask (!%p346_p3), 60416   ;;  %vm1601_vm10 = vcmask (!%p346_p3), 257024  }
   0xb   : > { %468 = vst.msk [vmem:[#allocation3 + $0x8] sm:$0xf] (!%p346_p3), %vm461_vm2, %v1989_v0  ;;  %469 = vst.msk [vmem:[#allocation3 + $0xc] sm:$0xf] (!%p346_p3), %vm461_vm2, %v1989_v0  ;;  %v797_v14 = vsub.s32 (!%p346_p3), 0, %v796_v13  ;;  %vm814_vm5 = vcmp.ge.s32.totalorder (!%p346_p3), %v796_v13, %v811_v17 }
   0xc   : > { %472 = vst.msk [vmem:[#allocation4 + $0x4] sm:$0xf] (!%p346_p3), %vm470_vm9, %v1989_v0  ;;  %471 = vst.msk [vmem:[#allocation4] sm:$0xf] (!%p346_p3), %vm470_vm9, %v1989_v0 }
   0xd   : > { %473 = vst.msk [vmem:[#allocation4 + $0x8] sm:$0xf] (!%p346_p3), %vm470_vm9, %v1989_v0  ;;  %474 = vst.msk [vmem:[#allocation4 + $0xc] sm:$0xf] (!%p346_p3), %vm470_vm9, %v1989_v0 }
   0xe   : > { %s2286_s27 = smov (!%p413_p4, %s1979_s27), 1 }
   0xf   : > { %s2065_s9 = sshll.u32 %s2286_s27, 4  ;;  %s442_s18 = scalar_lea.vmem %s2275_s3, %s2286_s27  ;;  %v2123_v38 = vld [vmem:[#allocation2] sm:$0xf]  ;;  %v2128_v41 = vld [vmem:[#allocation2 + $0x4] sm:$0xf] }
  0x10   : > { %s428_s12 = scalar_lea.vmem %s2273_s1, %s2065_s9  ;;  %s420_s15 = scalar_lea.vmem %s2272_s0, %s2065_s9  ;;  %v792_v12 = vld [vmem:[%s442_s18] sm:$0x1]  ;;  %v2130_v42 = vld [vmem:[#allocation2 + $0x8] sm:$0xf]  ;;  %v2141_v48 = vld [vmem:[#allocation2 + $0xc] sm:$0xf] }
  0x11   : > { %v479_v1 = vld [vmem:[%s428_s12] sm:$0xf]  ;;  %v480_v2 = vld [vmem:[%s428_s12 + $0x4] sm:$0xf]  ;;  %v481_v5 = vld [vmem:[%s428_s12 + $0x8] sm:$0xf]  ;;  %s2162_s21 = scalar_lea.vmem %s2274_s2, %s2065_s9 }
  0x12   : > { %1850 = vmatpush3.xpose.msk.msra.mxu0 %vm487_vm1, %v479_v1  ;;  %v475_v3 = vld [vmem:[%s420_s15] sm:$0xf]  ;;  %1855 = vmatpush3.xpose.msk.msra.mxu1 %vm487_vm1, %v480_v2  ;;  %v476_v4 = vld [vmem:[%s420_s15 + $0x4] sm:$0xf]  ;;  %v482_v6 = vld [vmem:[%s428_s12 + $0xc] sm:$0xf] }
  0x13   : > { %1859 = vmatprep.subr.mxu0 %v1989_v0  ;;  %1864 = vmatprep.subr.mxu1 %v1989_v0  ;;  %v477_v7 = vld [vmem:[%s420_s15 + $0x8] sm:$0xf]  ;;  %v478_v8 = vld [vmem:[%s420_s15 + $0xc] sm:$0xf]  ;;  %vm793_vm3 = vcmp.ne.f32.partialorder %v792_v12, 0.0  ;;  %s1796_s12 = sshll.u32 %s2286_s27, 2 }
  0x14   : > { %v794_v15 = vsel %vm793_vm3, 1, %v1991_v9  ;;  %v483_v54 = vld [vmem:[%s2162_s21] sm:$0xf]  ;;  %v484_v55 = vld [vmem:[%s2162_s21 + $0x4] sm:$0xf]  ;;  %s449_s15 = scalar_lea.vmem %s2276_s4, %s1796_s12  ;;  %s456_s22 = scalar_lea.vmem %s2280_s8, %s1796_s12 }
  0x15   : > { %1852 = vmatmul.mubr.msk.f32.vlgmr.msra.gmra.mrb[0].mxu0 %vm487_vm1, %v475_v3  ;;  %1857 = vmatmul.mubr.msk.f32.vlgmr.msra.gmra.mrb[0].mxu1 %vm487_vm1, %v476_v4  ;;  %v798_v16 = vrot.slane %v794_v15, %v797_v14  ;;  %v485_v4 = vld [vmem:[%s2162_s21 + $0x8] sm:$0xf] }
  0x16   : > { %1860 = vmatpush3.xpose.msk.msra.mxu0 %vm487_vm1, %v481_v5  ;;  %1861 = vmatprep.mubr.msk.f32.mxu0 %vm1990_vm0, %v1989_v0 }
  0x17   : > { %1865 = vmatpush3.xpose.msk.msra.mxu1 %vm487_vm1, %v482_v6  ;;  %1866 = vmatprep.mubr.msk.f32.mxu1 %vm1990_vm0, %v1989_v0  ;;  %vm799_vm4 = vcmp.eq.s32.totalorder %v798_v16, 1 }
  0x18   : > { %1869 = vmatprep.subr.mxu0 %v1989_v0  ;;  %1874 = vmatprep.subr.mxu1 %v1989_v0 }
  0x19   : > { %1862 = vmatmul.mubr.msk.f32.vlgmr.msra.gmra.mrb[2].mxu0 %vm487_vm1, %v477_v7 }
  0x1a   : > { %1867 = vmatmul.mubr.msk.f32.vlgmr.msra.gmra.mrb[2].mxu1 %vm487_vm1, %v478_v8  ;;  %1871 = vmatprep.mubr.msk.f32.mxu0 %vm1990_vm0, %v1989_v0  ;;  %v486_v8 = vld [vmem:[%s2162_s21 + $0xc] sm:$0xf] }
  0x1b   : > { %1876 = vmatprep.mubr.msk.f32.mxu1 %vm1990_vm0, %v1989_v0  ;;  %1870 = vmatpush3.msk.msra.mxu0 %vm947_vm7, %v483_v54 }
  0x1c   : > { %1879 = vmatprep.subr.mxu0 %v1989_v0  ;;  %1875 = vmatpush3.msk.msra.mxu1 %vm947_vm7, %v484_v55 }
  0x1d   : > { %1884 = vmatprep.subr.mxu1 %v1989_v0 }
  0xe8   : > { %v560_v18 = vpop.f32.mrb[0].mxu0  ;;  %v636_v19 = vpop.f32.mrb[0].mxu1 }
  0xe9   : > { %v800_v20 = vsel %vm799_vm4, %v560_v18, -1.767767e+19  ;;  %v1853_v21 = vpop.f32.mrb[1].mxu0  ;;  %v801_v22 = vsel %vm799_vm4, %v636_v19, -1.767767e+19  ;;  %v1858_v23 = vpop.f32.mrb[1].mxu1 }
  0xea   : > { %v817_v24 = vsel %vm814_vm5, %v800_v20, -1.767767e+19  ;;  %v818_v25 = vsel %vm814_vm5, %v801_v22, -1.767767e+19  ;;  %v886_v23 = vld [vmem:[#allocation3] sm:$0xf] }
  0xeb   : > { %v826_v26 = vsel %vm825_vm6, %v817_v24, -inf  ;;  %v829_v29 = vsel %vm825_vm6, %v818_v25, -inf }
  0xec   : > { %827 = vmax.xlane.f32.xlu0 %v826_v26  ;;  %v712_v27 = vpop.f32.mrb[2].mxu0  ;;  %v887_v26 = vld [vmem:[#allocation3 + $0x4] sm:$0xf] }
  0xed   : > { %v802_v28 = vsel %vm799_vm4, %v712_v27, -1.767767e+19  ;;  %v1863_v30 = vpop.f32.mrb[3].mxu0  ;;  %v788_v31 = vpop.f32.mrb[2].mxu1 }
  0xee   : > { %v803_v32 = vsel %vm799_vm4, %v788_v31, -1.767767e+19  ;;  %v1868_v33 = vpop.f32.mrb[3].mxu1  ;;  %v819_v34 = vsel %vm814_vm5, %v802_v28, -1.767767e+19 }
  0xef   : > { %v832_v35 = vsel %vm825_vm6, %v819_v34, -inf  ;;  %v820_v36 = vsel %vm814_vm5, %v803_v32, -1.767767e+19  ;;  %v888_v30 = vld [vmem:[#allocation3 + $0x8] sm:$0xf] }
  0xf0   : > { %830 = vmax.xlane.f32.xlu0 %v829_v29  ;;  %833 = vmax.xlane.f32.xlu1 %v832_v35  ;;  %v835_v37 = vsel %vm825_vm6, %v820_v36, -inf }
  0xf4   : > { %836 = vmax.xlane.f32.xlu1 %v835_v37 }
 0x179   : > { %v828_v39 = vpop.xlane.xlu0 %827 }
 0x17a   : > { %v2126_v40 = vmax.f32 %v2123_v38, %v828_v39 }
 0x17c   : > { %v842_v43 = vsub.f32 %v2123_v38, %v2126_v40  ;;  %1258 = vst.msk [vmem:[#allocation2] sm:$0xf] %vm461_vm2, %v2126_v40  ;;  %856 = vperm.xlu0 %1937, %v2126_v40  }
 0x17d   : > { %v831_v44 = vpop.xlane.xlu0 %830  ;;  %v834_v45 = vpop.xlane.xlu1 %833 }
 0x17e   : > { %v839_v46 = vmax.f32 %v2128_v41, %v831_v44  ;;  %v2139_v47 = vmax.f32 %v2130_v42, %v834_v45  ;;  %v846_v16 = vmul.f32 1.442695, %v842_v43  ;;  %v1305_v44 = vld [vmem:[%s2277_s5] sm:$0xff] }
 0x180   : > { %v843_v49 = vsub.f32 %v2128_v41, %v839_v46  ;;  %1259 = vst.msk [vmem:[#allocation2 + $0x4] sm:$0xf] %vm461_vm2, %v839_v46  ;;  %861 = vperm.xlu1 %1938, %v839_v46   ;;  %v844_v50 = vsub.f32 %v2130_v42, %v2139_v47  ;;  %1260 = vst.msk [vmem:[#allocation2 + $0x8] sm:$0xf] %vm461_vm2, %v2139_v47  ;;  %v1306_v46 = vld [vmem:[%s2277_s5 + $0x8] sm:$0xff] }
 0x181   : > { %v837_v51 = vpop.xlane.xlu1 %836 }
 0x182   : > { %v2150_v52 = vmax.f32 %v2141_v48, %v837_v51  ;;  %v848_v14 = vmul.f32 1.442695, %v843_v49  ;;  %v850_v17 = vmul.f32 1.442695, %v844_v50  ;;  %v915_v49 = vld [vmem:[#allocation4] sm:$0xf] }
 0x184   : > { %866 = vperm.xlu1 %1938, %v2139_v47   ;;  %v845_v53 = vsub.f32 %v2141_v48, %v2150_v52  ;;  %1261 = vst.msk [vmem:[#allocation2 + $0xc] sm:$0xf] %vm461_vm2, %v2150_v52 }
 0x186   : > { %v852_v18 = vmul.f32 1.442695, %v845_v53 }
 0x188   : > { %871 = vperm.xlu1 %1938, %v2150_v52   ;;  %v916_v52 = vld [vmem:[#allocation4 + $0x4] sm:$0xf] }
 0x1fb   : > { %v857_v56 = vpop.permute.xlu0 %856 }
 0x1fc   : > { %v874_v57 = vsub.f32 %v817_v24, %v857_v56 }
 0x1fe   : > { %v878_v58 = vmul.f32 1.442695, %v874_v57 }
 0x1ff   : > { %v862_v59 = vpop.permute.xlu1 %861 }
 0x200   : > { %1939 = vpow2.f32 %v878_v58  ;;  %v875_v60 = vsub.f32 %v818_v25, %v862_v59  ;;  %v917_v59 = vld [vmem:[#allocation4 + $0x8] sm:$0xf] }
 0x202   : > { %v880_v61 = vmul.f32 1.442695, %v875_v60 }
 0x203   : > { %v867_v62 = vpop.permute.xlu1 %866 }
 0x204   : > { %1941 = vpow2.f32 %v880_v61  ;;  %v876_v63 = vsub.f32 %v819_v34, %v867_v62  ;;  %v889_v34 = vld [vmem:[#allocation3 + $0xc] sm:$0xf] }
 0x206   : > { %v882_v1 = vmul.f32 1.442695, %v876_v63 }
 0x207   : > { %v872_v2 = vpop.permute.xlu1 %871 }
 0x208   : > { %1943 = vpow2.f32 %v882_v1  ;;  %v877_v3 = vsub.f32 %v820_v36, %v872_v2  ;;  %v918_v1 = vld [vmem:[#allocation4 + $0xc] sm:$0xf] }
 0x20a   : > { %v1940_v5 = vpop.eup %1939  ;;  %v884_v6 = vmul.f32 1.442695, %v877_v3 }
 0x20b   : > { %1872 = vmatmul.mubr.msk.f32.vlgmr.msra.gmra.mrb[4].mxu0 %vm943_vm8, %v1940_v5  ;;  %v894_v7 = vsel %vm825_vm6, %v1940_v5, 0.0 }
 0x20c   : > { %1945 = vpow2.f32 %v884_v6  ;;  %895 = vadd.xlane.f32.xlu1 %v894_v7  ;;  %1880 = vmatpush3.msk.msra.mxu0 %vm947_vm7, %v485_v4 }
 0x20d   : > { %1881 = vmatprep.mubr.msk.f32.mxu0 %vm1990_vm0, %v1989_v0  ;;  %1889 = vmatprep.subr.mxu0 %v1989_v0  ;;  %1947 = vpow2.f32 %v848_v14 }
 0x20e   : > { %v1942_v9 = vpop.eup %1941  ;;  %1949 = vpow2.f32 %v846_v16 }
 0x20f   : > { %1877 = vmatmul.mubr.msk.f32.vlgmr.msra.gmra.mrb[4].mxu1 %vm943_vm8, %v1942_v9  ;;  %v897_v10 = vsel %vm825_vm6, %v1942_v9, 0.0  ;;  %1951 = vpow2.f32 %v850_v17  ;;  %v1308_v17 = vld [vmem:[%s2277_s5 + $0x18] sm:$0xff] }
 0x210   : > { %898 = vadd.xlane.f32.xlu0 %v897_v10  ;;  %1885 = vmatpush3.msk.msra.mxu1 %vm947_vm7, %v486_v8  ;;  %1953 = vpow2.f32 %v852_v18 }
 0x211   : > { %1886 = vmatprep.mubr.msk.f32.mxu1 %vm1990_vm0, %v1989_v0  ;;  %1894 = vmatprep.subr.mxu1 %v1989_v0 }
 0x212   : > { %v1944_v11 = vpop.eup %1943 }
 0x213   : > { %1882 = vmatmul.mubr.msk.f32.vlgmr.msra.gmra.mrb[6].mxu0 %vm943_vm8, %v1944_v11  ;;  %v900_v12 = vsel %vm825_vm6, %v1944_v11, 0.0 }
 0x214   : > { %901 = vadd.xlane.f32.xlu1 %v900_v12  ;;  %1891 = vmatprep.mubr.msk.f32.mxu0 %vm1990_vm0, %v1989_v0 }
 0x215   : > { %1890 = vmatpush3.msra.mxu0 %v1305_v44 }
 0x216   : > { %v1946_v13 = vpop.eup %1945  ;;  %1899 = vmatprep.subr.mxu0 %v1989_v0 }
 0x217   : > { %1887 = vmatmul.mubr.msk.f32.vlgmr.msra.gmra.mrb[6].mxu1 %vm943_vm8, %v1946_v13  ;;  %v903_v15 = vsel %vm825_vm6, %v1946_v13, 0.0  ;;  %v1948_v19 = vpop.eup %1947  ;;  %v1307_v13 = vld [vmem:[%s2277_s5 + $0x10] sm:$0xff] }
 0x218   : > { %904 = vadd.xlane.f32.xlu1 %v903_v15  ;;  %1896 = vmatprep.mubr.msk.f32.mxu1 %vm1990_vm0, %v1989_v0  ;;  %v1950_v20 = vpop.eup %1949  ;;  %v891_v28 = vmul.f32 %v1948_v19, %v887_v26 }
 0x219   : > { %v1952_v21 = vpop.eup %1951  ;;  %v890_v24 = vmul.f32 %v1950_v20, %v886_v23  ;;  %1895 = vmatpush3.msra.mxu1 %v1306_v46 }
 0x21a   : > { %v1954_v22 = vpop.eup %1953  ;;  %v892_v32 = vmul.f32 %v1952_v21, %v888_v30  ;;  %1904 = vmatprep.subr.mxu1 %v1989_v0 }
 0x21b   : > { %v893_v37 = vmul.f32 %v1954_v22, %v889_v34 }
 0x226   : > { %926 = vperm.xlu0 %1937, %v1948_v19  }
 0x229   : > { %921 = vperm.xlu1 %1938, %v1950_v20  }
 0x22d   : > { %931 = vperm.xlu1 %1938, %v1952_v21  }
 0x231   : > { %936 = vperm.xlu1 %1938, %v1954_v22  }
 0x299   : > { %v896_v25 = vpop.xlane.xlu1 %895 }
 0x29a   : > { %v906_v27 = vadd.f32 %v896_v25, %v890_v24 }
 0x29c   : > { %911 = vst.msk [vmem:[#allocation3] sm:$0xf] %vm461_vm2, %v906_v27 }
 0x29d   : > { %v899_v29 = vpop.xlane.xlu0 %898 }
 0x29e   : > { %v907_v31 = vadd.f32 %v899_v29, %v891_v28 }
 0x2a0   : > { %912 = vst.msk [vmem:[#allocation3 + $0x4] sm:$0xf] %vm461_vm2, %v907_v31 }
 0x2a1   : > { %v902_v33 = vpop.xlane.xlu1 %901 }
 0x2a2   : > { %v908_v35 = vadd.f32 %v902_v33, %v892_v32 }
 0x2a3   : > { %v1265_v36 = vld [vmem:[#allocation3] sm:$0xf] }
 0x2a4   : > { %913 = vst.msk [vmem:[#allocation3 + $0x8] sm:$0xf] %vm461_vm2, %v908_v35  ;;  %1955 = vrcp.f32 %v1265_v36 }
 0x2a5   : > { %v905_v38 = vpop.xlane.xlu1 %904  ;;  %v927_v53 = vpop.permute.xlu0 %926 }
 0x2a6   : > { %v909_v39 = vadd.f32 %v905_v38, %v893_v37  ;;  %v940_v58 = vmul.f32 %v927_v53, %v916_v52  ;;  %v1609_v37 = vld [vmem:[%s449_s15] sm:$0xf] }
 0x2a7   : > { %v1266_v40 = vld [vmem:[#allocation3 + $0x4] sm:$0xf]  ;;  %v1819_v52 = vld [vmem:[%s2279_s7] ss:$0 sm:$0xff] }
 0x2a8   : > { %914 = vst.msk [vmem:[#allocation3 + $0xc] sm:$0xf] %vm461_vm2, %v909_v39  ;;  %1957 = vrcp.f32 %v1266_v40 }
 0x2a9   : > { %v922_v50 = vpop.permute.xlu1 %921 }
 0x2aa   : > { %v939_v51 = vmul.f32 %v922_v50, %v915_v49  ;;  %v1818_v50 = vld [vmem:[%s2278_s6] ss:$0 sm:$0xff] }
 0x2ab   : > { %v1267_v41 = vld [vmem:[#allocation3 + $0x8] sm:$0xf] }
 0x2ac   : > { %1959 = vrcp.f32 %v1267_v41 }
 0x2ad   : > { %v932_v57 = vpop.permute.xlu1 %931 }
 0x2ae   : > { %v1956_v42 = vpop.eup %1955  ;;  %v941_v63 = vmul.f32 %v932_v57, %v917_v59 }
 0x2af   : > { %1283 = vperm.xlu1 %1938, %v1956_v42   ;;  %v1268_v43 = vld [vmem:[#allocation3 + $0xc] sm:$0xf] }
 0x2b0   : > { %1961 = vrcp.f32 %v1268_v43 }
 0x2b1   : > { %v937_v2 = vpop.permute.xlu1 %936 }
 0x2b2   : > { %v1958_v45 = vpop.eup %1957  ;;  %v942_v6 = vmul.f32 %v937_v2, %v918_v1 }
 0x2b3   : > { %1288 = vperm.xlu0 %1937, %v1958_v45  }
 0x2b6   : > { %v1960_v47 = vpop.eup %1959 }
 0x2b7   : > { %1293 = vperm.xlu1 %1938, %v1960_v47  }
 0x2ba   : > { %v1962_v48 = vpop.eup %1961 }
 0x2bb   : > { %1298 = vperm.xlu0 %1937, %v1962_v48  }
 0x2de   : > { %v1017_v54 = vpop.f32.mrb[4].mxu0 }
 0x2df   : > { %v1249_v55 = vadd.f32 %v1017_v54, %v939_v51  ;;  %v1873_v56 = vpop.f32.mrb[5].mxu0 }
 0x2e1   : > { %1254 = vst.msk [vmem:[#allocation4] sm:$0xf] %vm470_vm9, %v1249_v55 }
 0x2e2   : > { %v1093_v60 = vpop.f32.mrb[4].mxu1 }
 0x2e3   : > { %v1250_v61 = vadd.f32 %v1093_v60, %v940_v58  ;;  %v1878_v62 = vpop.f32.mrb[5].mxu1 }
 0x2e5   : > { %1255 = vst.msk [vmem:[#allocation4 + $0x4] sm:$0xf] %vm470_vm9, %v1250_v61 }
 0x2e6   : > { %v1169_v3 = vpop.f32.mrb[6].mxu0 }
 0x2e7   : > { %v1251_v4 = vadd.f32 %v1169_v3, %v941_v63  ;;  %v1883_v5 = vpop.f32.mrb[7].mxu0 }
 0x2e8   : > { %v1277_v11 = vld [vmem:[#allocation4] sm:$0xf] }
 0x2e9   : > { %1256 = vst.msk [vmem:[#allocation4 + $0x8] sm:$0xf] %vm470_vm9, %v1251_v4 }
 0x2ea   : > { %v1245_v7 = vpop.f32.mrb[6].mxu1 }
 0x2eb   : > { %v1252_v8 = vadd.f32 %v1245_v7, %v942_v6  ;;  %v1888_v9 = vpop.f32.mrb[7].mxu1 }
 0x2ec   : > { %v1278_v14 = vld [vmem:[#allocation4 + $0x4] sm:$0xf] }
 0x2ed   : > { %1257 = vst.msk [vmem:[#allocation4 + $0xc] sm:$0xf] %vm470_vm9, %v1252_v8 }
 0x2f0   : > { %v1279_v19 = vld [vmem:[#allocation4 + $0x8] sm:$0xf] }
 0x2f4   : > { %v1280_v22 = vld [vmem:[#allocation4 + $0xc] sm:$0xf] }
 0x32e   : > { %v1284_v10 = vpop.permute.xlu1 %1283 }
 0x32f   : > { %v1301_v12 = vmul.f32 %v1284_v10, %v1277_v11 }
 0x331   : > { %1892 = vmatmul.mubr.msk.f32.vlgmr.msra.gmra.mrb[8].mxu0 %vm487_vm1, %v1301_v12 }
 0x332   : > { %v1289_v15 = vpop.permute.xlu0 %1288  ;;  %1900 = vmatpush3.msra.mxu0 %v1307_v13  ;;  %1901 = vmatprep.mubr.msk.f32.mxu0 %vm1990_vm0, %v1989_v0 }
 0x333   : > { %v1302_v16 = vmul.f32 %v1289_v15, %v1278_v14 }
 0x335   : > { %1897 = vmatmul.mubr.msk.f32.vlgmr.msra.gmra.mrb[8].mxu1 %vm487_vm1, %v1302_v16 }
 0x336   : > { %v1294_v18 = vpop.permute.xlu1 %1293  ;;  %1905 = vmatpush3.msra.mxu1 %v1308_v17  ;;  %1906 = vmatprep.mubr.msk.f32.mxu1 %vm1990_vm0, %v1989_v0 }
 0x337   : > { %v1303_v20 = vmul.f32 %v1294_v18, %v1279_v19 }
 0x339   : > { %1902 = vmatmul.mubr.msk.f32.vlgmr.msra.gmra.mrb[10].mxu0 %vm487_vm1, %v1303_v20 }
 0x33a   : > { %v1299_v21 = vpop.permute.xlu0 %1298 }
 0x33b   : > { %v1304_v23 = vmul.f32 %v1299_v21, %v1280_v22 }
 0x33d   : > { %1907 = vmatmul.mubr.msk.f32.vlgmr.msra.gmra.mrb[10].mxu1 %vm487_vm1, %v1304_v23 }
 0x404   : > { %v1378_v24 = vpop.f32.mrb[8].mxu0 }
 0x405   : > { %v1893_v25 = vpop.f32.mrb[9].mxu0  ;;  %v1602_v27 = vsel %vm1601_vm10, %v1378_v24, 0.0 }
 0x408   : > { %v1451_v26 = vpop.f32.mrb[8].mxu1 }
 0x409   : > { %v1603_v28 = vsel %vm1601_vm10, %v1451_v26, 0.0  ;;  %v1898_v29 = vpop.f32.mrb[9].mxu1 }
 0x40a   : > { %v1604_v30 = vadd.f32 %v1603_v28, %v1602_v27 }
 0x40c   : > { %v1524_v0 = vpop.f32.mrb[10].mxu0 }
 0x40d   : > { %v1605_v31 = vsel %vm1601_vm10, %v1524_v0, 0.0  ;;  %v1903_v32 = vpop.f32.mrb[11].mxu0 }
 0x40e   : > { %v1606_v33 = vadd.f32 %v1605_v31, %v1604_v30 }
 0x410   : > { %v1597_v34 = vpop.f32.mrb[10].mxu1 }
 0x411   : > { %v1607_v35 = vsel %vm1601_vm10, %v1597_v34, 0.0  ;;  %v1908_v36 = vpop.f32.mrb[11].mxu1 }
 0x412   : > { %v1608_v38 = vadd.f32 %v1607_v35, %v1606_v33 }
 0x414   : > { %v1610_v39 = vadd.f32 %v1609_v37, %v1608_v38 }
 0x416   : > { %v1611_v40 = vsel %vm1601_vm10, %v1610_v39, 0.0 }
 0x417   : > { %1612 = vadd.xlane.f32.xlu1 %v1611_v40 }
 0x4a4   : > { %v1613_v41 = vpop.xlane.xlu1 %1612 }
 0x4a5   : > { %v1615_v42 = vmul.f32 0.03125, %v1613_v41 }
 0x4a7   : > { %v1616_v43 = vsub.f32 %v1610_v39, %v1615_v42 }
 0x4a9   : > { %v1617_v44 = vmul.f32 %v1616_v43, %v1616_v43 }
 0x4ab   : > { %v1618_v45 = vsel %vm1601_vm10, %v1617_v44, 0.0 }
 0x4ac   : > { %1619 = vadd.xlane.f32.xlu0 %v1618_v45 }
 0x539   : > { %v1620_v46 = vpop.xlane.xlu0 %1619 }
 0x53a   : > { %v1621_v47 = vmul.f32 0.03125, %v1620_v46 }
 0x53c   : > { %v1622_v48 = vadd.f32 1e-05, %v1621_v47 }
 0x53e   : > { %1963 = vrsqrt.f32 %v1622_v48 }
 0x548   : > { %v1964_v49 = vpop.eup %1963 }
 0x549   : > { %v1624_v51 = vmul.f32 %v1964_v49, %v1616_v43 }
 0x54b   : > { %v1632_v53 = vmul.f32 %v1818_v50, %v1624_v51 }
 0x54d   : > { %v1640_v54 = vadd.f32 %v1819_v52, %v1632_v53 }
 0x54f   : > { %1641 = vst.msk [vmem:[%s456_s22] sm:$0xf] %vm1601_vm10, %v1640_v54 }
 0x550 PF: > { %s18_s29 = sadd.s32 1, %s1987_s29   ;;  %s2281_s27 = smov %s1983_s28 }
 0x551   : > { %p15_p5 = scmp.ge.s32.totalorder %s18_s29, 4   ;;  %s2282_s28 = smov %s2284_s30 }
 0x553   :  { %17 = sbr.rel (!%p15_p5) target bundleno = 2 (0x2), region = 102 }

// kernel: transformer_fwd.18
= control target key start
LH: loop header
LB: loop body
LE: loop exit
PB: predicated region body
PF: predicated region fallthrough
CT: control target
= control target key end

     0   :  { %v311_v0 = vmov 0.0|0.0   ;;  %vm312_vm0 = vmmov 0   ;;  %v313_v4 = vmov 0.0   ;;  %vm38_vm1 = vcmask 261120   ;;  %s412_s1 = inlined_call_operand.vmem [shape: f32[32,64], index: 1, kind: input, shape index: {}]   ;;  %s413_s3 = inlined_call_operand.vmem [shape: f32[64,32], index: 3, kind: input, shape index: {}]   ;;  %s414_s0 = inlined_call_operand.vmem [shape: f32[8,32], index: 0, kind: input, shape index: {}]   ;;  %s415_s2 = inlined_call_operand.vmem [shape: f32[1,64], index: 2, kind: input, shape index: {}]   ;;  %s416_s4 = inlined_call_operand.vmem [shape: f32[1,32], index: 4, kind: input, shape index: {}]   ;;  %s417_s5 = inlined_call_operand.vmem [shape: f32[1,32], index: 5, kind: input, shape index: {}]   ;;  %s418_s6 = inlined_call_operand.vmem [shape: f32[1,32], index: 6, kind: input, shape index: {}]   ;;  %s419_s7 = inlined_call_operand.vmem [shape: f32[8,32], index: 7, kind: output, shape index: {}]  }
   0x1   :  { %288 = vmatprep.subr.bf16.mxu0 %v311_v0  ;;  %v27_v1 = vld [vmem:[%s412_s1] sm:$0xff]  ;;  %v28_v2 = vld [vmem:[%s412_s1 + $0x8] sm:$0xff]  ;;  %v29_v3 = vld [vmem:[%s412_s1 + $0x10] sm:$0xff]  ;;  %266 = vmatprep.mubr.msk.f32.mxu0 %vm312_vm0, %v313_v4  ;;  %vm128_vm2 = vcmask 523264  }
   0x2   :  { %v289_v5 = vpack.c.bf16 %v28_v2, %v27_v1  ;;  %v30_v6 = vld [vmem:[%s412_s1 + $0x18] sm:$0xff]  ;;  %294 = vmatprep.subr.bf16.mxu1 %v311_v0  ;;  %v113_v7 = vld [vmem:[%s413_s3] sm:$0xff]  ;;  %285 = vmatprep.mubr.msk.f32.mxu1 %vm312_vm0, %v313_v4  ;;  %v114_v8 = vld [vmem:[%s413_s3 + $0x8] sm:$0xff] }
   0x3   :  { %v115_v9 = vld [vmem:[%s413_s3 + $0x10] sm:$0xff]  ;;  %v116_v10 = vld [vmem:[%s413_s3 + $0x18] sm:$0xff]  ;;  %v292_v11 = vpack.c.bf16 %v30_v6, %v29_v3  ;;  %v295_v12 = vpack.c.bf16 %v114_v8, %v113_v7  ;;  %v117_v14 = vld [vmem:[%s413_s3 + $0x20] sm:$0xff] }
   0x4   :  { %290 = vmatpush3.bf16.msra.mxu0 %v289_v5  ;;  %v298_v13 = vpack.c.bf16 %v116_v10, %v115_v9  ;;  %v118_v15 = vld [vmem:[%s413_s3 + $0x28] sm:$0xff]  ;;  %v26_v16 = vld [vmem:[%s414_s0] sm:$0xff]  ;;  %v119_v18 = vld [vmem:[%s413_s3 + $0x30] sm:$0xff] }
   0x5   :  { %291 = vmatprep.subr.bf16.mxu0 %v311_v0  ;;  %296 = vmatpush3.bf16.msra.mxu1 %v295_v12  ;;  %v301_v17 = vpack.c.bf16 %v118_v15, %v117_v14  ;;  %v120_v19 = vld [vmem:[%s413_s3 + $0x38] sm:$0xff]  ;;  %v238_v21 = vld [vmem:[%s415_s2] ss:$0 sm:$0xff] }
   0x6   :  { %297 = vmatprep.subr.bf16.mxu1 %v311_v0  ;;  %v304_v20 = vpack.c.bf16 %v120_v19, %v119_v18  ;;  %v240_v26 = vld [vmem:[%s416_s4] ss:$0 sm:$0xff] }
   0x7   :  { %v242_v41 = vld [vmem:[%s417_s5] ss:$0 sm:$0xff] }
   0x8   :  { %293 = vmatpush3.bf16.msra.mxu0 %v292_v11  ;;  %v243_v43 = vld [vmem:[%s418_s6] ss:$0 sm:$0xff] }
   0x9   :  { %299 = vmatpush3.bf16.msra.mxu1 %v298_v13 }
   0xa   :  { %300 = vmatprep.subr.bf16.mxu1 %v311_v0 }
   0xb   :  { %267 = vmatmul.mubr.msk.f32.vlgmr.msra.gmra.mrb[0].mxu0 %vm38_vm1, %v26_v16 }
   0xd   :  { %302 = vmatpush3.bf16.msra.mxu1 %v301_v17 }
   0xe   :  { %303 = vmatprep.subr.bf16.mxu1 %v311_v0 }
  0x11   :  { %305 = vmatpush3.bf16.msra.mxu1 %v304_v20 }
  0xde   :  { %v108_v22 = vpop.f32.mrb[0].mxu0 }
  0xdf   :  { %v109_v23 = vadd.f32 %v238_v21, %v108_v22  ;;  %v268_v24 = vpop.f32.mrb[1].mxu0 }
  0xe1   :  { %v112_v25 = vmax.f32 %v109_v23, 0.0 }
  0xe3   :  { %286 = vmatmul.mubr.msk.f32.vlgmr.msra.gmra.mrb[0].mxu1 %vm128_vm2, %v112_v25 }
 0x1b6   :  { %v198_v27 = vpop.f32.mrb[0].mxu1 }
 0x1b7   :  { %v199_v28 = vadd.f32 %v240_v26, %v198_v27  ;;  %v287_v29 = vpop.f32.mrb[1].mxu1 }
 0x1b9   :  { %v202_v30 = vadd.f32 %v199_v28, %v26_v16 }
 0x1bb   :  { %v203_v31 = vsel %vm38_vm1, %v202_v30, 0.0 }
 0x1bc   :  { %204 = vadd.xlane.f32.xlu0 %v203_v31 }
 0x249   :  { %v205_v32 = vpop.xlane.xlu0 %204 }
 0x24a   :  { %v207_v33 = vmul.f32 0.03125, %v205_v32 }
 0x24c   :  { %v208_v34 = vsub.f32 %v202_v30, %v207_v33 }
 0x24e   :  { %v209_v35 = vmul.f32 %v208_v34, %v208_v34 }
 0x250   :  { %v210_v36 = vsel %vm38_vm1, %v209_v35, 0.0 }
 0x251   :  { %211 = vadd.xlane.f32.xlu0 %v210_v36 }
 0x2de   :  { %v212_v37 = vpop.xlane.xlu0 %211 }
 0x2df   :  { %v213_v38 = vmul.f32 0.03125, %v212_v37 }
 0x2e1   :  { %v214_v39 = vadd.f32 1e-05, %v213_v38 }
 0x2e3   :  { %309 = vrsqrt.f32 %v214_v39 }
 0x2ed   :  { %v310_v40 = vpop.eup %309 }
 0x2ee   :  { %v216_v42 = vmul.f32 %v310_v40, %v208_v34 }
 0x2f0   :  { %v224_v44 = vmul.f32 %v242_v41, %v216_v42 }
 0x2f2   :  { %v232_v45 = vadd.f32 %v243_v43, %v224_v44 }
 0x2f4   :  { %233 = vst.msk [vmem:[%s419_s7] sm:$0xff] %vm38_vm1, %v232_v45 }

// kernel: transformer_fwd.17
= control target key start
LH: loop header
LB: loop body
LE: loop exit
PB: predicated region body
PF: predicated region fallthrough
CT: control target
= control target key end

     0   :  { %s2115_s27 = smov 0   ;;  %s2117_s28 = smov 0   ;;  %s2379_s0 = inlined_call_operand.vmem [shape: f32[2,4,4,8], index: 0, kind: input, shape index: {}]   ;;  %s2380_s1 = inlined_call_operand.vmem [shape: f32[2,4,9,8], index: 1, kind: input, shape index: {}]   ;;  %s2381_s2 = inlined_call_operand.vmem [shape: f32[2,4,9,8], index: 2, kind: input, shape index: {}]   ;;  %s2382_s3 = inlined_call_operand.vmem [shape: f32[2,1,9], index: 3, kind: input, shape index: {}]   ;;  %s2383_s4 = inlined_call_operand.vmem [shape: f32[2,4,32], index: 4, kind: input, shape index: {}]   ;;  %s2384_s5 = inlined_call_operand.vmem [shape: f32[4,8,32], index: 5, kind: input, shape index: {}]   ;;  %s2385_s6 = inlined_call_operand.vmem [shape: f32[1,32], index: 6, kind: input, shape index: {}]   ;;  %s2386_s7 = inlined_call_operand.vmem [shape: f32[1,32], index: 7, kind: input, shape index: {}]   ;;  %s2387_s8 = inlined_call_operand.vmem [shape: f32[2,4,32], index: 8, kind: output, shape index: {}]  }
   0x1   :  { %s2119_s29 = smov 0  }
   0x2 LB: > { %s37_s30 = sadd.s32 1, %s2058_s28  ;;  %p1802_p0 = scmp.ge.s32.totalorder %s2062_s29, 1  ;;  %s2062_s29 = sphi %s2119_s29, %s18_s29   ;;  %s2058_s28 = sphi %s2117_s28, %s2393_s28   ;;  %s2054_s27 = sphi %s2115_s27, %s2392_s27  }
   0x3   : > { %p39_p1 = scmp.ge.s32.totalorder %s37_s30, 2  ;;  %p349_p2 = scmp.lt.s32.totalorder %s2062_s29, 3 }
   0x5   : > { %s2395_s30 = smov (%p39_p1, %s37_s30), 0  ;;  %p350_p3 = pnand %p1802_p0, %p349_p2 }
   0x6   : > { %p419_p4 = scmp.lt.s32.totalorder (!%p350_p3), %s2054_s27, 1  ;;  %v2064_v0 = vmov (!%p350_p3), 0.0|0.0   ;;  %vm505_vm0 = vcmask (!%p350_p3), 64512   ;;  %vm2065_vm1 = vmmov (!%p350_p3), 0   ;;  %v2066_v1 = vmov (!%p350_p3), 0.0  }
   0x7   : > { %353 = sbr.rel (%p350_p3) target bundleno = 1365 (0x555), region = 52  ;;  %1950 = vmatprep.subr.bf16.mxu0 (!%p350_p3), %v2064_v0  ;;  %1954 = vmatprep.subr.bf16.mxu1 (!%p350_p3), %v2064_v0  ;;  %vm2149_vm2 = vmpackc.low (!%p350_p3), %vm505_vm0, %vm505_vm0  ;;  %v2067_v19 = vmov (!%p350_p3), 0   ;;  %vm471_vm3 = vcmask (!%p350_p3), 3072   ;;  %v2068_v20 = vmov (!%p350_p3), -inf   ;;  %v825_v21 = vlaneseq (!%p350_p3) }
   0x8   : > { %1878 = vmatprep.mubr.msk.f32.mxu0 (!%p350_p3), %vm2065_vm1, %v2066_v1  ;;  %1885 = vmatprep.mubr.msk.f32.mxu1 (!%p350_p3), %vm2065_vm1, %v2066_v1  ;;  %472 = vst.msk [vmem:[#allocation2] sm:$0xf] (!%p350_p3), %vm471_vm3, %v2068_v20  ;;  %473 = vst.msk [vmem:[#allocation2 + $0x4] sm:$0xf] (!%p350_p3), %vm471_vm3, %v2068_v20  ;;  %vm838_vm6 = vcmask (!%p350_p3), 68608   ;;  %vm960_vm7 = vcmask (!%p350_p3), 1040384  }
   0x9   : > { %2012 = vset.pattern.permute.xlu0 (!%p350_p3), %v2067_v19  ;;  %2013 = vset.pattern.permute.xlu1 (!%p350_p3), %v2067_v19  ;;  %474 = vst.msk [vmem:[#allocation2 + $0x8] sm:$0xf] (!%p350_p3), %vm471_vm3, %v2068_v20  ;;  %475 = vst.msk [vmem:[#allocation2 + $0xc] sm:$0xf] (!%p350_p3), %vm471_vm3, %v2068_v20  ;;  %v826_v23 = vshrl.u32 (!%p350_p3), %v825_v21, 7  ;;  %vm2069_vm8 = vmmov (!%p350_p3), 1  }
   0xa   : > { %476 = vst.msk [vmem:[#allocation3] sm:$0xf] (!%p350_p3), %vm471_vm3, %v2066_v1  ;;  %477 = vst.msk [vmem:[#allocation3 + $0x4] sm:$0xf] (!%p350_p3), %vm471_vm3, %v2066_v1  ;;  %vm956_vm10 = vcmask (!%p350_p3), 72704   ;;  %vm480_vm11 = vcmask (!%p350_p3), 60416  }
   0xb   : > { %478 = vst.msk [vmem:[#allocation3 + $0x8] sm:$0xf] (!%p350_p3), %vm471_vm3, %v2066_v1  ;;  %479 = vst.msk [vmem:[#allocation3 + $0xc] sm:$0xf] (!%p350_p3), %vm471_vm3, %v2066_v1  ;;  %v827_v24 = vsub.s32 (!%p350_p3), 0, %v826_v23  ;;  %vm1614_vm12 = vcmask (!%p350_p3), 257024  }
   0xc   : > { %vm2257_vm9 = vmpackc.low (!%p350_p3), %vm960_vm7, %vm2069_vm8  ;;  %482 = vst.msk [vmem:[#allocation4 + $0x4] sm:$0xf] (!%p350_p3), %vm480_vm11, %v2066_v1 }
   0xd   : > { %481 = vst.msk [vmem:[#allocation4] sm:$0xf] (!%p350_p3), %vm480_vm11, %v2066_v1  ;;  %483 = vst.msk [vmem:[#allocation4 + $0x8] sm:$0xf] (!%p350_p3), %vm480_vm11, %v2066_v1 }
   0xe   : > { %s2397_s27 = smov (!%p419_p4, %s2054_s27), 1  ;;  %484 = vst.msk [vmem:[#allocation4 + $0xc] sm:$0xf] %vm480_vm11, %v2066_v1 }
   0xf   : > { %s1840_s9 = sshll.u32 %s2397_s27, 6  ;;  %s1839_s13 = sshll.u32 %s2397_s27, 4  ;;  %v2208_v43 = vld [vmem:[#allocation2] sm:$0xf]  ;;  %v2213_v46 = vld [vmem:[#allocation2 + $0x4] sm:$0xf] }
  0x10   : > { %s435_s12 = scalar_lea.vmem %s2380_s1, %s1840_s9  ;;  %s426_s16 = scalar_lea.vmem %s2379_s0, %s1839_s13  ;;  %v2223_v50 = vld [vmem:[#allocation2 + $0x8] sm:$0xf]  ;;  %v2240_v54 = vld [vmem:[#allocation2 + $0xc] sm:$0xf] }
  0x11   : > { %v489_v3 = vld [vmem:[%s435_s12] sm:$0xff]  ;;  %v490_v4 = vld [vmem:[%s435_s12 + $0x8] sm:$0x1]  ;;  %v491_v5 = vld [vmem:[%s435_s12 + $0x10] sm:$0xff]  ;;  %s452_s19 = scalar_lea.vmem %s2382_s3, %s2397_s27  ;;  %s2235_s22 = scalar_lea.vmem %s2381_s2, %s1840_s9 }
  0x12   : > { %v1951_v6 = vpack.c.bf16 %v490_v4, %v489_v3  ;;  %v492_v7 = vld [vmem:[%s435_s12 + $0x18] sm:$0x1]  ;;  %v493_v9 = vld [vmem:[%s435_s12 + $0x20] sm:$0xff]  ;;  %v494_v10 = vld [vmem:[%s435_s12 + $0x28] sm:$0x1]  ;;  %s1809_s13 = sshll.u32 %s2397_s27, 2 }
  0x13   : > { %v1955_v8 = vpack.c.bf16 %v492_v7, %v491_v5  ;;  %v495_v11 = vld [vmem:[%s435_s12 + $0x30] sm:$0xff]  ;;  %v496_v12 = vld [vmem:[%s435_s12 + $0x38] sm:$0x1]  ;;  %v485_v13 = vld [vmem:[%s426_s16] sm:$0xf]  ;;  %v1959_v14 = vpack.c.bf16 %v494_v10, %v493_v9  ;;  %s466_s23 = scalar_lea.vmem %s2387_s8, %s1809_s13 }
  0x14   : > { %1953 = vmatpush3.bf16.xpose.msk.msra.mxu0 %vm2149_vm2, %v1951_v6  ;;  %v486_v15 = vld [vmem:[%s426_s16 + $0x4] sm:$0xf]  ;;  %v1963_v16 = vpack.c.bf16 %v496_v12, %v495_v11  ;;  %v487_v17 = vld [vmem:[%s426_s16 + $0x8] sm:$0xf]  ;;  %v488_v18 = vld [vmem:[%s426_s16 + $0xc] sm:$0xf]  ;;  %s459_s16 = scalar_lea.vmem %s2383_s4, %s1809_s13 }
  0x15   : > { %1957 = vmatpush3.bf16.xpose.msk.msra.mxu1 %vm2149_vm2, %v1955_v8  ;;  %1958 = vmatprep.subr.bf16.mxu0 %v2064_v0  ;;  %v822_v22 = vld [vmem:[%s452_s19] sm:$0x1]  ;;  %v498_v58 = vld [vmem:[%s2235_s22 + $0x8] sm:$0x1]  ;;  %v499_v63 = vld [vmem:[%s2235_s22 + $0x10] sm:$0xff] }
  0x16   : > { %1962 = vmatprep.subr.bf16.mxu1 %v2064_v0  ;;  %vm823_vm4 = vcmp.ne.f32.partialorder %v822_v22, 0.0  ;;  %v497_v57 = vld [vmem:[%s2235_s22] sm:$0xff]  ;;  %v500_v2 = vld [vmem:[%s2235_s22 + $0x18] sm:$0x1] }
  0x17   : > { %v824_v25 = vsel %vm823_vm4, 1, %v2067_v19  ;;  %v1967_v60 = vpack.c.bf16 %v498_v58, %v497_v57  ;;  %v1971_v3 = vpack.c.bf16 %v500_v2, %v499_v63  ;;  %v501_v12 = vld [vmem:[%s2235_s22 + $0x20] sm:$0xff] }
  0x18   : > { %v828_v26 = vrot.slane %v824_v25, %v827_v24  ;;  %v1318_v58 = vld [vmem:[%s2384_s5] sm:$0xff] }
  0x19   : > { %v928_v63 = vld [vmem:[#allocation4] sm:$0xf] }
  0x1a   : > { %vm829_vm5 = vcmp.eq.s32.totalorder %v828_v26, 1 }
  0x1b   : > { %1879 = vmatmul.mubr.msk.f32.vlgmr.msra.gmra.mrb[0].mxu0 %vm505_vm0, %v485_v13  ;;  %v502_v13 = vld [vmem:[%s2235_s22 + $0x28] sm:$0x1] }
  0x1c   : > { %1961 = vmatpush3.bf16.xpose.msk.msra.mxu0 %vm2149_vm2, %v1959_v14  ;;  %1886 = vmatmul.mubr.msk.f32.vlgmr.msra.gmra.mrb[0].mxu1 %vm505_vm0, %v486_v15 }
  0x1d   : > { %1965 = vmatpush3.bf16.xpose.msk.msra.mxu1 %vm2149_vm2, %v1963_v16  ;;  %1892 = vmatprep.mubr.msk.f32.mxu0 %vm2065_vm1, %v2066_v1 }
  0x1e   : > { %1899 = vmatprep.mubr.msk.f32.mxu1 %vm2065_vm1, %v2066_v1  ;;  %1966 = vmatprep.subr.bf16.mxu0 %v2064_v0 }
  0x1f   : > { %1970 = vmatprep.subr.bf16.mxu1 %v2064_v0 }
  0x23   : > { %1893 = vmatmul.mubr.msk.f32.vlgmr.msra.gmra.mrb[2].mxu0 %vm505_vm0, %v487_v17  ;;  %v503_v17 = vld [vmem:[%s2235_s22 + $0x30] sm:$0xff] }
  0x24   : > { %1900 = vmatmul.mubr.msk.f32.vlgmr.msra.gmra.mrb[2].mxu1 %vm505_vm0, %v488_v18  ;;  %1906 = vmatprep.mubr.msk.f32.mxu0 %vm2065_vm1, %v2066_v1  ;;  %v504_v18 = vld [vmem:[%s2235_s22 + $0x38] sm:$0x1] }
  0x25   : > { %1913 = vmatprep.mubr.msk.f32.mxu1 %vm2065_vm1, %v2066_v1  ;;  %1969 = vmatpush3.bf16.msk.msra.mxu0 %vm2257_vm9, %v1967_v60  ;;  %v1979_v22 = vpack.c.bf16 %v504_v18, %v503_v17  ;;  %v1319_v60 = vld [vmem:[%s2384_s5 + $0x8] sm:$0xff] }
  0x26   : > { %1974 = vmatprep.subr.bf16.mxu0 %v2064_v0  ;;  %1973 = vmatpush3.bf16.msk.msra.mxu1 %vm2257_vm9, %v1971_v3 }
  0x27   : > { %1978 = vmatprep.subr.bf16.mxu1 %v2064_v0  ;;  %v1975_v0 = vpack.c.bf16 %v502_v13, %v501_v12 }
  0xee   : > { %v581_v27 = vpop.f32.mrb[0].mxu0 }
  0xef   : > { %v830_v28 = vsel %vm829_vm5, %v581_v27, -1.767767e+19  ;;  %v1880_v29 = vpop.f32.mrb[1].mxu0  ;;  %v660_v30 = vpop.f32.mrb[0].mxu1 }
  0xf0   : > { %v831_v31 = vsel %vm829_vm5, %v660_v30, -1.767767e+19  ;;  %v839_v32 = vsel %vm838_vm6, %v830_v28, -inf  ;;  %v1887_v33 = vpop.f32.mrb[1].mxu1 }
  0xf1   : > { %840 = vmax.xlane.f32.xlu0 %v839_v32  ;;  %v842_v34 = vsel %vm838_vm6, %v831_v31, -inf }
  0xf5   : > { %843 = vmax.xlane.f32.xlu0 %v842_v34 }
  0xf6   : > { %v739_v35 = vpop.f32.mrb[2].mxu0 }
  0xf7   : > { %v832_v36 = vsel %vm829_vm5, %v739_v35, -1.767767e+19  ;;  %v1894_v37 = vpop.f32.mrb[3].mxu0  ;;  %v818_v38 = vpop.f32.mrb[2].mxu1 }
  0xf8   : > { %v2203_v39 = vsel %vm829_vm5, %v818_v38, -1.767767e+19  ;;  %v845_v40 = vsel %vm838_vm6, %v832_v36, -inf  ;;  %v1901_v41 = vpop.f32.mrb[3].mxu1  ;;  %v899_v37 = vld [vmem:[#allocation3] sm:$0xf] }
  0xf9   : > { %846 = vmax.xlane.f32.xlu1 %v845_v40  ;;  %v848_v42 = vsel %vm838_vm6, %v2203_v39, -inf  ;;  %v900_v40 = vld [vmem:[#allocation3 + $0x4] sm:$0xf] }
  0xfd   : > { %849 = vmax.xlane.f32.xlu1 %v848_v42 }
 0x17e   : > { %v841_v44 = vpop.xlane.xlu0 %840 }
 0x17f   : > { %v2211_v45 = vmax.f32 %v2208_v43, %v841_v44  ;;  %v901_v44 = vld [vmem:[#allocation3 + $0x8] sm:$0xf] }
 0x181   : > { %v855_v47 = vsub.f32 %v2208_v43, %v2211_v45  ;;  %1271 = vst.msk [vmem:[#allocation2] sm:$0xf] %vm471_vm3, %v2211_v45  ;;  %869 = vperm.xlu0 %2012, %v2211_v45  }
 0x182   : > { %v844_v48 = vpop.xlane.xlu0 %843 }
 0x183   : > { %v2221_v49 = vmax.f32 %v2213_v46, %v844_v48  ;;  %v859_v30 = vmul.f32 1.442695, %v855_v47  ;;  %v902_v48 = vld [vmem:[#allocation3 + $0xc] sm:$0xf] }
 0x185   : > { %v856_v51 = vsub.f32 %v2213_v46, %v2221_v49  ;;  %1272 = vst.msk [vmem:[#allocation2 + $0x4] sm:$0xf] %vm471_vm3, %v2221_v49  ;;  %874 = vperm.xlu1 %2013, %v2221_v49  }
 0x186   : > { %v847_v52 = vpop.xlane.xlu1 %846 }
 0x187   : > { %v2238_v53 = vmax.f32 %v2223_v50, %v847_v52 }
 0x189   : > { %v857_v55 = vsub.f32 %v2223_v50, %v2238_v53  ;;  %1273 = vst.msk [vmem:[#allocation2 + $0x8] sm:$0xf] %vm471_vm3, %v2238_v53  ;;  %879 = vperm.xlu1 %2013, %v2238_v53  }
 0x18a   : > { %v850_v56 = vpop.xlane.xlu1 %849 }
 0x18b   : > { %v2250_v59 = vmax.f32 %v2240_v54, %v850_v56 }
 0x18d   : > { %v858_v61 = vsub.f32 %v2240_v54, %v2250_v59  ;;  %1274 = vst.msk [vmem:[#allocation2 + $0xc] sm:$0xf] %vm471_vm3, %v2250_v59  ;;  %884 = vperm.xlu1 %2013, %v2250_v59  }
 0x18f   : > { %v865_v32 = vmul.f32 1.442695, %v858_v61 }
 0x200   : > { %v870_v4 = vpop.permute.xlu0 %869 }
 0x201   : > { %v887_v5 = vsub.f32 %v830_v28, %v870_v4  ;;  %v861_v28 = vmul.f32 1.442695, %v856_v51  ;;  %v929_v4 = vld [vmem:[#allocation4 + $0x4] sm:$0xf] }
 0x203   : > { %v891_v6 = vmul.f32 1.442695, %v887_v5 }
 0x204   : > { %v875_v7 = vpop.permute.xlu1 %874 }
 0x205   : > { %2014 = vpow2.f32 %v891_v6  ;;  %v888_v8 = vsub.f32 %v831_v31, %v875_v7  ;;  %v863_v31 = vmul.f32 1.442695, %v857_v55 }
 0x207   : > { %v893_v9 = vmul.f32 1.442695, %v888_v8 }
 0x208   : > { %v880_v10 = vpop.permute.xlu1 %879 }
 0x209   : > { %2016 = vpow2.f32 %v893_v9  ;;  %v889_v11 = vsub.f32 %v832_v36, %v880_v10 }
 0x20b   : > { %v895_v14 = vmul.f32 1.442695, %v889_v11  ;;  %v930_v11 = vld [vmem:[#allocation4 + $0x8] sm:$0xf] }
 0x20c   : > { %v885_v15 = vpop.permute.xlu1 %884 }
 0x20d   : > { %2018 = vpow2.f32 %v895_v14  ;;  %v890_v16 = vsub.f32 %v2203_v39, %v885_v15 }
 0x20f   : > { %v2015_v19 = vpop.eup %2014  ;;  %v897_v20 = vmul.f32 1.442695, %v890_v16  ;;  %v931_v16 = vld [vmem:[#allocation4 + $0xc] sm:$0xf] }
 0x210   : > { %1907 = vmatmul.mubr.msk.f32.vlgmr.msra.gmra.mrb[4].mxu0 %vm956_vm10, %v2015_v19  ;;  %v907_v21 = vsel %vm838_vm6, %v2015_v19, 0.0 }
 0x211   : > { %2020 = vpow2.f32 %v897_v20  ;;  %908 = vadd.xlane.f32.xlu1 %v907_v21  ;;  %1977 = vmatpush3.bf16.msk.msra.mxu0 %vm2257_vm9, %v1975_v0 }
 0x212   : > { %1920 = vmatprep.mubr.msk.f32.mxu0 %vm2065_vm1, %v2066_v1  ;;  %1930 = vmatprep.subr.mxu0 %v2066_v1  ;;  %2022 = vpow2.f32 %v861_v28 }
 0x213   : > { %v2017_v23 = vpop.eup %2016  ;;  %2024 = vpow2.f32 %v859_v30 }
 0x214   : > { %1914 = vmatmul.mubr.msk.f32.vlgmr.msra.gmra.mrb[4].mxu1 %vm956_vm10, %v2017_v23  ;;  %v910_v24 = vsel %vm838_vm6, %v2017_v23, 0.0  ;;  %2026 = vpow2.f32 %v863_v31  ;;  %v1321_v31 = vld [vmem:[%s2384_s5 + $0x18] sm:$0xff] }
 0x215   : > { %911 = vadd.xlane.f32.xlu0 %v910_v24  ;;  %1981 = vmatpush3.bf16.msk.msra.mxu1 %vm2257_vm9, %v1979_v22  ;;  %2028 = vpow2.f32 %v865_v32 }
 0x216   : > { %1927 = vmatprep.mubr.msk.f32.mxu1 %vm2065_vm1, %v2066_v1  ;;  %1935 = vmatprep.subr.mxu1 %v2066_v1 }
 0x217   : > { %v2019_v25 = vpop.eup %2018 }
 0x218   : > { %1921 = vmatmul.mubr.msk.f32.vlgmr.msra.gmra.mrb[6].mxu0 %vm956_vm10, %v2019_v25  ;;  %v913_v26 = vsel %vm838_vm6, %v2019_v25, 0.0 }
 0x219   : > { %914 = vadd.xlane.f32.xlu1 %v913_v26  ;;  %1932 = vmatprep.mubr.msk.f32.mxu0 %vm2065_vm1, %v2066_v1 }
 0x21a   : > { %1931 = vmatpush3.msra.mxu0 %v1318_v58 }
 0x21b   : > { %v2021_v27 = vpop.eup %2020  ;;  %1940 = vmatprep.subr.mxu0 %v2066_v1 }
 0x21c   : > { %1928 = vmatmul.mubr.msk.f32.vlgmr.msra.gmra.mrb[6].mxu1 %vm956_vm10, %v2021_v27  ;;  %v916_v29 = vsel %vm838_vm6, %v2021_v27, 0.0  ;;  %v2023_v33 = vpop.eup %2022  ;;  %v1320_v27 = vld [vmem:[%s2384_s5 + $0x10] sm:$0xff] }
 0x21d   : > { %917 = vadd.xlane.f32.xlu1 %v916_v29  ;;  %1937 = vmatprep.mubr.msk.f32.mxu1 %vm2065_vm1, %v2066_v1  ;;  %v2025_v34 = vpop.eup %2024  ;;  %v904_v42 = vmul.f32 %v2023_v33, %v900_v40 }
 0x21e   : > { %v2027_v35 = vpop.eup %2026  ;;  %v903_v38 = vmul.f32 %v2025_v34, %v899_v37  ;;  %1936 = vmatpush3.msra.mxu1 %v1319_v60 }
 0x21f   : > { %v2029_v36 = vpop.eup %2028  ;;  %v905_v46 = vmul.f32 %v2027_v35, %v901_v44  ;;  %1945 = vmatprep.subr.mxu1 %v2066_v1 }
 0x220   : > { %v906_v51 = vmul.f32 %v2029_v36, %v902_v48 }
 0x22b   : > { %939 = vperm.xlu0 %2012, %v2023_v33  }
 0x22e   : > { %934 = vperm.xlu1 %2013, %v2025_v34  }
 0x232   : > { %944 = vperm.xlu1 %2013, %v2027_v35  }
 0x236   : > { %949 = vperm.xlu1 %2013, %v2029_v36  }
 0x29e   : > { %v909_v39 = vpop.xlane.xlu1 %908 }
 0x29f   : > { %v919_v41 = vadd.f32 %v909_v39, %v903_v38 }
 0x2a1   : > { %924 = vst.msk [vmem:[#allocation3] sm:$0xf] %vm471_vm3, %v919_v41 }
 0x2a2   : > { %v912_v43 = vpop.xlane.xlu0 %911 }
 0x2a3   : > { %v920_v45 = vadd.f32 %v912_v43, %v904_v42 }
 0x2a5   : > { %925 = vst.msk [vmem:[#allocation3 + $0x4] sm:$0xf] %vm471_vm3, %v920_v45 }
 0x2a6   : > { %v915_v47 = vpop.xlane.xlu1 %914 }
 0x2a7   : > { %v921_v49 = vadd.f32 %v915_v47, %v905_v46 }
 0x2a8   : > { %v1278_v50 = vld [vmem:[#allocation3] sm:$0xf] }
 0x2a9   : > { %926 = vst.msk [vmem:[#allocation3 + $0x8] sm:$0xf] %vm471_vm3, %v921_v49  ;;  %2030 = vrcp.f32 %v1278_v50 }
 0x2aa   : > { %v918_v52 = vpop.xlane.xlu1 %917  ;;  %v940_v5 = vpop.permute.xlu0 %939 }
 0x2ab   : > { %v922_v53 = vadd.f32 %v918_v52, %v906_v51  ;;  %v953_v10 = vmul.f32 %v940_v5, %v929_v4  ;;  %v1622_v51 = vld [vmem:[%s459_s16] sm:$0xf] }
 0x2ac   : > { %v1279_v54 = vld [vmem:[#allocation3 + $0x4] sm:$0xf]  ;;  %v1836_v4 = vld [vmem:[%s2386_s7] ss:$0 sm:$0xff] }
 0x2ad   : > { %927 = vst.msk [vmem:[#allocation3 + $0xc] sm:$0xf] %vm471_vm3, %v922_v53  ;;  %2032 = vrcp.f32 %v1279_v54 }
 0x2ae   : > { %v935_v2 = vpop.permute.xlu1 %934 }
 0x2af   : > { %v952_v3 = vmul.f32 %v935_v2, %v928_v63  ;;  %v1835_v2 = vld [vmem:[%s2385_s6] ss:$0 sm:$0xff] }
 0x2b0   : > { %v1280_v55 = vld [vmem:[#allocation3 + $0x8] sm:$0xf] }
 0x2b1   : > { %2034 = vrcp.f32 %v1280_v55 }
 0x2b2   : > { %v945_v9 = vpop.permute.xlu1 %944 }
 0x2b3   : > { %v2031_v56 = vpop.eup %2030  ;;  %v954_v15 = vmul.f32 %v945_v9, %v930_v11 }
 0x2b4   : > { %1296 = vperm.xlu1 %2013, %v2031_v56   ;;  %v1281_v57 = vld [vmem:[#allocation3 + $0xc] sm:$0xf] }
 0x2b5   : > { %2036 = vrcp.f32 %v1281_v57 }
 0x2b6   : > { %v950_v0 = vpop.permute.xlu1 %949 }
 0x2b7   : > { %v2033_v59 = vpop.eup %2032  ;;  %v955_v20 = vmul.f32 %v950_v0, %v931_v16 }
 0x2b8   : > { %1301 = vperm.xlu0 %2012, %v2033_v59  }
 0x2bb   : > { %v2035_v61 = vpop.eup %2034 }
 0x2bc   : > { %1306 = vperm.xlu1 %2013, %v2035_v61  }
 0x2bf   : > { %v2037_v62 = vpop.eup %2036 }
 0x2c0   : > { %1311 = vperm.xlu0 %2012, %v2037_v62  }
 0x2e3   : > { %v1030_v6 = vpop.f32.mrb[4].mxu0 }
 0x2e4   : > { %v1262_v7 = vadd.f32 %v1030_v6, %v952_v3  ;;  %v1908_v8 = vpop.f32.mrb[5].mxu0 }
 0x2e6   : > { %1267 = vst.msk [vmem:[#allocation4] sm:$0xf] %vm480_vm11, %v1262_v7 }
 0x2e7   : > { %v1106_v12 = vpop.f32.mrb[4].mxu1 }
 0x2e8   : > { %v1263_v13 = vadd.f32 %v1106_v12, %v953_v10  ;;  %v1915_v14 = vpop.f32.mrb[5].mxu1 }
 0x2ea   : > { %1268 = vst.msk [vmem:[#allocation4 + $0x4] sm:$0xf] %vm480_vm11, %v1263_v13 }
 0x2eb   : > { %v1182_v17 = vpop.f32.mrb[6].mxu0 }
 0x2ec   : > { %v1264_v18 = vadd.f32 %v1182_v17, %v954_v15  ;;  %v1922_v19 = vpop.f32.mrb[7].mxu0 }
 0x2ed   : > { %v1290_v25 = vld [vmem:[#allocation4] sm:$0xf] }
 0x2ee   : > { %1269 = vst.msk [vmem:[#allocation4 + $0x8] sm:$0xf] %vm480_vm11, %v1264_v18 }
 0x2ef   : > { %v1258_v21 = vpop.f32.mrb[6].mxu1 }
 0x2f0   : > { %v1265_v22 = vadd.f32 %v1258_v21, %v955_v20  ;;  %v1929_v23 = vpop.f32.mrb[7].mxu1 }
 0x2f1   : > { %v1291_v28 = vld [vmem:[#allocation4 + $0x4] sm:$0xf] }
 0x2f2   : > { %1270 = vst.msk [vmem:[#allocation4 + $0xc] sm:$0xf] %vm480_vm11, %v1265_v22 }
 0x2f5   : > { %v1292_v33 = vld [vmem:[#allocation4 + $0x8] sm:$0xf] }
 0x2f9   : > { %v1293_v36 = vld [vmem:[#allocation4 + $0xc] sm:$0xf] }
 0x333   : > { %v1297_v24 = vpop.permute.xlu1 %1296 }
 0x334   : > { %v1314_v26 = vmul.f32 %v1297_v24, %v1290_v25 }
 0x336   : > { %1933 = vmatmul.mubr.msk.f32.vlgmr.msra.gmra.mrb[8].mxu0 %vm505_vm0, %v1314_v26 }
 0x337   : > { %v1302_v29 = vpop.permute.xlu0 %1301  ;;  %1941 = vmatpush3.msra.mxu0 %v1320_v27  ;;  %1942 = vmatprep.mubr.msk.f32.mxu0 %vm2065_vm1, %v2066_v1 }
 0x338   : > { %v1315_v30 = vmul.f32 %v1302_v29, %v1291_v28 }
 0x33a   : > { %1938 = vmatmul.mubr.msk.f32.vlgmr.msra.gmra.mrb[8].mxu1 %vm505_vm0, %v1315_v30 }
 0x33b   : > { %v1307_v32 = vpop.permute.xlu1 %1306  ;;  %1946 = vmatpush3.msra.mxu1 %v1321_v31  ;;  %1947 = vmatprep.mubr.msk.f32.mxu1 %vm2065_vm1, %v2066_v1 }
 0x33c   : > { %v1316_v34 = vmul.f32 %v1307_v32, %v1292_v33 }
 0x33e   : > { %1943 = vmatmul.mubr.msk.f32.vlgmr.msra.gmra.mrb[10].mxu0 %vm505_vm0, %v1316_v34 }
 0x33f   : > { %v1312_v35 = vpop.permute.xlu0 %1311 }
 0x340   : > { %v1317_v37 = vmul.f32 %v1312_v35, %v1293_v36 }
 0x342   : > { %1948 = vmatmul.mubr.msk.f32.vlgmr.msra.gmra.mrb[10].mxu1 %vm505_vm0, %v1317_v37 }
 0x409   : > { %v1391_v38 = vpop.f32.mrb[8].mxu0 }
 0x40a   : > { %v1934_v39 = vpop.f32.mrb[9].mxu0  ;;  %v1615_v41 = vsel %vm1614_vm12, %v1391_v38, 0.0 }
 0x40d   : > { %v1464_v40 = vpop.f32.mrb[8].mxu1 }
 0x40e   : > { %v1616_v42 = vsel %vm1614_vm12, %v1464_v40, 0.0  ;;  %v1939_v43 = vpop.f32.mrb[9].mxu1 }
 0x40f   : > { %v1617_v44 = vadd.f32 %v1616_v42, %v1615_v41 }
 0x411   : > { %v1537_v1 = vpop.f32.mrb[10].mxu0 }
 0x412   : > { %v1618_v45 = vsel %vm1614_vm12, %v1537_v1, 0.0  ;;  %v1944_v46 = vpop.f32.mrb[11].mxu0 }
 0x413   : > { %v1619_v47 = vadd.f32 %v1618_v45, %v1617_v44 }
 0x415   : > { %v1610_v48 = vpop.f32.mrb[10].mxu1 }
 0x416   : > { %v1620_v49 = vsel %vm1614_vm12, %v1610_v48, 0.0  ;;  %v1949_v50 = vpop.f32.mrb[11].mxu1 }
 0x417   : > { %v1621_v52 = vadd.f32 %v1620_v49, %v1619_v47 }
 0x419   : > { %v1623_v53 = vadd.f32 %v1622_v51, %v1621_v52 }
 0x41b   : > { %v1624_v54 = vsel %vm1614_vm12, %v1623_v53, 0.0 }
 0x41c   : > { %1625 = vadd.xlane.f32.xlu1 %v1624_v54 }
 0x4a9   : > { %v1626_v55 = vpop.xlane.xlu1 %1625 }
 0x4aa   : > { %v1628_v56 = vmul.f32 0.03125, %v1626_v55 }
 0x4ac   : > { %v1629_v57 = vsub.f32 %v1623_v53, %v1628_v56 }
 0x4ae   : > { %v1630_v58 = vmul.f32 %v1629_v57, %v1629_v57 }
 0x4b0   : > { %v1631_v59 = vsel %vm1614_vm12, %v1630_v58, 0.0 }
 0x4b1   : > { %1632 = vadd.xlane.f32.xlu0 %v1631_v59 }
 0x53e   : > { %v1633_v60 = vpop.xlane.xlu0 %1632 }
 0x53f   : > { %v1634_v61 = vmul.f32 0.03125, %v1633_v60 }
 0x541   : > { %v1635_v62 = vadd.f32 1e-05, %v1634_v61 }
 0x543   : > { %2038 = vrsqrt.f32 %v1635_v62 }
 0x54d   : > { %v2039_v63 = vpop.eup %2038 }
 0x54e   : > { %v1637_v3 = vmul.f32 %v2039_v63, %v1629_v57 }
 0x550   : > { %v1645_v5 = vmul.f32 %v1835_v2, %v1637_v3 }
 0x552   : > { %v1653_v6 = vadd.f32 %v1836_v4, %v1645_v5 }
 0x554   : > { %1654 = vst.msk [vmem:[%s466_s23] sm:$0xf] %vm1614_vm12, %v1653_v6 }
 0x555 PF: > { %s18_s29 = sadd.s32 1, %s2062_s29   ;;  %s2392_s27 = smov %s2058_s28 }
 0x556   : > { %p15_p5 = scmp.ge.s32.totalorder %s18_s29, 4   ;;  %s2393_s28 = smov %s2395_s30 }
 0x558   :  { %17 = sbr.rel (!%p15_p5) target bundleno = 2 (0x2), region = 102 }

</bundles_post_ra>
